<compile_context>
chip_gen: v7x
topology: tpu7x:2x2x1
jax: 0.10.0
libtpu: 0.0.40
codegen_flags: <defaults>
</compile_context>

<pallas_src>
import jax
import jax.numpy as jnp
from jax.experimental import pallas as pl
from jax.experimental.pallas import tpu as pltpu

HIGHEST = jax.lax.Precision.HIGHEST  # only used by the pure-JAX reference


# -----------------------------------------------------------------------------
# Kernel 1: per batch -- two dilated 3x3 convs (+bias, +ReLU) -> spatial means
#           -> dense -> CCIFL conv -> dense2 -> per-batch channel bias.
# -----------------------------------------------------------------------------
def _make_conv_gap_bias_kernel(H, W, C, M, pad, dilations):
    HW = H * W

    def kernel(xp_ref, wA_ref, bA_ref, wB_ref, bB_ref,
               wd_ref, cw_ref, cb_ref, d2_ref, bias_ref):
        # xp_ref: (1, H+2*pad, W+2*pad, C) zero-padded NHWC image (VMEM resident)
        # wX_ref: (9, C, M) conv taps, bX_ref: (1, M)
        # wd_ref: (M, C)   cw_ref: (C, C//2)   cb_ref: (1, C//2)   d2_ref: (C//2, C)
        # bias_ref: (1, 1, C)

        def conv_relu_mean(w_ref, b_ref, d):
            # relu(3x3 dilated conv) as 9 shifted matmuls on the padded image,
            # then reduced immediately to its spatial mean -> (1, M).
            # (W a multiple of 8 keeps the (H, W, C)->(HW, C) collapse cheap.)
            acc = jnp.zeros((HW, M), jnp.float32)
            for ky in range(3):
                r0 = pad + (ky - 1) * d
                for kx in range(3):
                    c0 = pad + (kx - 1) * d
                    tap = xp_ref[0, r0:r0 + H, c0:c0 + W, :]          # (H, W, C)
                    acc = acc + jnp.dot(tap.reshape(HW, C),
                                        w_ref[ky * 3 + kx],
                                        preferred_element_type=jnp.float32)
            act = jnp.maximum(acc + b_ref[...], 0.0)                  # ReLU
            return jnp.mean(act, axis=0, keepdims=True)               # (1, M)

        m_a2 = conv_relu_mean(wA_ref, bA_ref, dilations[0])   # mean of a2 (d=3)
        m_a4 = conv_relu_mean(wB_ref, bB_ref, dilations[1])   # mean of a4 (d=7)

        def affine_chain(m):
            # GAP(attention branch) == m @ dense_w^T (softmax rows sum to 1),
            # then CCIFL conv (+bias); CCIFL's 1x1 softmax == 1; then dense2.
            g = jnp.dot(m, wd_ref[...], preferred_element_type=jnp.float32)
            z = jnp.dot(g, cw_ref[...],
                        preferred_element_type=jnp.float32) + cb_ref[...]
            return jnp.dot(z, d2_ref[...], preferred_element_type=jnp.float32)

        bias_ref[0] = (affine_chain(m_a4) + affine_chain(m_a2)).astype(bias_ref.dtype)

    return kernel


def conv_gap_bias(xp, w3_taps, b3, w7_taps, b7,
                  dense_wT, ccifl_wT, ccifl_b, dense2_wT, *, H, W, pad,
                  dilations=(3, 7)):
    B, Hp, Wp, C = xp.shape
    M = w3_taps.shape[-1]
    kernel = _make_conv_gap_bias_kernel(H, W, C, M, pad, dilations)
    # TODO(synk): for B==1 on v7x (2 TensorCores) a second "parallel" grid axis
    # (e.g. over the two conv branches) would keep both cores busy.
    return pl.pallas_call(
        kernel,
        out_shape=jax.ShapeDtypeStruct((B, 1, C), jnp.float32),
        grid=(B,),
        in_specs=[
            pl.BlockSpec((1, Hp, Wp, C), lambda i: (i, 0, 0, 0)),
            pl.BlockSpec((9, C, M), lambda i: (0, 0, 0)),
            pl.BlockSpec((1, M), lambda i: (0, 0)),
            pl.BlockSpec((9, C, M), lambda i: (0, 0, 0)),
            pl.BlockSpec((1, M), lambda i: (0, 0)),
            pl.BlockSpec((M, C), lambda i: (0, 0)),
            pl.BlockSpec((C, C // 2), lambda i: (0, 0)),
            pl.BlockSpec((1, C // 2), lambda i: (0, 0)),
            pl.BlockSpec((C // 2, C), lambda i: (0, 0)),
        ],
        out_specs=pl.BlockSpec((1, 1, C), lambda i: (i, 0, 0)),
        compiler_params=pltpu.CompilerParams(
            dimension_semantics=("parallel",),
            vmem_limit_bytes=48 * 1024 * 1024),
    )(xp, w3_taps, b3, w7_taps, b7, dense_wT, ccifl_wT, ccifl_b, dense2_wT)


# -----------------------------------------------------------------------------
# Kernel 2: streamed broadcast residual add, tiled over the flattened spatial
#           axis; output aliased onto the (transposed) input buffer.
# -----------------------------------------------------------------------------
def _final_add_kernel(x_ref, bias_ref, o_ref):
    # (1, T, C) + (1, 1, C) broadcast over the spatial tile.
    o_ref[...] = x_ref[...] + bias_ref[...]


def _pick_spatial_tile(hw, cap=512):
    for t in (cap, 256, 128, 64, 32, 16, 8):
        if t <= hw and hw % t == 0:
            return t
    return hw


def final_broadcast_add(x_flat, bias):
    B, HW, C = x_flat.shape
    T = _pick_spatial_tile(HW)
    return pl.pallas_call(
        _final_add_kernel,
        out_shape=jax.ShapeDtypeStruct((B, HW, C), x_flat.dtype),
        grid=(B, HW // T),
        in_specs=[
            pl.BlockSpec((1, T, C), lambda i, j: (i, j, 0)),
            pl.BlockSpec((1, 1, C), lambda i, j: (i, 0, 0)),
        ],
        out_specs=pl.BlockSpec((1, T, C), lambda i, j: (i, j, 0)),
        input_output_aliases={0: 0},
        compiler_params=pltpu.CompilerParams(
            dimension_semantics=("parallel", "parallel")),
    )(x_flat, bias)


# -----------------------------------------------------------------------------
# Wrapper: full IFLM_Spatial_Channel forward (NCHW in / NCHW out).
# -----------------------------------------------------------------------------
def iflm_spatial_channel_forward(x_nchw, params):
    B, C, H, W = x_nchw.shape
    M = params["w2"].shape[0]
    pad = 7                                     # = max dilation actually used

    x_nhwc = jnp.transpose(x_nchw, (0, 2, 3, 1))             # layout glue only
    xp = jnp.pad(x_nhwc, ((0, 0), (pad, pad), (pad, pad), (0, 0)))

    # conva1 (d=2) / conva3 (d=5) feed only the q/k side of the softmax, which
    # cancels under the GAP -> their params (w1/b1, w3/b3) are dead here.
    w3_taps = jnp.transpose(params["w2"], (2, 3, 1, 0)).reshape(9, C, M)
    w7_taps = jnp.transpose(params["w4"], (2, 3, 1, 0)).reshape(9, C, M)
    b3 = params["b2"].reshape(1, M)
    b7 = params["b4"].reshape(1, M)
    dense_wT = params["dense_w"].reshape(C, M).T             # (M, C)
    ccifl_wT = params["ccifl_w"].reshape(C // 2, C).T        # (C, C//2)
    ccifl_b = params["ccifl_b"].reshape(1, C // 2)
    dense2_wT = params["dense2_w"].reshape(C, C // 2).T      # (C//2, C)

    bias = conv_gap_bias(xp, w3_taps, b3, w7_taps, b7,
                         dense_wT, ccifl_wT, ccifl_b, dense2_wT,
                         H=H, W=W, pad=pad)                  # (B, 1, C)

    x_flat = x_nhwc.reshape(B, H * W, C)
    out_flat = final_broadcast_add(x_flat, bias)
    return jnp.transpose(out_flat.reshape(B, H, W, C), (0, 3, 1, 2))


# -----------------------------------------------------------------------------
# Pure-JAX reference (mirrors the PyTorch forward *without* the algebraic
# simplification: all four convs, both HW x HW softmax attentions) to verify
# that the simplified Pallas path is numerically equivalent.
# -----------------------------------------------------------------------------
def ref_forward(x, p):
    B, C, H, W = x.shape
    M = p["w1"].shape[0]

    def dconv(w, b, d):
        y = jax.lax.conv_general_dilated(
            x, w, window_strides=(1, 1), padding=[(d, d), (d, d)],
            rhs_dilation=(d, d), dimension_numbers=("NCHW", "OIHW", "NCHW"),
            precision=HIGHEST)
        return jax.nn.relu(y + b[None, :, None, None])

    a1 = dconv(p["w1"], p["b1"], 2).reshape(B, M, H * W).transpose(0, 2, 1)
    a2 = dconv(p["w2"], p["b2"], 3).reshape(B, M, H * W)
    a3 = dconv(p["w3"], p["b3"], 5).reshape(B, M, H * W).transpose(0, 2, 1)
    a4 = dconv(p["w4"], p["b4"], 7).reshape(B, M, H * W)

    dense_w = p["dense_w"].reshape(C, M)

    def branch(q, k, v):
        e = jnp.einsum("bnm,bmk->bnk", q, k, precision=HIGHEST)
        att = jax.nn.softmax(e, axis=-1)
        o = jnp.einsum("bmn,bnk->bmk", v, att, precision=HIGHEST)   # (B, M, HW)
        return jnp.einsum("cm,bmk->bck", dense_w, o, precision=HIGHEST)

    o1 = branch(a1, a2, a4)
    o2 = branch(a3, a4, a2)

    cw = p["ccifl_w"].reshape(C // 2, C)
    cb = p["ccifl_b"]
    d2 = p["dense2_w"].reshape(C, C // 2)

    def ccifl_dense2(y):
        g = jnp.mean(y, axis=-1)                                     # GAP (B, C)
        z = jnp.einsum("oc,bc->bo", cw, g, precision=HIGHEST) + cb[None, :]
        # softmax of the (1,1) CCIFL energy is identically 1 -> att_qkv == Xc_v
        return jnp.einsum("co,bo->bc", d2, z, precision=HIGHEST)

    c1 = ccifl_dense2(o1)
    c2 = ccifl_dense2(o2)
    return c1[:, :, None, None] + c2[:, :, None, None] + x


if __name__ == "__main__":
    # Small config consistent with the module (channels=C, branch width M=C//4).
    B, C, H, W = 2, 32, 16, 16
    M = C // 4

    key = jax.random.PRNGKey(0)
    ks = jax.random.split(key, 13)

    def init(k, shape, scale=0.1):
        return scale * jax.random.normal(k, shape, jnp.float32)

    params = {
        "w1": init(ks[0], (M, C, 3, 3)), "b1": init(ks[1], (M,)),   # conva1 d=2
        "w2": init(ks[2], (M, C, 3, 3)), "b2": init(ks[3], (M,)),   # conva2 d=3
        "w3": init(ks[4], (M, C, 3, 3)), "b3": init(ks[5], (M,)),   # conva3 d=5
        "w4": init(ks[6], (M, C, 3, 3)), "b4": init(ks[7], (M,)),   # conva4 d=7
        "dense_w": init(ks[8], (C, M, 1, 1)),        # dense: M -> C, no bias
        "dense2_w": init(ks[9], (C, C // 2, 1, 1)),  # dense2: C//2 -> C, no bias
        "ccifl_w": init(ks[10], (C // 2, C, 1, 1)),  # CCIFL conv: C -> C//2
        "ccifl_b": init(ks[11], (C // 2,)),
    }
    # TODO(synk): the Q1/K1/V1 Conv1d layers of Cross_Channel_Interaction are
    # never used in the PyTorch forward pass, so they are intentionally omitted.

    x = jax.random.normal(ks[12], (B, C, H, W), jnp.float32)

    fwd = jax.jit(iflm_spatial_channel_forward)
    out = jax.block_until_ready(fwd(x, params))
    assert out.shape == (B, C, H, W), out.shape

    ref = ref_forward(x, params)
    max_err = float(jnp.max(jnp.abs(out - ref)))
    assert jnp.allclose(out, ref, atol=2e-3, rtol=2e-3), max_err

    print("KERNEL_OK")
</pallas_src>

<mosaic_0001>
module attributes {stable_mosaic.version = 11 : i64} {
  func.func @_final_add_kernel(%arg0: i32, %arg1: i32, %arg2: memref<1x256x32xf32, #tpu.memory_space<vmem>>, %arg3: memref<1x1x32xf32, #tpu.memory_space<vmem>>, %arg4: memref<1x256x32xf32, #tpu.memory_space<vmem>>) attributes {dimension_semantics = [#tpu.dimension_semantics<parallel>, #tpu.dimension_semantics<parallel>], iteration_bounds = array<i64: 2, 1>, scalar_prefetch = 0 : i64, scratch_operands = 0 : i64, tpu.core_type = #tpu.core_type<tc>, window_params = [{transform_indices = @transform_0, window_bounds = array<i64: 1, 256, 32>}, {transform_indices = @transform_1, window_bounds = array<i64: 1, 1, 32>}, {transform_indices = @transform_2, window_bounds = array<i64: 1, 256, 32>}]} {
    %c0 = arith.constant 0 : index
    %c0_0 = arith.constant 0 : index
    %c0_1 = arith.constant 0 : index
    %0 = vector.load %arg2[%c0, %c0_0, %c0_1] : memref<1x256x32xf32, #tpu.memory_space<vmem>>, vector<1x256x32xf32>
    %c0_2 = arith.constant 0 : index
    %c0_3 = arith.constant 0 : index
    %c0_4 = arith.constant 0 : index
    %1 = vector.load %arg3[%c0_2, %c0_3, %c0_4] : memref<1x1x32xf32, #tpu.memory_space<vmem>>, vector<1x1x32xf32>
    %2 = vector.broadcast %1 : vector<1x1x32xf32> to vector<1x256x32xf32>
    %3 = arith.addf %0, %2 : vector<1x256x32xf32>
    %c0_5 = arith.constant 0 : index
    %c0_6 = arith.constant 0 : index
    %c0_7 = arith.constant 0 : index
    %4 = vector.load %arg4[%c0_5, %c0_6, %c0_7] : memref<1x256x32xf32, #tpu.memory_space<vmem>>, vector<1x256x32xf32>
    tpu.vector_store %arg4[%c0_5, %c0_6, %c0_7], %3 {strides = array<i32>} : memref<1x256x32xf32, #tpu.memory_space<vmem>>, vector<1x256x32xf32>,
    return
  }
  func.func @transform_0(%arg0: i32, %arg1: i32) -> (i32, i32, i32) {
    %c0_i32 = arith.constant 0 : i32
    %c0_i32_0 = arith.constant 0 : i32
    return %arg0, %arg1, %c0_i32 : i32, i32, i32
  }
  func.func @transform_1(%arg0: i32, %arg1: i32) -> (i32, i32, i32) {
    %c0_i32 = arith.constant 0 : i32
    %c0_i32_0 = arith.constant 0 : i32
    %c0_i32_1 = arith.constant 0 : i32
    return %arg0, %c0_i32, %c0_i32_0 : i32, i32, i32
  }
  func.func @transform_2(%arg0: i32, %arg1: i32) -> (i32, i32, i32) {
    %c0_i32 = arith.constant 0 : i32
    %c0_i32_0 = arith.constant 0 : i32
    return %arg0, %arg1, %c0_i32 : i32, i32, i32
  }
}

module attributes {stable_mosaic.version = 11 : i64} {
  func.func @kernel(%arg0: i32, %arg1: memref<1x30x30x32xf32, #tpu.memory_space<vmem>>, %arg2: memref<9x32x8xf32, #tpu.memory_space<vmem>>, %arg3: memref<1x8xf32, #tpu.memory_space<vmem>>, %arg4: memref<9x32x8xf32, #tpu.memory_space<vmem>>, %arg5: memref<1x8xf32, #tpu.memory_space<vmem>>, %arg6: memref<8x32xf32, #tpu.memory_space<vmem>>, %arg7: memref<32x16xf32, #tpu.memory_space<vmem>>, %arg8: memref<1x16xf32, #tpu.memory_space<vmem>>, %arg9: memref<16x32xf32, #tpu.memory_space<vmem>>, %arg10: memref<1x1x32xf32, #tpu.memory_space<vmem>>) attributes {dimension_semantics = [#tpu.dimension_semantics<parallel>], iteration_bounds = array<i64: 2>, scalar_prefetch = 0 : i64, scratch_operands = 0 : i64, tpu.core_type = #tpu.core_type<tc>, window_params = [{transform_indices = @transform_0, window_bounds = array<i64: 1, 30, 30, 32>}, {pipeline_mode = #tpu.pipeline_mode<synchronous>, transform_indices = @transform_1, window_bounds = array<i64: 9, 32, 8>}, {pipeline_mode = #tpu.pipeline_mode<synchronous>, transform_indices = @transform_2, window_bounds = array<i64: 1, 8>}, {pipeline_mode = #tpu.pipeline_mode<synchronous>, transform_indices = @transform_3, window_bounds = array<i64: 9, 32, 8>}, {pipeline_mode = #tpu.pipeline_mode<synchronous>, transform_indices = @transform_4, window_bounds = array<i64: 1, 8>}, {pipeline_mode = #tpu.pipeline_mode<synchronous>, transform_indices = @transform_5, window_bounds = array<i64: 8, 32>}, {pipeline_mode = #tpu.pipeline_mode<synchronous>, transform_indices = @transform_6, window_bounds = array<i64: 32, 16>}, {pipeline_mode = #tpu.pipeline_mode<synchronous>, transform_indices = @transform_7, window_bounds = array<i64: 1, 16>}, {pipeline_mode = #tpu.pipeline_mode<synchronous>, transform_indices = @transform_8, window_bounds = array<i64: 16, 32>}, {transform_indices = @transform_9, window_bounds = array<i64: 1, 1, 32>}]} {
    %cst = arith.constant 0.000000e+00 : f32
    %0 = vector.broadcast %cst : f32 to vector<256x8xf32>
    %c0 = arith.constant 0 : index
    %c4 = arith.constant 4 : index
    %c4_0 = arith.constant 4 : index
    %c0_1 = arith.constant 0 : index
    %1 = vector.load %arg1[%c0, %c4, %c4_0, %c0_1] : memref<1x30x30x32xf32, #tpu.memory_space<vmem>>, vector<1x16x16x32xf32>
    %2 = vector.shape_cast %1 : vector<1x16x16x32xf32> to vector<16x16x32xf32>
    %3 = vector.shape_cast %2 : vector<16x16x32xf32> to vector<256x32xf32>
    %c0_2 = arith.constant 0 : index
    %c0_3 = arith.constant 0 : index
    %c0_4 = arith.constant 0 : index
    %4 = vector.load %arg2[%c0_2, %c0_3, %c0_4] : memref<9x32x8xf32, #tpu.memory_space<vmem>>, vector<1x32x8xf32>
    %5 = vector.shape_cast %4 : vector<1x32x8xf32> to vector<32x8xf32>
    %cst_5 = arith.constant dense<0.000000e+00> : vector<256x8xf32>
    %6 = tpu.matmul %3, %5, %cst_5 {dimension_numbers = #tpu.dot_dimension_numbers<[1], [0], [0], [1], [0, 0, 1, 1], [], []>} : vector<256x32xf32>, vector<32x8xf32>, vector<256x8xf32> -> vector<256x8xf32>
    %7 = arith.addf %0, %6 : vector<256x8xf32>
    %c0_6 = arith.constant 0 : index
    %c4_7 = arith.constant 4 : index
    %c7 = arith.constant 7 : index
    %c0_8 = arith.constant 0 : index
    %8 = vector.load %arg1[%c0_6, %c4_7, %c7, %c0_8] : memref<1x30x30x32xf32, #tpu.memory_space<vmem>>, vector<1x16x16x32xf32>
    %9 = vector.shape_cast %8 : vector<1x16x16x32xf32> to vector<16x16x32xf32>
    %10 = vector.shape_cast %9 : vector<16x16x32xf32> to vector<256x32xf32>
    %c1 = arith.constant 1 : index
    %c0_9 = arith.constant 0 : index
    %c0_10 = arith.constant 0 : index
    %11 = vector.load %arg2[%c1, %c0_9, %c0_10] : memref<9x32x8xf32, #tpu.memory_space<vmem>>, vector<1x32x8xf32>
    %12 = vector.shape_cast %11 : vector<1x32x8xf32> to vector<32x8xf32>
    %cst_11 = arith.constant dense<0.000000e+00> : vector<256x8xf32>
    %13 = tpu.matmul %10, %12, %cst_11 {dimension_numbers = #tpu.dot_dimension_numbers<[1], [0], [0], [1], [0, 0, 1, 1], [], []>} : vector<256x32xf32>, vector<32x8xf32>, vector<256x8xf32> -> vector<256x8xf32>
    %14 = arith.addf %7, %13 : vector<256x8xf32>
    %c0_12 = arith.constant 0 : index
    %c4_13 = arith.constant 4 : index
    %c10 = arith.constant 10 : index
    %c0_14 = arith.constant 0 : index
    %15 = vector.load %arg1[%c0_12, %c4_13, %c10, %c0_14] : memref<1x30x30x32xf32, #tpu.memory_space<vmem>>, vector<1x16x16x32xf32>
    %16 = vector.shape_cast %15 : vector<1x16x16x32xf32> to vector<16x16x32xf32>
    %17 = vector.shape_cast %16 : vector<16x16x32xf32> to vector<256x32xf32>
    %c2 = arith.constant 2 : index
    %c0_15 = arith.constant 0 : index
    %c0_16 = arith.constant 0 : index
    %18 = vector.load %arg2[%c2, %c0_15, %c0_16] : memref<9x32x8xf32, #tpu.memory_space<vmem>>, vector<1x32x8xf32>
    %19 = vector.shape_cast %18 : vector<1x32x8xf32> to vector<32x8xf32>
    %cst_17 = arith.constant dense<0.000000e+00> : vector<256x8xf32>
    %20 = tpu.matmul %17, %19, %cst_17 {dimension_numbers = #tpu.dot_dimension_numbers<[1], [0], [0], [1], [0, 0, 1, 1], [], []>} : vector<256x32xf32>, vector<32x8xf32>, vector<256x8xf32> -> vector<256x8xf32>
    %21 = arith.addf %14, %20 : vector<256x8xf32>
    %c0_18 = arith.constant 0 : index
    %c7_19 = arith.constant 7 : index
    %c4_20 = arith.constant 4 : index
    %c0_21 = arith.constant 0 : index
    %22 = vector.load %arg1[%c0_18, %c7_19, %c4_20, %c0_21] : memref<1x30x30x32xf32, #tpu.memory_space<vmem>>, vector<1x16x16x32xf32>
    %23 = vector.shape_cast %22 : vector<1x16x16x32xf32> to vector<16x16x32xf32>
    %24 = vector.shape_cast %23 : vector<16x16x32xf32> to vector<256x32xf32>
    %c3 = arith.constant 3 : index
    %c0_22 = arith.constant 0 : index
    %c0_23 = arith.constant 0 : index
    %25 = vector.load %arg2[%c3, %c0_22, %c0_23] : memref<9x32x8xf32, #tpu.memory_space<vmem>>, vector<1x32x8xf32>
    %26 = vector.shape_cast %25 : vector<1x32x8xf32> to vector<32x8xf32>
    %cst_24 = arith.constant dense<0.000000e+00> : vector<256x8xf32>
    %27 = tpu.matmul %24, %26, %cst_24 {dimension_numbers = #tpu.dot_dimension_numbers<[1], [0], [0], [1], [0, 0, 1, 1], [], []>} : vector<256x32xf32>, vector<32x8xf32>, vector<256x8xf32> -> vector<256x8xf32>
    %28 = arith.addf %21, %27 : vector<256x8xf32>
    %c0_25 = arith.constant 0 : index
    %c7_26 = arith.constant 7 : index
    %c7_27 = arith.constant 7 : index
    %c0_28 = arith.constant 0 : index
    %29 = vector.load %arg1[%c0_25, %c7_26, %c7_27, %c0_28] : memref<1x30x30x32xf32, #tpu.memory_space<vmem>>, vector<1x16x16x32xf32>
    %30 = vector.shape_cast %29 : vector<1x16x16x32xf32> to vector<16x16x32xf32>
    %31 = vector.shape_cast %30 : vector<16x16x32xf32> to vector<256x32xf32>
    %c4_29 = arith.constant 4 : index
    %c0_30 = arith.constant 0 : index
    %c0_31 = arith.constant 0 : index
    %32 = vector.load %arg2[%c4_29, %c0_30, %c0_31] : memref<9x32x8xf32, #tpu.memory_space<vmem>>, vector<1x32x8xf32>
    %33 = vector.shape_cast %32 : vector<1x32x8xf32> to vector<32x8xf32>
    %cst_32 = arith.constant dense<0.000000e+00> : vector<256x8xf32>
    %34 = tpu.matmul %31, %33, %cst_32 {dimension_numbers = #tpu.dot_dimension_numbers<[1], [0], [0], [1], [0, 0, 1, 1], [], []>} : vector<256x32xf32>, vector<32x8xf32>, vector<256x8xf32> -> vector<256x8xf32>
    %35 = arith.addf %28, %34 : vector<256x8xf32>
    %c0_33 = arith.constant 0 : index
    %c7_34 = arith.constant 7 : index
    %c10_35 = arith.constant 10 : index
    %c0_36 = arith.constant 0 : index
    %36 = vector.load %arg1[%c0_33, %c7_34, %c10_35, %c0_36] : memref<1x30x30x32xf32, #tpu.memory_space<vmem>>, vector<1x16x16x32xf32>
    %37 = vector.shape_cast %36 : vector<1x16x16x32xf32> to vector<16x16x32xf32>
    %38 = vector.shape_cast %37 : vector<16x16x32xf32> to vector<256x32xf32>
    %c5 = arith.constant 5 : index
    %c0_37 = arith.constant 0 : index
    %c0_38 = arith.constant 0 : index
    %39 = vector.load %arg2[%c5, %c0_37, %c0_38] : memref<9x32x8xf32, #tpu.memory_space<vmem>>, vector<1x32x8xf32>
    %40 = vector.shape_cast %39 : vector<1x32x8xf32> to vector<32x8xf32>
    %cst_39 = arith.constant dense<0.000000e+00> : vector<256x8xf32>
    %41 = tpu.matmul %38, %40, %cst_39 {dimension_numbers = #tpu.dot_dimension_numbers<[1], [0], [0], [1], [0, 0, 1, 1], [], []>} : vector<256x32xf32>, vector<32x8xf32>, vector<256x8xf32> -> vector<256x8xf32>
    %42 = arith.addf %35, %41 : vector<256x8xf32>
    %c0_40 = arith.constant 0 : index
    %c10_41 = arith.constant 10 : index
    %c4_42 = arith.constant 4 : index
    %c0_43 = arith.constant 0 : index
    %43 = vector.load %arg1[%c0_40, %c10_41, %c4_42, %c0_43] : memref<1x30x30x32xf32, #tpu.memory_space<vmem>>, vector<1x16x16x32xf32>
    %44 = vector.shape_cast %43 : vector<1x16x16x32xf32> to vector<16x16x32xf32>
    %45 = vector.shape_cast %44 : vector<16x16x32xf32> to vector<256x32xf32>
    %c6 = arith.constant 6 : index
    %c0_44 = arith.constant 0 : index
    %c0_45 = arith.constant 0 : index
    %46 = vector.load %arg2[%c6, %c0_44, %c0_45] : memref<9x32x8xf32, #tpu.memory_space<vmem>>, vector<1x32x8xf32>
    %47 = vector.shape_cast %46 : vector<1x32x8xf32> to vector<32x8xf32>
    %cst_46 = arith.constant dense<0.000000e+00> : vector<256x8xf32>
    %48 = tpu.matmul %45, %47, %cst_46 {dimension_numbers = #tpu.dot_dimension_numbers<[1], [0], [0], [1], [0, 0, 1, 1], [], []>} : vector<256x32xf32>, vector<32x8xf32>, vector<256x8xf32> -> vector<256x8xf32>
    %49 = arith.addf %42, %48 : vector<256x8xf32>
    %c0_47 = arith.constant 0 : index
    %c10_48 = arith.constant 10 : index
    %c7_49 = arith.constant 7 : index
    %c0_50 = arith.constant 0 : index
    %50 = vector.load %arg1[%c0_47, %c10_48, %c7_49, %c0_50] : memref<1x30x30x32xf32, #tpu.memory_space<vmem>>, vector<1x16x16x32xf32>
    %51 = vector.shape_cast %50 : vector<1x16x16x32xf32> to vector<16x16x32xf32>
    %52 = vector.shape_cast %51 : vector<16x16x32xf32> to vector<256x32xf32>
    %c7_51 = arith.constant 7 : index
    %c0_52 = arith.constant 0 : index
    %c0_53 = arith.constant 0 : index
    %53 = vector.load %arg2[%c7_51, %c0_52, %c0_53] : memref<9x32x8xf32, #tpu.memory_space<vmem>>, vector<1x32x8xf32>
    %54 = vector.shape_cast %53 : vector<1x32x8xf32> to vector<32x8xf32>
    %cst_54 = arith.constant dense<0.000000e+00> : vector<256x8xf32>
    %55 = tpu.matmul %52, %54, %cst_54 {dimension_numbers = #tpu.dot_dimension_numbers<[1], [0], [0], [1], [0, 0, 1, 1], [], []>} : vector<256x32xf32>, vector<32x8xf32>, vector<256x8xf32> -> vector<256x8xf32>
    %56 = arith.addf %49, %55 : vector<256x8xf32>
    %c0_55 = arith.constant 0 : index
    %c10_56 = arith.constant 10 : index
    %c10_57 = arith.constant 10 : index
    %c0_58 = arith.constant 0 : index
    %57 = vector.load %arg1[%c0_55, %c10_56, %c10_57, %c0_58] : memref<1x30x30x32xf32, #tpu.memory_space<vmem>>, vector<1x16x16x32xf32>
    %58 = vector.shape_cast %57 : vector<1x16x16x32xf32> to vector<16x16x32xf32>
    %59 = vector.shape_cast %58 : vector<16x16x32xf32> to vector<256x32xf32>
    %c8 = arith.constant 8 : index
    %c0_59 = arith.constant 0 : index
    %c0_60 = arith.constant 0 : index
    %60 = vector.load %arg2[%c8, %c0_59, %c0_60] : memref<9x32x8xf32, #tpu.memory_space<vmem>>, vector<1x32x8xf32>
    %61 = vector.shape_cast %60 : vector<1x32x8xf32> to vector<32x8xf32>
    %cst_61 = arith.constant dense<0.000000e+00> : vector<256x8xf32>
    %62 = tpu.matmul %59, %61, %cst_61 {dimension_numbers = #tpu.dot_dimension_numbers<[1], [0], [0], [1], [0, 0, 1, 1], [], []>} : vector<256x32xf32>, vector<32x8xf32>, vector<256x8xf32> -> vector<256x8xf32>
    %63 = arith.addf %56, %62 : vector<256x8xf32>
    %c0_62 = arith.constant 0 : index
    %c0_63 = arith.constant 0 : index
    %64 = vector.load %arg3[%c0_62, %c0_63] : memref<1x8xf32, #tpu.memory_space<vmem>>, vector<1x8xf32>
    %65 = vector.broadcast %64 : vector<1x8xf32> to vector<256x8xf32>
    %66 = arith.addf %63, %65 : vector<256x8xf32>
    %cst_64 = arith.constant 0.000000e+00 : f32
    %67 = vector.broadcast %cst_64 : f32 to vector<256x8xf32>
    %68 = arith.maximumf %66, %67 : vector<256x8xf32>
    %cst_65 = arith.constant dense<0.000000e+00> : vector<8xf32>
    %69 = vector.multi_reduction <add>, %68, %cst_65 [0] : vector<256x8xf32> to vector<8xf32>
    %70 = vector.shape_cast %69 : vector<8xf32> to vector<1x8xf32>
    %cst_66 = arith.constant 2.560000e+02 : f32
    %71 = vector.broadcast %cst_66 : f32 to vector<1x8xf32>
    %72 = arith.divf %70, %71 : vector<1x8xf32>
    %cst_67 = arith.constant 0.000000e+00 : f32
    %73 = vector.broadcast %cst_67 : f32 to vector<256x8xf32>
    %c0_68 = arith.constant 0 : index
    %c0_69 = arith.constant 0 : index
    %c0_70 = arith.constant 0 : index
    %c0_71 = arith.constant 0 : index
    %74 = vector.load %arg1[%c0_68, %c0_69, %c0_70, %c0_71] : memref<1x30x30x32xf32, #tpu.memory_space<vmem>>, vector<1x16x16x32xf32>
    %75 = vector.shape_cast %74 : vector<1x16x16x32xf32> to vector<16x16x32xf32>
    %76 = vector.shape_cast %75 : vector<16x16x32xf32> to vector<256x32xf32>
    %c0_72 = arith.constant 0 : index
    %c0_73 = arith.constant 0 : index
    %c0_74 = arith.constant 0 : index
    %77 = vector.load %arg4[%c0_72, %c0_73, %c0_74] : memref<9x32x8xf32, #tpu.memory_space<vmem>>, vector<1x32x8xf32>
    %78 = vector.shape_cast %77 : vector<1x32x8xf32> to vector<32x8xf32>
    %cst_75 = arith.constant dense<0.000000e+00> : vector<256x8xf32>
    %79 = tpu.matmul %76, %78, %cst_75 {dimension_numbers = #tpu.dot_dimension_numbers<[1], [0], [0], [1], [0, 0, 1, 1], [], []>} : vector<256x32xf32>, vector<32x8xf32>, vector<256x8xf32> -> vector<256x8xf32>
    %80 = arith.addf %73, %79 : vector<256x8xf32>
    %c0_76 = arith.constant 0 : index
    %c0_77 = arith.constant 0 : index
    %c7_78 = arith.constant 7 : index
    %c0_79 = arith.constant 0 : index
    %81 = vector.load %arg1[%c0_76, %c0_77, %c7_78, %c0_79] : memref<1x30x30x32xf32, #tpu.memory_space<vmem>>, vector<1x16x16x32xf32>
    %82 = vector.shape_cast %81 : vector<1x16x16x32xf32> to vector<16x16x32xf32>
    %83 = vector.shape_cast %82 : vector<16x16x32xf32> to vector<256x32xf32>
    %c1_80 = arith.constant 1 : index
    %c0_81 = arith.constant 0 : index
    %c0_82 = arith.constant 0 : index
    %84 = vector.load %arg4[%c1_80, %c0_81, %c0_82] : memref<9x32x8xf32, #tpu.memory_space<vmem>>, vector<1x32x8xf32>
    %85 = vector.shape_cast %84 : vector<1x32x8xf32> to vector<32x8xf32>
    %cst_83 = arith.constant dense<0.000000e+00> : vector<256x8xf32>
    %86 = tpu.matmul %83, %85, %cst_83 {dimension_numbers = #tpu.dot_dimension_numbers<[1], [0], [0], [1], [0, 0, 1, 1], [], []>} : vector<256x32xf32>, vector<32x8xf32>, vector<256x8xf32> -> vector<256x8xf32>
    %87 = arith.addf %80, %86 : vector<256x8xf32>
    %c0_84 = arith.constant 0 : index
    %c0_85 = arith.constant 0 : index
    %c14 = arith.constant 14 : index
    %c0_86 = arith.constant 0 : index
    %88 = vector.load %arg1[%c0_84, %c0_85, %c14, %c0_86] : memref<1x30x30x32xf32, #tpu.memory_space<vmem>>, vector<1x16x16x32xf32>
    %89 = vector.shape_cast %88 : vector<1x16x16x32xf32> to vector<16x16x32xf32>
    %90 = vector.shape_cast %89 : vector<16x16x32xf32> to vector<256x32xf32>
    %c2_87 = arith.constant 2 : index
    %c0_88 = arith.constant 0 : index
    %c0_89 = arith.constant 0 : index
    %91 = vector.load %arg4[%c2_87, %c0_88, %c0_89] : memref<9x32x8xf32, #tpu.memory_space<vmem>>, vector<1x32x8xf32>
    %92 = vector.shape_cast %91 : vector<1x32x8xf32> to vector<32x8xf32>
    %cst_90 = arith.constant dense<0.000000e+00> : vector<256x8xf32>
    %93 = tpu.matmul %90, %92, %cst_90 {dimension_numbers = #tpu.dot_dimension_numbers<[1], [0], [0], [1], [0, 0, 1, 1], [], []>} : vector<256x32xf32>, vector<32x8xf32>, vector<256x8xf32> -> vector<256x8xf32>
    %94 = arith.addf %87, %93 : vector<256x8xf32>
    %c0_91 = arith.constant 0 : index
    %c7_92 = arith.constant 7 : index
    %c0_93 = arith.constant 0 : index
    %c0_94 = arith.constant 0 : index
    %95 = vector.load %arg1[%c0_91, %c7_92, %c0_93, %c0_94] : memref<1x30x30x32xf32, #tpu.memory_space<vmem>>, vector<1x16x16x32xf32>
    %96 = vector.shape_cast %95 : vector<1x16x16x32xf32> to vector<16x16x32xf32>
    %97 = vector.shape_cast %96 : vector<16x16x32xf32> to vector<256x32xf32>
    %c3_95 = arith.constant 3 : index
    %c0_96 = arith.constant 0 : index
    %c0_97 = arith.constant 0 : index
    %98 = vector.load %arg4[%c3_95, %c0_96, %c0_97] : memref<9x32x8xf32, #tpu.memory_space<vmem>>, vector<1x32x8xf32>
    %99 = vector.shape_cast %98 : vector<1x32x8xf32> to vector<32x8xf32>
    %cst_98 = arith.constant dense<0.000000e+00> : vector<256x8xf32>
    %100 = tpu.matmul %97, %99, %cst_98 {dimension_numbers = #tpu.dot_dimension_numbers<[1], [0], [0], [1], [0, 0, 1, 1], [], []>} : vector<256x32xf32>, vector<32x8xf32>, vector<256x8xf32> -> vector<256x8xf32>
    %101 = arith.addf %94, %100 : vector<256x8xf32>
    %c0_99 = arith.constant 0 : index
    %c7_100 = arith.constant 7 : index
    %c7_101 = arith.constant 7 : index
    %c0_102 = arith.constant 0 : index
    %102 = vector.load %arg1[%c0_99, %c7_100, %c7_101, %c0_102] : memref<1x30x30x32xf32, #tpu.memory_space<vmem>>, vector<1x16x16x32xf32>
    %103 = vector.shape_cast %102 : vector<1x16x16x32xf32> to vector<16x16x32xf32>
    %104 = vector.shape_cast %103 : vector<16x16x32xf32> to vector<256x32xf32>
    %c4_103 = arith.constant 4 : index
    %c0_104 = arith.constant 0 : index
    %c0_105 = arith.constant 0 : index
    %105 = vector.load %arg4[%c4_103, %c0_104, %c0_105] : memref<9x32x8xf32, #tpu.memory_space<vmem>>, vector<1x32x8xf32>
    %106 = vector.shape_cast %105 : vector<1x32x8xf32> to vector<32x8xf32>
    %cst_106 = arith.constant dense<0.000000e+00> : vector<256x8xf32>
    %107 = tpu.matmul %104, %106, %cst_106 {dimension_numbers = #tpu.dot_dimension_numbers<[1], [0], [0], [1], [0, 0, 1, 1], [], []>} : vector<256x32xf32>, vector<32x8xf32>, vector<256x8xf32> -> vector<256x8xf32>
    %108 = arith.addf %101, %107 : vector<256x8xf32>
    %c0_107 = arith.constant 0 : index
    %c7_108 = arith.constant 7 : index
    %c14_109 = arith.constant 14 : index
    %c0_110 = arith.constant 0 : index
    %109 = vector.load %arg1[%c0_107, %c7_108, %c14_109, %c0_110] : memref<1x30x30x32xf32, #tpu.memory_space<vmem>>, vector<1x16x16x32xf32>
    %110 = vector.shape_cast %109 : vector<1x16x16x32xf32> to vector<16x16x32xf32>
    %111 = vector.shape_cast %110 : vector<16x16x32xf32> to vector<256x32xf32>
    %c5_111 = arith.constant 5 : index
    %c0_112 = arith.constant 0 : index
    %c0_113 = arith.constant 0 : index
    %112 = vector.load %arg4[%c5_111, %c0_112, %c0_113] : memref<9x32x8xf32, #tpu.memory_space<vmem>>, vector<1x32x8xf32>
    %113 = vector.shape_cast %112 : vector<1x32x8xf32> to vector<32x8xf32>
    %cst_114 = arith.constant dense<0.000000e+00> : vector<256x8xf32>
    %114 = tpu.matmul %111, %113, %cst_114 {dimension_numbers = #tpu.dot_dimension_numbers<[1], [0], [0], [1], [0, 0, 1, 1], [], []>} : vector<256x32xf32>, vector<32x8xf32>, vector<256x8xf32> -> vector<256x8xf32>
    %115 = arith.addf %108, %114 : vector<256x8xf32>
    %c0_115 = arith.constant 0 : index
    %c14_116 = arith.constant 14 : index
    %c0_117 = arith.constant 0 : index
    %c0_118 = arith.constant 0 : index
    %116 = vector.load %arg1[%c0_115, %c14_116, %c0_117, %c0_118] : memref<1x30x30x32xf32, #tpu.memory_space<vmem>>, vector<1x16x16x32xf32>
    %117 = vector.shape_cast %116 : vector<1x16x16x32xf32> to vector<16x16x32xf32>
    %118 = vector.shape_cast %117 : vector<16x16x32xf32> to vector<256x32xf32>
    %c6_119 = arith.constant 6 : index
    %c0_120 = arith.constant 0 : index
    %c0_121 = arith.constant 0 : index
    %119 = vector.load %arg4[%c6_119, %c0_120, %c0_121] : memref<9x32x8xf32, #tpu.memory_space<vmem>>, vector<1x32x8xf32>
    %120 = vector.shape_cast %119 : vector<1x32x8xf32> to vector<32x8xf32>
    %cst_122 = arith.constant dense<0.000000e+00> : vector<256x8xf32>
    %121 = tpu.matmul %118, %120, %cst_122 {dimension_numbers = #tpu.dot_dimension_numbers<[1], [0], [0], [1], [0, 0, 1, 1], [], []>} : vector<256x32xf32>, vector<32x8xf32>, vector<256x8xf32> -> vector<256x8xf32>
    %122 = arith.addf %115, %121 : vector<256x8xf32>
    %c0_123 = arith.constant 0 : index
    %c14_124 = arith.constant 14 : index
    %c7_125 = arith.constant 7 : index
    %c0_126 = arith.constant 0 : index
    %123 = vector.load %arg1[%c0_123, %c14_124, %c7_125, %c0_126] : memref<1x30x30x32xf32, #tpu.memory_space<vmem>>, vector<1x16x16x32xf32>
    %124 = vector.shape_cast %123 : vector<1x16x16x32xf32> to vector<16x16x32xf32>
    %125 = vector.shape_cast %124 : vector<16x16x32xf32> to vector<256x32xf32>
    %c7_127 = arith.constant 7 : index
    %c0_128 = arith.constant 0 : index
    %c0_129 = arith.constant 0 : index
    %126 = vector.load %arg4[%c7_127, %c0_128, %c0_129] : memref<9x32x8xf32, #tpu.memory_space<vmem>>, vector<1x32x8xf32>
    %127 = vector.shape_cast %126 : vector<1x32x8xf32> to vector<32x8xf32>
    %cst_130 = arith.constant dense<0.000000e+00> : vector<256x8xf32>
    %128 = tpu.matmul %125, %127, %cst_130 {dimension_numbers = #tpu.dot_dimension_numbers<[1], [0], [0], [1], [0, 0, 1, 1], [], []>} : vector<256x32xf32>, vector<32x8xf32>, vector<256x8xf32> -> vector<256x8xf32>
    %129 = arith.addf %122, %128 : vector<256x8xf32>
    %c0_131 = arith.constant 0 : index
    %c14_132 = arith.constant 14 : index
    %c14_133 = arith.constant 14 : index
    %c0_134 = arith.constant 0 : index
    %130 = vector.load %arg1[%c0_131, %c14_132, %c14_133, %c0_134] : memref<1x30x30x32xf32, #tpu.memory_space<vmem>>, vector<1x16x16x32xf32>
    %131 = vector.shape_cast %130 : vector<1x16x16x32xf32> to vector<16x16x32xf32>
    %132 = vector.shape_cast %131 : vector<16x16x32xf32> to vector<256x32xf32>
    %c8_135 = arith.constant 8 : index
    %c0_136 = arith.constant 0 : index
    %c0_137 = arith.constant 0 : index
    %133 = vector.load %arg4[%c8_135, %c0_136, %c0_137] : memref<9x32x8xf32, #tpu.memory_space<vmem>>, vector<1x32x8xf32>
    %134 = vector.shape_cast %133 : vector<1x32x8xf32> to vector<32x8xf32>
    %cst_138 = arith.constant dense<0.000000e+00> : vector<256x8xf32>
    %135 = tpu.matmul %132, %134, %cst_138 {dimension_numbers = #tpu.dot_dimension_numbers<[1], [0], [0], [1], [0, 0, 1, 1], [], []>} : vector<256x32xf32>, vector<32x8xf32>, vector<256x8xf32> -> vector<256x8xf32>
    %136 = arith.addf %129, %135 : vector<256x8xf32>
    %c0_139 = arith.constant 0 : index
    %c0_140 = arith.constant 0 : index
    %137 = vector.load %arg5[%c0_139, %c0_140] : memref<1x8xf32, #tpu.memory_space<vmem>>, vector<1x8xf32>
    %138 = vector.broadcast %137 : vector<1x8xf32> to vector<256x8xf32>
    %139 = arith.addf %136, %138 : vector<256x8xf32>
    %cst_141 = arith.constant 0.000000e+00 : f32
    %140 = vector.broadcast %cst_141 : f32 to vector<256x8xf32>
    %141 = arith.maximumf %139, %140 : vector<256x8xf32>
    %cst_142 = arith.constant dense<0.000000e+00> : vector<8xf32>
    %142 = vector.multi_reduction <add>, %141, %cst_142 [0] : vector<256x8xf32> to vector<8xf32>
    %143 = vector.shape_cast %142 : vector<8xf32> to vector<1x8xf32>
    %cst_143 = arith.constant 2.560000e+02 : f32
    %144 = vector.broadcast %cst_143 : f32 to vector<1x8xf32>
    %145 = arith.divf %143, %144 : vector<1x8xf32>
    %c0_144 = arith.constant 0 : index
    %c0_145 = arith.constant 0 : index
    %146 = vector.load %arg6[%c0_144, %c0_145] : memref<8x32xf32, #tpu.memory_space<vmem>>, vector<8x32xf32>
    %cst_146 = arith.constant dense<0.000000e+00> : vector<1x32xf32>
    %147 = tpu.matmul %145, %146, %cst_146 {dimension_numbers = #tpu.dot_dimension_numbers<[1], [0], [0], [1], [0, 0, 1, 1], [], []>} : vector<1x8xf32>, vector<8x32xf32>, vector<1x32xf32> -> vector<1x32xf32>
    %c0_147 = arith.constant 0 : index
    %c0_148 = arith.constant 0 : index
    %148 = vector.load %arg7[%c0_147, %c0_148] : memref<32x16xf32, #tpu.memory_space<vmem>>, vector<32x16xf32>
    %cst_149 = arith.constant dense<0.000000e+00> : vector<1x16xf32>
    %149 = tpu.matmul %147, %148, %cst_149 {dimension_numbers = #tpu.dot_dimension_numbers<[1], [0], [0], [1], [0, 0, 1, 1], [], []>} : vector<1x32xf32>, vector<32x16xf32>, vector<1x16xf32> -> vector<1x16xf32>
    %c0_150 = arith.constant 0 : index
    %c0_151 = arith.constant 0 : index
    %150 = vector.load %arg8[%c0_150, %c0_151] : memref<1x16xf32, #tpu.memory_space<vmem>>, vector<1x16xf32>
    %151 = arith.addf %149, %150 : vector<1x16xf32>
    %c0_152 = arith.constant 0 : index
    %c0_153 = arith.constant 0 : index
    %152 = vector.load %arg9[%c0_152, %c0_153] : memref<16x32xf32, #tpu.memory_space<vmem>>, vector<16x32xf32>
    %cst_154 = arith.constant dense<0.000000e+00> : vector<1x32xf32>
    %153 = tpu.matmul %151, %152, %cst_154 {dimension_numbers = #tpu.dot_dimension_numbers<[1], [0], [0], [1], [0, 0, 1, 1], [], []>} : vector<1x16xf32>, vector<16x32xf32>, vector<1x32xf32> -> vector<1x32xf32>
    %c0_155 = arith.constant 0 : index
    %c0_156 = arith.constant 0 : index
    %154 = vector.load %arg6[%c0_155, %c0_156] : memref<8x32xf32, #tpu.memory_space<vmem>>, vector<8x32xf32>
    %cst_157 = arith.constant dense<0.000000e+00> : vector<1x32xf32>
    %155 = tpu.matmul %72, %154, %cst_157 {dimension_numbers = #tpu.dot_dimension_numbers<[1], [0], [0], [1], [0, 0, 1, 1], [], []>} : vector<1x8xf32>, vector<8x32xf32>, vector<1x32xf32> -> vector<1x32xf32>
    %c0_158 = arith.constant 0 : index
    %c0_159 = arith.constant 0 : index
    %156 = vector.load %arg7[%c0_158, %c0_159] : memref<32x16xf32, #tpu.memory_space<vmem>>, vector<32x16xf32>
    %cst_160 = arith.constant dense<0.000000e+00> : vector<1x16xf32>
    %157 = tpu.matmul %155, %156, %cst_160 {dimension_numbers = #tpu.dot_dimension_numbers<[1], [0], [0], [1], [0, 0, 1, 1], [], []>} : vector<1x32xf32>, vector<32x16xf32>, vector<1x16xf32> -> vector<1x16xf32>
    %c0_161 = arith.constant 0 : index
    %c0_162 = arith.constant 0 : index
    %158 = vector.load %arg8[%c0_161, %c0_162] : memref<1x16xf32, #tpu.memory_space<vmem>>, vector<1x16xf32>
    %159 = arith.addf %157, %158 : vector<1x16xf32>
    %c0_163 = arith.constant 0 : index
    %c0_164 = arith.constant 0 : index
    %160 = vector.load %arg9[%c0_163, %c0_164] : memref<16x32xf32, #tpu.memory_space<vmem>>, vector<16x32xf32>
    %cst_165 = arith.constant dense<0.000000e+00> : vector<1x32xf32>
    %161 = tpu.matmul %159, %160, %cst_165 {dimension_numbers = #tpu.dot_dimension_numbers<[1], [0], [0], [1], [0, 0, 1, 1], [], []>} : vector<1x16xf32>, vector<16x32xf32>, vector<1x32xf32> -> vector<1x32xf32>
    %162 = arith.addf %153, %161 : vector<1x32xf32>
    %c0_166 = arith.constant 0 : index
    %c0_167 = arith.constant 0 : index
    %c0_168 = arith.constant 0 : index
    %163 = vector.load %arg10[%c0_166, %c0_167, %c0_168] : memref<1x1x32xf32, #tpu.memory_space<vmem>>, vector<1x1x32xf32>
    %164 = vector.shape_cast %163 : vector<1x1x32xf32> to vector<1x32xf32>
    %165 = vector.shape_cast %162 : vector<1x32xf32> to vector<1x1x32xf32>
    tpu.vector_store %arg10[%c0_166, %c0_167, %c0_168], %165 {strides = array<i32>} : memref<1x1x32xf32, #tpu.memory_space<vmem>>, vector<1x1x32xf32>,
    return
  }
  func.func @transform_0(%arg0: i32) -> (i32, i32, i32, i32) {
    %c0_i32 = arith.constant 0 : i32
    %c0_i32_0 = arith.constant 0 : i32
    %c0_i32_1 = arith.constant 0 : i32
    %c0_i32_2 = arith.constant 0 : i32
    return %arg0, %c0_i32, %c0_i32_0, %c0_i32_1 : i32, i32, i32, i32
  }
  func.func @transform_1(%arg0: i32) -> (i32, i32, i32) {
    %c0_i32 = arith.constant 0 : i32
    %c0_i32_0 = arith.constant 0 : i32
    %c0_i32_1 = arith.constant 0 : i32
    %c0_i32_2 = arith.constant 0 : i32
    return %c0_i32, %c0_i32_0, %c0_i32_1 : i32, i32, i32
  }
  func.func @transform_2(%arg0: i32) -> (i32, i32) {
    %c0_i32 = arith.constant 0 : i32
    %c0_i32_0 = arith.constant 0 : i32
    %c0_i32_1 = arith.constant 0 : i32
    return %c0_i32, %c0_i32_0 : i32, i32
  }
  func.func @transform_3(%arg0: i32) -> (i32, i32, i32) {
    %c0_i32 = arith.constant 0 : i32
    %c0_i32_0 = arith.constant 0 : i32
    %c0_i32_1 = arith.constant 0 : i32
    %c0_i32_2 = arith.constant 0 : i32
    return %c0_i32, %c0_i32_0, %c0_i32_1 : i32, i32, i32
  }
  func.func @transform_4(%arg0: i32) -> (i32, i32) {
    %c0_i32 = arith.constant 0 : i32
    %c0_i32_0 = arith.constant 0 : i32
    %c0_i32_1 = arith.constant 0 : i32
    return %c0_i32, %c0_i32_0 : i32, i32
  }
  func.func @transform_5(%arg0: i32) -> (i32, i32) {
    %c0_i32 = arith.constant 0 : i32
    %c0_i32_0 = arith.constant 0 : i32
    %c0_i32_1 = arith.constant 0 : i32
    return %c0_i32, %c0_i32_0 : i32, i32
  }
  func.func @transform_6(%arg0: i32) -> (i32, i32) {
    %c0_i32 = arith.constant 0 : i32
    %c0_i32_0 = arith.constant 0 : i32
    %c0_i32_1 = arith.constant 0 : i32
    return %c0_i32, %c0_i32_0 : i32, i32
  }
  func.func @transform_7(%arg0: i32) -> (i32, i32) {
    %c0_i32 = arith.constant 0 : i32
    %c0_i32_0 = arith.constant 0 : i32
    %c0_i32_1 = arith.constant 0 : i32
    return %c0_i32, %c0_i32_0 : i32, i32
  }
  func.func @transform_8(%arg0: i32) -> (i32, i32) {
    %c0_i32 = arith.constant 0 : i32
    %c0_i32_0 = arith.constant 0 : i32
    %c0_i32_1 = arith.constant 0 : i32
    return %c0_i32, %c0_i32_0 : i32, i32
  }
  func.func @transform_9(%arg0: i32) -> (i32, i32, i32) {
    %c0_i32 = arith.constant 0 : i32
    %c0_i32_0 = arith.constant 0 : i32
    %c0_i32_1 = arith.constant 0 : i32
    return %arg0, %c0_i32, %c0_i32_0 : i32, i32, i32
  }
}

</mosaic_0001>

<bundles_post_ra>
// kernel: iflm_spatial_channel_forward.3
= control target key start
LH: loop header
LB: loop body
LE: loop exit
PB: predicated region body
PF: predicated region fallthrough
CT: control target
= control target key end

     0   :  { %s474_s9 = smov 0   ;;  %s476_s10 = smov 0   ;;  %s652_s0 = inlined_call_operand.vmem [shape: f32[2,256,32], index: 0, kind: input, shape index: {}, may-alias: {0,2}]   ;;  %s653_s1 = inlined_call_operand.vmem [shape: f32[2,1,32], index: 1, kind: input, shape index: {}]   ;;  %s654_s2 = inlined_call_operand.vmem [shape: f32[2,256,32], index: 2, kind: output, shape index: {}, may-alias: {0,2}]  }
   0x1   :  { %s478_s11 = smov 0  }
   0x2 LB: > { %s24_s12 = sadd.s32 1, %s453_s10  ;;  %p401_p0 = scmp.ge.s32.totalorder %s457_s11, 1  ;;  %s457_s11 = sphi %s478_s11, %s12_s11   ;;  %s453_s10 = sphi %s476_s10, %s656_s10   ;;  %s449_s9 = sphi %s474_s9, %s655_s9  }
   0x3   : > { %p26_p1 = scmp.ge.s32.totalorder %s24_s12, 2  ;;  %p141_p2 = scmp.lt.s32.totalorder %s457_s11, 3 }
   0x5   : > { %s658_s12 = smov (%p26_p1, %s24_s12), 0  ;;  %p142_p3 = pnand %p401_p0, %p141_p2 }
   0x6   : > { %p175_p4 = scmp.lt.s32.totalorder (!%p142_p3), %s449_s9, 1  ;;  %vm268_vm0 = vcmask (!%p142_p3), 261120  }
   0x7   : > { %145 = sbr.rel (%p142_p3) target bundleno = 44 (0x2c), region = 28 }
   0xe   : > { %s660_s9 = smov (!%p175_p4, %s449_s9), 1 }
   0xf   : > { %s409_s13 = sshll.u32 %s660_s9, 8  ;;  %s186_s16 = scalar_lea.vmem %s653_s1, %s660_s9 }
  0x10   : > { %s504_s19 = scalar_lea.vmem %s652_s0, %s409_s13  ;;  %v506_v0 = vld [vmem:[%s186_s16] ss:$0 sm:$0xff]  ;;  %s558_s22 = scalar_lea.vmem %s654_s2, %s409_s13 }
  0x11   : > { %v197_v1 = vld [vmem:[%s504_s19] sm:$0xff]  ;;  %v198_v2 = vld [vmem:[%s504_s19 + $0x8] sm:$0xff]  ;;  %v199_v3 = vld [vmem:[%s504_s19 + $0x10] sm:$0xff] }
  0x12   : > { %v200_v4 = vld [vmem:[%s504_s19 + $0x18] sm:$0xff]  ;;  %v201_v5 = vld [vmem:[%s504_s19 + $0x20] sm:$0xff]  ;;  %v202_v6 = vld [vmem:[%s504_s19 + $0x28] sm:$0xff]  ;;  %v236_v10 = vadd.f32 %v506_v0, %v197_v1  ;;  %v237_v14 = vadd.f32 %v506_v0, %v198_v2  ;;  %v238_v15 = vadd.f32 %v506_v0, %v199_v3 }
  0x13   : > { %v203_v7 = vld [vmem:[%s504_s19 + $0x30] sm:$0xff]  ;;  %v204_v8 = vld [vmem:[%s504_s19 + $0x38] sm:$0xff]  ;;  %v205_v9 = vld [vmem:[%s504_s19 + $0x40] sm:$0xff]  ;;  %v239_v16 = vadd.f32 %v506_v0, %v200_v4  ;;  %v240_v17 = vadd.f32 %v506_v0, %v201_v5  ;;  %v241_v21 = vadd.f32 %v506_v0, %v202_v6 }
  0x14   : > { %v206_v11 = vld [vmem:[%s504_s19 + $0x48] sm:$0xff]  ;;  %v207_v12 = vld [vmem:[%s504_s19 + $0x50] sm:$0xff]  ;;  %v208_v13 = vld [vmem:[%s504_s19 + $0x58] sm:$0xff]  ;;  %v242_v22 = vadd.f32 %v506_v0, %v203_v7  ;;  %v243_v23 = vadd.f32 %v506_v0, %v204_v8  ;;  %v244_v24 = vadd.f32 %v506_v0, %v205_v9 }
  0x15   : > { %v209_v18 = vld [vmem:[%s504_s19 + $0x60] sm:$0xff]  ;;  %v210_v19 = vld [vmem:[%s504_s19 + $0x68] sm:$0xff]  ;;  %v211_v20 = vld [vmem:[%s504_s19 + $0x70] sm:$0xff]  ;;  %v245_v28 = vadd.f32 %v506_v0, %v206_v11  ;;  %v246_v29 = vadd.f32 %v506_v0, %v207_v12  ;;  %v247_v30 = vadd.f32 %v506_v0, %v208_v13 }
  0x16   : > { %v212_v25 = vld [vmem:[%s504_s19 + $0x78] sm:$0xff]  ;;  %v213_v26 = vld [vmem:[%s504_s19 + $0x80] sm:$0xff]  ;;  %v214_v27 = vld [vmem:[%s504_s19 + $0x88] sm:$0xff]  ;;  %v248_v31 = vadd.f32 %v506_v0, %v209_v18  ;;  %v249_v35 = vadd.f32 %v506_v0, %v210_v19  ;;  %v250_v36 = vadd.f32 %v506_v0, %v211_v20 }
  0x17   : > { %v215_v32 = vld [vmem:[%s504_s19 + $0x90] sm:$0xff]  ;;  %v216_v33 = vld [vmem:[%s504_s19 + $0x98] sm:$0xff]  ;;  %v217_v34 = vld [vmem:[%s504_s19 + $0xa0] sm:$0xff]  ;;  %v251_v37 = vadd.f32 %v506_v0, %v212_v25  ;;  %v252_v38 = vadd.f32 %v506_v0, %v213_v26  ;;  %v253_v42 = vadd.f32 %v506_v0, %v214_v27 }
  0x18   : > { %v218_v39 = vld [vmem:[%s504_s19 + $0xa8] sm:$0xff]  ;;  %v219_v40 = vld [vmem:[%s504_s19 + $0xb0] sm:$0xff]  ;;  %v220_v41 = vld [vmem:[%s504_s19 + $0xb8] sm:$0xff]  ;;  %v254_v43 = vadd.f32 %v506_v0, %v215_v32  ;;  %v255_v44 = vadd.f32 %v506_v0, %v216_v33  ;;  %v256_v45 = vadd.f32 %v506_v0, %v217_v34 }
  0x19   : > { %v221_v46 = vld [vmem:[%s504_s19 + $0xc0] sm:$0xff]  ;;  %v222_v47 = vld [vmem:[%s504_s19 + $0xc8] sm:$0xff]  ;;  %v223_v48 = vld [vmem:[%s504_s19 + $0xd0] sm:$0xff]  ;;  %v257_v49 = vadd.f32 %v506_v0, %v218_v39  ;;  %v258_v50 = vadd.f32 %v506_v0, %v219_v40  ;;  %v259_v51 = vadd.f32 %v506_v0, %v220_v41 }
  0x1a   : > { %v224_v52 = vld [vmem:[%s504_s19 + $0xd8] sm:$0xff]  ;;  %v225_v53 = vld [vmem:[%s504_s19 + $0xe0] sm:$0xff]  ;;  %v226_v54 = vld [vmem:[%s504_s19 + $0xe8] sm:$0xff]  ;;  %v260_v55 = vadd.f32 %v506_v0, %v221_v46  ;;  %v261_v56 = vadd.f32 %v506_v0, %v222_v47  ;;  %v262_v57 = vadd.f32 %v506_v0, %v223_v48 }
  0x1b   : > { %v227_v58 = vld [vmem:[%s504_s19 + $0xf0] sm:$0xff]  ;;  %v228_v59 = vld [vmem:[%s504_s19 + $0xf8] sm:$0xff]  ;;  %v263_v60 = vadd.f32 %v506_v0, %v224_v52  ;;  %v264_v61 = vadd.f32 %v506_v0, %v225_v53  ;;  %v265_v62 = vadd.f32 %v506_v0, %v226_v54 }
  0x1c   : > { %269 = vst.msk [vmem:[%s558_s22] sm:$0xff] %vm268_vm0, %v236_v10  ;;  %270 = vst.msk [vmem:[%s558_s22 + $0x8] sm:$0xff] %vm268_vm0, %v237_v14  ;;  %v266_v63 = vadd.f32 %v506_v0, %v227_v58  ;;  %v267_v1 = vadd.f32 %v506_v0, %v228_v59 }
  0x1d   : > { %271 = vst.msk [vmem:[%s558_s22 + $0x10] sm:$0xff] %vm268_vm0, %v238_v15  ;;  %272 = vst.msk [vmem:[%s558_s22 + $0x18] sm:$0xff] %vm268_vm0, %v239_v16 }
  0x1e   : > { %273 = vst.msk [vmem:[%s558_s22 + $0x20] sm:$0xff] %vm268_vm0, %v240_v17  ;;  %274 = vst.msk [vmem:[%s558_s22 + $0x28] sm:$0xff] %vm268_vm0, %v241_v21 }
  0x1f   : > { %275 = vst.msk [vmem:[%s558_s22 + $0x30] sm:$0xff] %vm268_vm0, %v242_v22  ;;  %276 = vst.msk [vmem:[%s558_s22 + $0x38] sm:$0xff] %vm268_vm0, %v243_v23 }
  0x20   : > { %277 = vst.msk [vmem:[%s558_s22 + $0x40] sm:$0xff] %vm268_vm0, %v244_v24  ;;  %278 = vst.msk [vmem:[%s558_s22 + $0x48] sm:$0xff] %vm268_vm0, %v245_v28 }
  0x21   : > { %279 = vst.msk [vmem:[%s558_s22 + $0x50] sm:$0xff] %vm268_vm0, %v246_v29  ;;  %280 = vst.msk [vmem:[%s558_s22 + $0x58] sm:$0xff] %vm268_vm0, %v247_v30 }
  0x22   : > { %281 = vst.msk [vmem:[%s558_s22 + $0x60] sm:$0xff] %vm268_vm0, %v248_v31  ;;  %282 = vst.msk [vmem:[%s558_s22 + $0x68] sm:$0xff] %vm268_vm0, %v249_v35 }
  0x23   : > { %283 = vst.msk [vmem:[%s558_s22 + $0x70] sm:$0xff] %vm268_vm0, %v250_v36  ;;  %284 = vst.msk [vmem:[%s558_s22 + $0x78] sm:$0xff] %vm268_vm0, %v251_v37 }
  0x24   : > { %285 = vst.msk [vmem:[%s558_s22 + $0x80] sm:$0xff] %vm268_vm0, %v252_v38  ;;  %286 = vst.msk [vmem:[%s558_s22 + $0x88] sm:$0xff] %vm268_vm0, %v253_v42 }
  0x25   : > { %287 = vst.msk [vmem:[%s558_s22 + $0x90] sm:$0xff] %vm268_vm0, %v254_v43  ;;  %288 = vst.msk [vmem:[%s558_s22 + $0x98] sm:$0xff] %vm268_vm0, %v255_v44 }
  0x26   : > { %289 = vst.msk [vmem:[%s558_s22 + $0xa0] sm:$0xff] %vm268_vm0, %v256_v45  ;;  %290 = vst.msk [vmem:[%s558_s22 + $0xa8] sm:$0xff] %vm268_vm0, %v257_v49 }
  0x27   : > { %291 = vst.msk [vmem:[%s558_s22 + $0xb0] sm:$0xff] %vm268_vm0, %v258_v50  ;;  %292 = vst.msk [vmem:[%s558_s22 + $0xb8] sm:$0xff] %vm268_vm0, %v259_v51 }
  0x28   : > { %293 = vst.msk [vmem:[%s558_s22 + $0xc0] sm:$0xff] %vm268_vm0, %v260_v55  ;;  %294 = vst.msk [vmem:[%s558_s22 + $0xc8] sm:$0xff] %vm268_vm0, %v261_v56 }
  0x29   : > { %295 = vst.msk [vmem:[%s558_s22 + $0xd0] sm:$0xff] %vm268_vm0, %v262_v57  ;;  %296 = vst.msk [vmem:[%s558_s22 + $0xd8] sm:$0xff] %vm268_vm0, %v263_v60 }
  0x2a   : > { %297 = vst.msk [vmem:[%s558_s22 + $0xe0] sm:$0xff] %vm268_vm0, %v264_v61  ;;  %298 = vst.msk [vmem:[%s558_s22 + $0xe8] sm:$0xff] %vm268_vm0, %v265_v62 }
  0x2b   : > { %299 = vst.msk [vmem:[%s558_s22 + $0xf0] sm:$0xff] %vm268_vm0, %v266_v63  ;;  %300 = vst.msk [vmem:[%s558_s22 + $0xf8] sm:$0xff] %vm268_vm0, %v267_v1 }
  0x2c PF: > { %s12_s11 = sadd.s32 1, %s457_s11   ;;  %s655_s9 = smov %s453_s10 }
  0x2d   : > { %p9_p5 = scmp.ge.s32.totalorder %s12_s11, 4   ;;  %s656_s10 = smov %s658_s12 }
  0x2f   :  { %11 = sbr.rel (!%p9_p5) target bundleno = 2 (0x2), region = 61 }

// kernel: iflm_spatial_channel_forward.2
= control target key start
LH: loop header
LB: loop body
LE: loop exit
PB: predicated region body
PF: predicated region fallthrough
CT: control target
= control target key end

     0   :  { %s11451_s30 = smov 0   ;;  %s13522_s0 = inlined_call_operand.vmem [shape: f32[2,30,30,32], index: 0, kind: input, shape index: {}]   ;;  %s13523_s1 = inlined_call_operand.vmem [shape: f32[9,32,8], index: 1, kind: input, shape index: {}]   ;;  %s13524_s2 = inlined_call_operand.vmem [shape: f32[1,8], index: 2, kind: input, shape index: {}]   ;;  %s13525_s3 = inlined_call_operand.vmem [shape: f32[9,32,8], index: 3, kind: input, shape index: {}]   ;;  %s13526_s4 = inlined_call_operand.vmem [shape: f32[1,8], index: 4, kind: input, shape index: {}]   ;;  %s13527_s5 = inlined_call_operand.vmem [shape: f32[8,32], index: 5, kind: input, shape index: {}]   ;;  %s13528_s6 = inlined_call_operand.vmem [shape: f32[32,16], index: 6, kind: input, shape index: {}]   ;;  %s13529_s7 = inlined_call_operand.vmem [shape: f32[1,16], index: 7, kind: input, shape index: {}]   ;;  %s13530_s8 = inlined_call_operand.vmem [shape: f32[16,32], index: 8, kind: input, shape index: {}]   ;;  %s13531_s9 = inlined_call_operand.vmem [shape: f32[2,1,32], index: 9, kind: output, shape index: {}]  }
   0x1 LB: > { %s7876_s10 = sadd.s32 4294967295, %s11396_s30   ;;  %p7880_p0 = scmp.ge.s32.totalorder %s11396_s30, 1  ;;  %s11396_s30 = sphi %s11451_s30, %s19_s30  }
   0x2   : > { %p287_p1 = scmp.lt.s32.totalorder %s11396_s30, 3 }
   0x4   : > { %p288_p2 = pnand %p7880_p0, %p287_p1 }
   0x6   : > { %291 = sbr.rel (%p288_p2) target bundleno = 1489 (0x5d1), region = 56 }
   0xd   : > { %v7946_v0 = vld [vmem:[%s13523_s1 + $0x20] sm:$0xff]  ;;  %v7947_v1 = vld [vmem:[%s13523_s1 + $0x28] sm:$0xff]  ;;  %p321_p3 = scmp.lt.s32.totalorder %s7876_s10, 1  ;;  %v7948_v5 = vld [vmem:[%s13523_s1 + $0x30] sm:$0xff]  ;;  %vm403_vm0 = vcmask 261120   ;;  %vm11399_vm1 = vmmov 0  }
   0xe   : > { %v8491_v2 = vld [vmem:[%s13525_s3 + $0x20] sm:$0xff]  ;;  %v10702_v3 = vpack.c.bf16 %v7947_v1, %v7946_v0  ;;  %v8492_v4 = vld [vmem:[%s13525_s3 + $0x28] sm:$0xff]  ;;  %v7949_v6 = vld [vmem:[%s13523_s1 + $0x38] sm:$0xff]  ;;  %vm3849_vm2 = vcmask 64512   ;;  %vm7680_vm3 = vcmask 130048   ;;  %vm7827_vm4 = vcmask 253952  }
   0xf   : > { %v10774_v7 = vpack.c.bf16 %v8492_v4, %v8491_v2  ;;  %v10706_v8 = vpack.c.bf16 %v7949_v6, %v7948_v5  ;;  %v8493_v9 = vld [vmem:[%s13525_s3 + $0x30] sm:$0xff]  ;;  %v8494_v10 = vld [vmem:[%s13525_s3 + $0x38] sm:$0xff]  ;;  %s13685_s10 = smov (!%p321_p3, %s7876_s10), 1  ;;  %v3953_v11 = vld [vmem:[%s13525_s3] sm:$0xff] }
  0x10   : > { %10703 = vmatprep.subr.bf16.mxu0 %v10702_v3  ;;  %v10778_v12 = vpack.c.bf16 %v8494_v10, %v8493_v9  ;;  %v3954_v13 = vld [vmem:[%s13525_s3 + $0x8] sm:$0xff]  ;;  %v362_v14 = vld [vmem:[%s13523_s1] sm:$0xff]  ;;  %s11378_s16 = smul.u32 960, %s13685_s10  ;;  %v3955_v18 = vld [vmem:[%s13525_s3 + $0x10] sm:$0xff]  ;;  %s328_s15 = scalar_lea.vmem %s13531_s9, %s13685_s10 }
  0x11   : > { %v363_v15 = vld [vmem:[%s13523_s1 + $0x8] sm:$0xff]  ;;  %10775 = vmatprep.subr.bf16.mxu1 %v10774_v7  ;;  %10705 = vmatpush3.bf16.msra.mxu0 %v10702_v3  ;;  %v10782_v16 = vpack.c.bf16 %v3954_v13, %v3953_v11  ;;  %v3956_v21 = vld [vmem:[%s13525_s3 + $0x18] sm:$0xff]  ;;  %v364_v23 = vld [vmem:[%s13523_s1 + $0x10] sm:$0xff] }
  0x12   : > { %10777 = vmatpush3.bf16.msra.mxu1 %v10774_v7  ;;  %10707 = vmatprep.subr.bf16.mxu0 %v10706_v8  ;;  %s11501_s19 = scalar_lea.vmem %s13522_s0, %s11378_s16  ;;  %v10710_v17 = vpack.c.bf16 %v363_v15, %v362_v14  ;;  %v365_v24 = vld [vmem:[%s13523_s1 + $0x18] sm:$0xff]  ;;  %v10786_v28 = vpack.c.bf16 %v3956_v21, %v3955_v18  ;;  %v8559_v30 = vld [vmem:[%s13525_s3 + $0x40] sm:$0xff]  ;;  %v8560_v31 = vld [vmem:[%s13525_s3 + $0x48] sm:$0xff] }
  0x13   : > { %10779 = vmatprep.subr.bf16.mxu1 %v10778_v12  ;;  %v7914_v19 = vld [vmem:[%s11501_s19 + $0x87] sm:$0xff]  ;;  %v7915_v22 = vld [vmem:[%s11501_s19 + $0x8f] sm:$0xff]  ;;  %v10714_v29 = vpack.c.bf16 %v365_v24, %v364_v23  ;;  %v11543_v38 = vpack.c.bf16 %v8560_v31, %v8559_v30  ;;  %v8562_v9 = vld [vmem:[%s13525_s3 + $0x58] sm:$0xff] }
  0x14   : > { %v3957_v20 = vld [vmem:[%s11501_s19 + $0x7] sm:$0xff]  ;;  %9656 = vmatprep.mubr.msk.f32.mxu0 %vm403_vm0, %v7914_v19  ;;  %v3958_v25 = vld [vmem:[%s11501_s19 + $0xf] sm:$0xff] }
  0x15   : > { %10709 = vmatpush3.bf16.msra.mxu0 %v10706_v8  ;;  %10160 = vmatprep.mubr.msk.f32.mxu1 %vm403_vm0, %v3957_v20  ;;  %v7916_v26 = vld [vmem:[%s11501_s19 + $0xa7] sm:$0xff]  ;;  %v7917_v32 = vld [vmem:[%s11501_s19 + $0xaf] sm:$0xff] }
  0x16   : > { %10781 = vmatpush3.bf16.msra.mxu1 %v10778_v12  ;;  %v3959_v27 = vld [vmem:[%s11501_s19 + $0x27] sm:$0xff]  ;;  %10711 = vmatprep.subr.bf16.mxu0 %v10710_v17  ;;  %v3960_v35 = vld [vmem:[%s11501_s19 + $0x2f] sm:$0xff]  ;;  %v8049_v12 = vld [vmem:[%s13523_s1 + $0x58] sm:$0xff] }
  0x17   : > { %10783 = vmatprep.subr.bf16.mxu1 %v10782_v16  ;;  %v8046_v33 = vld [vmem:[%s13523_s1 + $0x40] sm:$0xff]  ;;  %v8047_v34 = vld [vmem:[%s13523_s1 + $0x48] sm:$0xff]  ;;  %v8561_v8 = vld [vmem:[%s13525_s3 + $0x50] sm:$0xff] }
  0x18   : > { %9657 = vmatmul.mubr.msk.f32.vlgmr.msra.gmra.mrb[0].mxu0 %vm403_vm0, %v7915_v22  ;;  %v7918_v36 = vld [vmem:[%s11501_s19 + $0xc7] sm:$0xff]  ;;  %v11546_v39 = vpack.c.bf16 %v8047_v34, %v8046_v33  ;;  %v7919_v40 = vld [vmem:[%s11501_s19 + $0xcf] sm:$0xff] }
  0x19   : > { %10161 = vmatmul.mubr.msk.f32.vlgmr.msra.gmra.mrb[0].mxu1 %vm403_vm0, %v3958_v25  ;;  %9659 = vmatprep.mubr.msk.f32.mxu0 %vm403_vm0, %v7916_v26  ;;  %v3961_v37 = vld [vmem:[%s11501_s19 + $0x47] sm:$0xff]  ;;  %v3962_v41 = vld [vmem:[%s11501_s19 + $0x4f] sm:$0xff] }
  0x1a   : > { %10785 = vmatpush3.bf16.msra.mxu1 %v10782_v16  ;;  %10163 = vmatprep.mubr.msk.f32.mxu1 %vm403_vm0, %v3959_v27  ;;  %v7920_v42 = vld [vmem:[%s11501_s19 + $0xe7] sm:$0xff]  ;;  %v7921_v44 = vld [vmem:[%s11501_s19 + $0xef] sm:$0xff]  ;;  %v10794_v16 = vpack.c.bf16 %v8562_v9, %v8561_v8 }
  0x1b   : > { %10713 = vmatpush3.bf16.msra.mxu0 %v10710_v17  ;;  %10787 = vmatprep.subr.bf16.mxu1 %v10786_v28  ;;  %v3963_v43 = vld [vmem:[%s11501_s19 + $0x67] sm:$0xff]  ;;  %v3964_v45 = vld [vmem:[%s11501_s19 + $0x6f] sm:$0xff] }
  0x1c   : > { %9660 = vmatmul.mubr.msk.f32.gmra.mrb[2].mxu0 %vm403_vm0, %v7917_v32  ;;  %10715 = vmatprep.subr.bf16.mxu0 %v10714_v29  ;;  %v7922_v46 = vld [vmem:[%s11501_s19 + $0x107] sm:$0xff]  ;;  %v7923_v47 = vld [vmem:[%s11501_s19 + $0x10f] sm:$0xff] }
  0x1d   : > { %10164 = vmatmul.mubr.msk.f32.gmra.mrb[2].mxu1 %vm403_vm0, %v3960_v35  ;;  %9662 = vmatprep.mubr.msk.f32.mxu0 %vm403_vm0, %v7918_v36  ;;  %v7924_v48 = vld [vmem:[%s11501_s19 + $0x127] sm:$0xff]  ;;  %v7925_v49 = vld [vmem:[%s11501_s19 + $0x12f] sm:$0xff] }
  0x1e   : > { %10166 = vmatprep.mubr.msk.f32.mxu1 %vm403_vm0, %v3961_v37  ;;  %10789 = vmatpush3.bf16.msra.mxu1 %v10786_v28  ;;  %v7926_v50 = vld [vmem:[%s11501_s19 + $0x147] sm:$0xff]  ;;  %v7927_v51 = vld [vmem:[%s11501_s19 + $0x14f] sm:$0xff] }
  0x1f   : > { %10717 = vmatpush3.bf16.msra.mxu0 %v10714_v29  ;;  %10791 = vmatprep.subr.bf16.mxu1 %v11543_v38  ;;  %v7928_v52 = vld [vmem:[%s11501_s19 + $0x167] sm:$0xff]  ;;  %v7929_v53 = vld [vmem:[%s11501_s19 + $0x16f] sm:$0xff] }
  0x20   : > { %9663 = vmatmul.mubr.msk.f32.gmra.mrb[4].mxu0 %vm403_vm0, %v7919_v40  ;;  %10719 = vmatprep.subr.bf16.mxu0 %v11546_v39  ;;  %v7930_v54 = vld [vmem:[%s11501_s19 + $0x187] sm:$0xff]  ;;  %v7931_v55 = vld [vmem:[%s11501_s19 + $0x18f] sm:$0xff] }
  0x21   : > { %10167 = vmatmul.mubr.msk.f32.gmra.mrb[4].mxu1 %vm403_vm0, %v3962_v41  ;;  %9665 = vmatprep.mubr.msk.f32.mxu0 %vm403_vm0, %v7920_v42  ;;  %v7932_v56 = vld [vmem:[%s11501_s19 + $0x1a7] sm:$0xff]  ;;  %v7933_v57 = vld [vmem:[%s11501_s19 + $0x1af] sm:$0xff] }
  0x22   : > { %10169 = vmatprep.mubr.msk.f32.mxu1 %vm403_vm0, %v3963_v43  ;;  %v7934_v58 = vld [vmem:[%s11501_s19 + $0x1c7] sm:$0xff]  ;;  %v7935_v59 = vld [vmem:[%s11501_s19 + $0x1cf] sm:$0xff] }
  0x23   : > { %v7936_v60 = vld [vmem:[%s11501_s19 + $0x1e7] sm:$0xff]  ;;  %v7937_v61 = vld [vmem:[%s11501_s19 + $0x1ef] sm:$0xff] }
  0x24   : > { %9666 = vmatmul.mubr.msk.f32.gmra.mrb[6].mxu0 %vm403_vm0, %v7921_v44  ;;  %v7938_v62 = vld [vmem:[%s11501_s19 + $0x207] sm:$0xff]  ;;  %v7939_v63 = vld [vmem:[%s11501_s19 + $0x20f] sm:$0xff] }
  0x25   : > { %10170 = vmatmul.mubr.msk.f32.gmra.mrb[6].mxu1 %vm403_vm0, %v3964_v45  ;;  %9668 = vmatprep.mubr.msk.f32.mxu0 %vm403_vm0, %v7922_v46  ;;  %v7940_v0 = vld [vmem:[%s11501_s19 + $0x227] sm:$0xff]  ;;  %v7941_v1 = vld [vmem:[%s11501_s19 + $0x22f] sm:$0xff] }
  0x26   : > { %10172 = vmatprep.mubr.msk.f32.mxu1 %vm403_vm0, %v7914_v19  ;;  %v7942_v2 = vld [vmem:[%s11501_s19 + $0x247] sm:$0xff]  ;;  %v7943_v3 = vld [vmem:[%s11501_s19 + $0x24f] sm:$0xff] }
  0x27   : > { %v7944_v4 = vld [vmem:[%s11501_s19 + $0x267] sm:$0xff]  ;;  %v7945_v5 = vld [vmem:[%s11501_s19 + $0x26f] sm:$0xff] }
  0x28   : > { %9669 = vmatmul.mubr.msk.f32.gmra.mrb[8].mxu0 %vm403_vm0, %v7923_v47  ;;  %v7882_v6 = vld [vmem:[%s11501_s19 + $0x84] sm:$0xff]  ;;  %v7883_v10 = vld [vmem:[%s11501_s19 + $0x8c] sm:$0xff] }
  0x29   : > { %10173 = vmatmul.mubr.msk.f32.gmra.mrb[8].mxu1 %vm403_vm0, %v7915_v22  ;;  %9671 = vmatprep.mubr.msk.f32.mxu0 %vm403_vm0, %v7924_v48  ;;  %v3921_v7 = vld [vmem:[%s11501_s19] sm:$0xff]  ;;  %v8048_v11 = vld [vmem:[%s13523_s1 + $0x50] sm:$0xff]  ;;  %v3922_v13 = vld [vmem:[%s11501_s19 + $0x8] sm:$0xff] }
  0x2a   : > { %10175 = vmatprep.mubr.msk.f32.mxu1 %vm403_vm0, %v7916_v26  ;;  %v7884_v14 = vld [vmem:[%s11501_s19 + $0xa4] sm:$0xff]  ;;  %v10722_v17 = vpack.c.bf16 %v8049_v12, %v8048_v11  ;;  %v7885_v20 = vld [vmem:[%s11501_s19 + $0xac] sm:$0xff] }
  0x2b   : > { %v3923_v15 = vld [vmem:[%s11501_s19 + $0x20] sm:$0xff]  ;;  %v8628_v19 = vld [vmem:[%s13525_s3 + $0x68] sm:$0xff] }
  0x2c   : > { %9672 = vmatmul.mubr.msk.f32.gmra.mrb[10].mxu0 %vm403_vm0, %v7925_v49  ;;  %v8627_v18 = vld [vmem:[%s13525_s3 + $0x60] sm:$0xff]  ;;  %v8115_v22 = vld [vmem:[%s13523_s1 + $0x68] sm:$0xff] }
  0x2d   : > { %10176 = vmatmul.mubr.msk.f32.gmra.mrb[10].mxu1 %vm403_vm0, %v7917_v32  ;;  %9674 = vmatprep.mubr.msk.f32.mxu0 %vm403_vm0, %v7926_v50  ;;  %v8114_v21 = vld [vmem:[%s13523_s1 + $0x60] sm:$0xff]  ;;  %v3924_v23 = vld [vmem:[%s11501_s19 + $0x28] sm:$0xff]  ;;  %v11679_v26 = vpack.c.bf16 %v8628_v19, %v8627_v18 }
  0x2e   : > { %10178 = vmatprep.mubr.msk.f32.mxu1 %vm403_vm0, %v7918_v36  ;;  %v7886_v24 = vld [vmem:[%s11501_s19 + $0xc4] sm:$0xff]  ;;  %v11682_v27 = vpack.c.bf16 %v8115_v22, %v8114_v21  ;;  %v7887_v28 = vld [vmem:[%s11501_s19 + $0xcc] sm:$0xff]  ;;  %v8630_v21 = vld [vmem:[%s13525_s3 + $0x78] sm:$0xff] }
  0x2f   : > { %v3925_v25 = vld [vmem:[%s11501_s19 + $0x40] sm:$0xff]  ;;  %v3926_v29 = vld [vmem:[%s11501_s19 + $0x48] sm:$0xff]  ;;  %v8015_v22 = vld [vmem:[%s11501_s19 + $0x92] sm:$0xff] }
  0x30   : > { %9675 = vmatmul.mubr.msk.f32.gmra.mrb[12].mxu0 %vm403_vm0, %v7927_v51  ;;  %v11690_v30 = vld [vmem:[%s11501_s19 + $0xe4] sm:$0xff]  ;;  %v11700_v32 = vld [vmem:[%s11501_s19 + $0xec] sm:$0xff] }
  0x31   : > { %10179 = vmatmul.mubr.msk.f32.gmra.mrb[12].mxu1 %vm403_vm0, %v7919_v40  ;;  %9677 = vmatprep.mubr.msk.f32.mxu0 %vm403_vm0, %v7928_v52  ;;  %v3927_v31 = vld [vmem:[%s11501_s19 + $0x60] sm:$0xff]  ;;  %v3928_v33 = vld [vmem:[%s11501_s19 + $0x68] sm:$0xff] }
  0x32   : > { %10181 = vmatprep.mubr.msk.f32.mxu1 %vm403_vm0, %v7920_v42  ;;  %v11705_v34 = vld [vmem:[%s11501_s19 + $0x104] sm:$0xff]  ;;  %v11714_v36 = vld [vmem:[%s11501_s19 + $0x10c] sm:$0xff] }
  0x33   : > { %v3929_v35 = vld [vmem:[%s11501_s19 + $0x80] sm:$0xff]  ;;  %v3930_v37 = vld [vmem:[%s11501_s19 + $0x88] sm:$0xff] }
  0x34   : > { %9678 = vmatmul.mubr.msk.f32.gmra.mrb[14].mxu0 %vm403_vm0, %v7929_v53  ;;  %v11728_v40 = vld [vmem:[%s11501_s19 + $0x12c] sm:$0xff]  ;;  %v11733_v42 = vld [vmem:[%s11501_s19 + $0x144] sm:$0xff] }
  0x35   : > { %10182 = vmatmul.mubr.msk.f32.gmra.mrb[14].mxu1 %vm403_vm0, %v7921_v44  ;;  %9680 = vmatprep.mubr.msk.f32.mxu0 %vm403_vm0, %v7930_v54  ;;  %v3932_v41 = vld [vmem:[%s11501_s19 + $0xa8] sm:$0xff]  ;;  %v3933_v43 = vld [vmem:[%s11501_s19 + $0xc0] sm:$0xff] }
  0x36   : > { %10184 = vmatprep.mubr.msk.f32.mxu1 %vm403_vm0, %v7922_v46  ;;  %v11742_v44 = vld [vmem:[%s11501_s19 + $0x14c] sm:$0xff]  ;;  %v11747_v46 = vld [vmem:[%s11501_s19 + $0x164] sm:$0xff] }
  0x37   : > { %v3934_v45 = vld [vmem:[%s11501_s19 + $0xc8] sm:$0xff]  ;;  %v11889_v11 = vld [vmem:[%s11501_s19 + $0x1c0] sm:$0xff] }
  0x38   : > { %9681 = vmatmul.mubr.msk.f32.gmra.mrb[16].mxu0 %vm403_vm0, %v7931_v55  ;;  %v11878_v8 = vld [vmem:[%s11501_s19 + $0x22c] sm:$0xff] }
  0x39   : > { %10185 = vmatmul.mubr.msk.f32.gmra.mrb[16].mxu1 %vm403_vm0, %v7923_v47  ;;  %9683 = vmatprep.mubr.msk.f32.mxu0 %vm403_vm0, %v7932_v56  ;;  %v11750_v47 = vld [vmem:[%s11501_s19 + $0xe0] sm:$0xff]  ;;  %v11883_v9 = vld [vmem:[%s11501_s19 + $0x1a8] sm:$0xff] }
  0x3a   : > { %10187 = vmatprep.mubr.msk.f32.mxu1 %vm403_vm0, %v7924_v48  ;;  %v11758_v48 = vld [vmem:[%s11501_s19 + $0x16c] sm:$0xff] }
  0x3b   : > { %v11898_v12 = vld [vmem:[%s11501_s19 + $0x24c] sm:$0xff] }
  0x3c   : > { %9684 = vmatmul.mubr.msk.f32.gmra.mrb[18].mxu0 %vm403_vm0, %v7933_v57  ;;  %v8014_v18 = vld [vmem:[%s11501_s19 + $0x8a] sm:$0xff] }
  0x3d   : > { %10188 = vmatmul.mubr.msk.f32.gmra.mrb[18].mxu1 %vm403_vm0, %v7925_v49  ;;  %9686 = vmatprep.mubr.msk.f32.mxu0 %vm403_vm0, %v7934_v58  ;;  %v11763_v49 = vld [vmem:[%s11501_s19 + $0xe8] sm:$0xff] }
  0x3e   : > { %10190 = vmatprep.mubr.msk.f32.mxu1 %vm403_vm0, %v7926_v50  ;;  %v11766_v50 = vld [vmem:[%s11501_s19 + $0x184] sm:$0xff]  ;;  %v4636_v19 = vld [vmem:[%s11501_s19 + $0xe] sm:$0xff] }
  0x40   : > { %9687 = vmatmul.mubr.msk.f32.gmra.mrb[20].mxu0 %vm403_vm0, %v7935_v59 }
  0x41   : > { %10191 = vmatmul.mubr.msk.f32.gmra.mrb[20].mxu1 %vm403_vm0, %v7927_v51  ;;  %9689 = vmatprep.mubr.msk.f32.mxu0 %vm403_vm0, %v7936_v60  ;;  %v11769_v51 = vld [vmem:[%s11501_s19 + $0x100] sm:$0xff] }
  0x42   : > { %10193 = vmatprep.mubr.msk.f32.mxu1 %vm403_vm0, %v7928_v52  ;;  %v11778_v52 = vld [vmem:[%s11501_s19 + $0x18c] sm:$0xff] }
  0x44   : > { %9690 = vmatmul.mubr.msk.f32.gmra.mrb[22].mxu0 %vm403_vm0, %v7937_v61 }
  0x45   : > { %10194 = vmatmul.mubr.msk.f32.gmra.mrb[22].mxu1 %vm403_vm0, %v7929_v53  ;;  %9692 = vmatprep.mubr.msk.f32.mxu0 %vm403_vm0, %v7938_v62  ;;  %v11783_v53 = vld [vmem:[%s11501_s19 + $0x108] sm:$0xff] }
  0x46   : > { %10196 = vmatprep.mubr.msk.f32.mxu1 %vm403_vm0, %v7930_v54  ;;  %v11786_v54 = vld [vmem:[%s11501_s19 + $0x1a4] sm:$0xff] }
  0x47   : > { %v11826_v62 = vld [vmem:[%s11501_s19 + $0x1e4] sm:$0xff] }
  0x48   : > { %9693 = vmatmul.mubr.msk.f32.gmra.mrb[24].mxu0 %vm403_vm0, %v7939_v63  ;;  %v11829_v63 = vld [vmem:[%s11501_s19 + $0x160] sm:$0xff] }
  0x49   : > { %10197 = vmatmul.mubr.msk.f32.gmra.mrb[24].mxu1 %vm403_vm0, %v7931_v55  ;;  %9695 = vmatprep.mubr.msk.f32.mxu0 %vm403_vm0, %v7940_v0  ;;  %v11789_v55 = vld [vmem:[%s11501_s19 + $0x120] sm:$0xff]  ;;  %v11838_v0 = vld [vmem:[%s11501_s19 + $0x1ec] sm:$0xff] }
  0x4a   : > { %10199 = vmatprep.mubr.msk.f32.mxu1 %vm403_vm0, %v7932_v56  ;;  %v11798_v56 = vld [vmem:[%s11501_s19 + $0x1ac] sm:$0xff] }
  0x4c   : > { %9696 = vmatmul.mubr.msk.f32.gmra.mrb[26].mxu0 %vm403_vm0, %v7941_v1  ;;  %v11843_v1 = vld [vmem:[%s11501_s19 + $0x168] sm:$0xff] }
  0x4d   : > { %10200 = vmatmul.mubr.msk.f32.gmra.mrb[26].mxu1 %vm403_vm0, %v7933_v57  ;;  %9698 = vmatprep.mubr.msk.f32.mxu0 %vm403_vm0, %v7942_v2  ;;  %v11803_v57 = vld [vmem:[%s11501_s19 + $0x128] sm:$0xff] }
  0x4e   : > { %10202 = vmatprep.mubr.msk.f32.mxu1 %vm403_vm0, %v7934_v58  ;;  %v11806_v58 = vld [vmem:[%s11501_s19 + $0x1c4] sm:$0xff] }
  0x4f   : > { %v11846_v2 = vld [vmem:[%s11501_s19 + $0x204] sm:$0xff] }
  0x50   : > { %9699 = vmatmul.mubr.msk.f32.gmra.mrb[28].mxu0 %vm403_vm0, %v7943_v3  ;;  %v11849_v3 = vld [vmem:[%s11501_s19 + $0x180] sm:$0xff] }
  0x51   : > { %10203 = vmatmul.mubr.msk.f32.gmra.mrb[28].mxu1 %vm403_vm0, %v7935_v59  ;;  %9701 = vmatprep.mubr.msk.f32.mxu0 %vm403_vm0, %v7944_v4  ;;  %v11809_v59 = vld [vmem:[%s11501_s19 + $0x140] sm:$0xff]  ;;  %v11858_v4 = vld [vmem:[%s11501_s19 + $0x20c] sm:$0xff] }
  0x52   : > { %10205 = vmatprep.mubr.msk.f32.mxu1 %vm403_vm0, %v7936_v60  ;;  %v11818_v60 = vld [vmem:[%s11501_s19 + $0x1cc] sm:$0xff] }
  0x54   : > { %9702 = vmatmul.mubr.msk.f32.gmra.mrb[30].mxu0 %vm403_vm0, %v7945_v5  ;;  %v11863_v5 = vld [vmem:[%s11501_s19 + $0x188] sm:$0xff] }
  0x55   : > { %10206 = vmatmul.mubr.msk.f32.gmra.mrb[30].mxu1 %vm403_vm0, %v7937_v61  ;;  %9712 = vmatprep.mubr.msk.f32.mxu0 %vm403_vm0, %v7882_v6  ;;  %v11823_v61 = vld [vmem:[%s11501_s19 + $0x148] sm:$0xff] }
  0x56   : > { %10216 = vmatprep.mubr.msk.f32.mxu1 %vm403_vm0, %v3921_v7  ;;  %v11866_v6 = vld [vmem:[%s11501_s19 + $0x224] sm:$0xff] }
  0x57   : > { %v11869_v7 = vld [vmem:[%s11501_s19 + $0x1a0] sm:$0xff] }
  0x58   : > { %9713 = vmatmul.mubr.msk.f32.vlgmr.msra.gmra.mrb[0].mxu0 %vm403_vm0, %v7883_v10  ;;  %v11886_v10 = vld [vmem:[%s11501_s19 + $0x244] sm:$0xff] }
  0x59   : > { %10217 = vmatmul.mubr.msk.f32.vlgmr.msra.gmra.mrb[0].mxu1 %vm403_vm0, %v3922_v13  ;;  %9715 = vmatprep.mubr.msk.f32.mxu0 %vm403_vm0, %v7884_v14  ;;  %v11903_v13 = vld [vmem:[%s11501_s19 + $0x1c8] sm:$0xff] }
  0x5a   : > { %10793 = vmatpush3.bf16.msra.mxu1 %v11543_v38  ;;  %10219 = vmatprep.mubr.msk.f32.mxu1 %vm403_vm0, %v3923_v15  ;;  %v11719_v38 = vld [vmem:[%s11501_s19 + $0x124] sm:$0xff] }
  0x5b   : > { %10721 = vmatpush3.bf16.msra.mxu0 %v11546_v39  ;;  %10795 = vmatprep.subr.bf16.mxu1 %v10794_v16  ;;  %v3931_v39 = vld [vmem:[%s11501_s19 + $0xa0] sm:$0xff] }
  0x5c   : > { %9716 = vmatmul.mubr.msk.f32.gmra.mrb[2].mxu0 %vm403_vm0, %v7885_v20  ;;  %10723 = vmatprep.subr.bf16.mxu0 %v10722_v17  ;;  %v11906_v14 = vld [vmem:[%s11501_s19 + $0x264] sm:$0xff]  ;;  %v8629_v20 = vld [vmem:[%s13525_s3 + $0x70] sm:$0xff] }
  0x5d   : > { %10220 = vmatmul.mubr.msk.f32.gmra.mrb[2].mxu1 %vm403_vm0, %v3924_v23  ;;  %9718 = vmatprep.mubr.msk.f32.mxu0 %vm403_vm0, %v7886_v24  ;;  %v11909_v15 = vld [vmem:[%s11501_s19 + $0x1e0] sm:$0xff]  ;;  %v8116_v23 = vld [vmem:[%s13523_s1 + $0x70] sm:$0xff]  ;;  %v8117_v24 = vld [vmem:[%s13523_s1 + $0x78] sm:$0xff] }
  0x5e   : > { %10222 = vmatprep.mubr.msk.f32.mxu1 %vm403_vm0, %v3925_v25  ;;  %10797 = vmatpush3.bf16.msra.mxu1 %v10794_v16  ;;  %v11918_v16 = vld [vmem:[%s11501_s19 + $0x26c] sm:$0xff]  ;;  %v4637_v25 = vld [vmem:[%s11501_s19 + $0x16] sm:$0xff] }
  0x5f   : > { %10725 = vmatpush3.bf16.msra.mxu0 %v10722_v17  ;;  %10799 = vmatprep.subr.bf16.mxu1 %v11679_v26  ;;  %v11923_v17 = vld [vmem:[%s11501_s19 + $0x1e8] sm:$0xff] }
  0x60   : > { %9719 = vmatmul.mubr.msk.f32.gmra.mrb[4].mxu0 %vm403_vm0, %v7887_v28  ;;  %10727 = vmatprep.subr.bf16.mxu0 %v11682_v27  ;;  %v8016_v28 = vld [vmem:[%s11501_s19 + $0xaa] sm:$0xff] }
  0x61   : > { %10223 = vmatmul.mubr.msk.f32.gmra.mrb[4].mxu1 %vm403_vm0, %v3926_v29  ;;  %9721 = vmatprep.mubr.msk.f32.mxu0 %vm403_vm0, %v11690_v30  ;;  %v4638_v29 = vld [vmem:[%s11501_s19 + $0x2e] sm:$0xff] }
  0x62   : > { %10225 = vmatprep.mubr.msk.f32.mxu1 %vm403_vm0, %v3927_v31  ;;  %v10802_v31 = vpack.c.bf16 %v8630_v21, %v8629_v20 }
  0x64   : > { %9722 = vmatmul.mubr.msk.f32.gmra.mrb[6].mxu0 %vm403_vm0, %v11700_v32 }
  0x65   : > { %10226 = vmatmul.mubr.msk.f32.gmra.mrb[6].mxu1 %vm403_vm0, %v3928_v33  ;;  %9724 = vmatprep.mubr.msk.f32.mxu0 %vm403_vm0, %v11705_v34  ;;  %v10730_v33 = vpack.c.bf16 %v8117_v24, %v8116_v23  ;;  %v4642_v23 = vld [vmem:[%s11501_s19 + $0x6e] sm:$0xff] }
  0x66   : > { %10228 = vmatprep.mubr.msk.f32.mxu1 %vm403_vm0, %v3929_v35  ;;  %v8663_v35 = vld [vmem:[%s13525_s3 + $0x80] sm:$0xff]  ;;  %v11992_v24 = vld [vmem:[%s11501_s19 + $0xf2] sm:$0xff] }
  0x68   : > { %9725 = vmatmul.mubr.msk.f32.gmra.mrb[8].mxu0 %vm403_vm0, %v11714_v36 }
  0x69   : > { %10229 = vmatmul.mubr.msk.f32.gmra.mrb[8].mxu1 %vm403_vm0, %v3930_v37  ;;  %9727 = vmatprep.mubr.msk.f32.mxu0 %vm403_vm0, %v11719_v38  ;;  %v8664_v37 = vld [vmem:[%s13525_s3 + $0x88] sm:$0xff] }
  0x6a   : > { %10231 = vmatprep.mubr.msk.f32.mxu1 %vm403_vm0, %v3931_v39  ;;  %v8017_v39 = vld [vmem:[%s11501_s19 + $0xb2] sm:$0xff]  ;;  %v11971_v20 = vpack.c.bf16 %v8664_v37, %v8663_v35  ;;  %v12011_v35 = vld [vmem:[%s11501_s19 + $0x12a] sm:$0xff] }
  0x6b   : > { %v4646_v37 = vld [vmem:[%s11501_s19 + $0xae] sm:$0xff] }
  0x6c   : > { %9728 = vmatmul.mubr.msk.f32.gmra.mrb[10].mxu0 %vm403_vm0, %v11728_v40 }
  0x6d   : > { %10232 = vmatmul.mubr.msk.f32.gmra.mrb[10].mxu1 %vm403_vm0, %v3932_v41  ;;  %9730 = vmatprep.mubr.msk.f32.mxu0 %vm403_vm0, %v11733_v42  ;;  %v8182_v41 = vld [vmem:[%s13523_s1 + $0x80] sm:$0xff] }
  0x6e   : > { %10234 = vmatprep.mubr.msk.f32.mxu1 %vm403_vm0, %v3933_v43  ;;  %v8183_v43 = vld [vmem:[%s13523_s1 + $0x88] sm:$0xff] }
  0x6f   : > { %v11974_v21 = vpack.c.bf16 %v8183_v43, %v8182_v41  ;;  %v4647_v41 = vld [vmem:[%s11501_s19 + $0xb6] sm:$0xff]  ;;  %v12025_v43 = vld [vmem:[%s11501_s19 + $0x14a] sm:$0xff] }
  0x70   : > { %9731 = vmatmul.mubr.msk.f32.gmra.mrb[12].mxu0 %vm403_vm0, %v11742_v44  ;;  %13585 = vst [vmem:[#allocation3_spill] sm:$0xff] %v12025_v43 }
  0x71   : > { %10235 = vmatmul.mubr.msk.f32.gmra.mrb[12].mxu1 %vm403_vm0, %v3934_v45  ;;  %9733 = vmatprep.mubr.msk.f32.mxu0 %vm403_vm0, %v11747_v46  ;;  %v4639_v45 = vld [vmem:[%s11501_s19 + $0x36] sm:$0xff] }
  0x72   : > { %10237 = vmatprep.mubr.msk.f32.mxu1 %vm403_vm0, %v11750_v47 }
  0x74   : > { %9734 = vmatmul.mubr.msk.f32.gmra.mrb[14].mxu0 %vm403_vm0, %v11758_v48 }
  0x75   : > { %10238 = vmatmul.mubr.msk.f32.gmra.mrb[14].mxu1 %vm403_vm0, %v11763_v49  ;;  %9736 = vmatprep.mubr.msk.f32.mxu0 %vm403_vm0, %v11766_v50 }
  0x76   : > { %10240 = vmatprep.mubr.msk.f32.mxu1 %vm403_vm0, %v11769_v51 }
  0x78   : > { %9737 = vmatmul.mubr.msk.f32.gmra.mrb[16].mxu0 %vm403_vm0, %v11778_v52 }
  0x79   : > { %10241 = vmatmul.mubr.msk.f32.gmra.mrb[16].mxu1 %vm403_vm0, %v11783_v53  ;;  %9739 = vmatprep.mubr.msk.f32.mxu0 %vm403_vm0, %v11786_v54 }
  0x7a   : > { %10243 = vmatprep.mubr.msk.f32.mxu1 %vm403_vm0, %v11789_v55 }
  0x7c   : > { %9740 = vmatmul.mubr.msk.f32.gmra.mrb[18].mxu0 %vm403_vm0, %v11798_v56 }
  0x7d   : > { %10244 = vmatmul.mubr.msk.f32.gmra.mrb[18].mxu1 %vm403_vm0, %v11803_v57  ;;  %9742 = vmatprep.mubr.msk.f32.mxu0 %vm403_vm0, %v11806_v58 }
  0x7e   : > { %10246 = vmatprep.mubr.msk.f32.mxu1 %vm403_vm0, %v11809_v59 }
  0x80   : > { %9743 = vmatmul.mubr.msk.f32.gmra.mrb[20].mxu0 %vm403_vm0, %v11818_v60 }
  0x81   : > { %10247 = vmatmul.mubr.msk.f32.gmra.mrb[20].mxu1 %vm403_vm0, %v11823_v61  ;;  %9745 = vmatprep.mubr.msk.f32.mxu0 %vm403_vm0, %v11826_v62 }
  0x82   : > { %10249 = vmatprep.mubr.msk.f32.mxu1 %vm403_vm0, %v11829_v63 }
  0x84   : > { %9746 = vmatmul.mubr.msk.f32.gmra.mrb[22].mxu0 %vm403_vm0, %v11838_v0 }
  0x85   : > { %10250 = vmatmul.mubr.msk.f32.gmra.mrb[22].mxu1 %vm403_vm0, %v11843_v1  ;;  %9748 = vmatprep.mubr.msk.f32.mxu0 %vm403_vm0, %v11846_v2 }
  0x86   : > { %10252 = vmatprep.mubr.msk.f32.mxu1 %vm403_vm0, %v11849_v3 }
  0x88   : > { %9749 = vmatmul.mubr.msk.f32.gmra.mrb[24].mxu0 %vm403_vm0, %v11858_v4 }
  0x89   : > { %10253 = vmatmul.mubr.msk.f32.gmra.mrb[24].mxu1 %vm403_vm0, %v11863_v5  ;;  %9751 = vmatprep.mubr.msk.f32.mxu0 %vm403_vm0, %v11866_v6 }
  0x8a   : > { %10255 = vmatprep.mubr.msk.f32.mxu1 %vm403_vm0, %v11869_v7 }
  0x8c   : > { %9752 = vmatmul.mubr.msk.f32.gmra.mrb[26].mxu0 %vm403_vm0, %v11878_v8 }
  0x8d   : > { %10256 = vmatmul.mubr.msk.f32.gmra.mrb[26].mxu1 %vm403_vm0, %v11883_v9  ;;  %9754 = vmatprep.mubr.msk.f32.mxu0 %vm403_vm0, %v11886_v10 }
  0x8e   : > { %10258 = vmatprep.mubr.msk.f32.mxu1 %vm403_vm0, %v11889_v11 }
  0x90   : > { %9755 = vmatmul.mubr.msk.f32.gmra.mrb[28].mxu0 %vm403_vm0, %v11898_v12 }
  0x91   : > { %10259 = vmatmul.mubr.msk.f32.gmra.mrb[28].mxu1 %vm403_vm0, %v11903_v13  ;;  %9757 = vmatprep.mubr.msk.f32.mxu0 %vm403_vm0, %v11906_v14 }
  0x92   : > { %10261 = vmatprep.mubr.msk.f32.mxu1 %vm403_vm0, %v11909_v15 }
  0x94   : > { %9758 = vmatmul.mubr.msk.f32.gmra.mrb[30].mxu0 %vm403_vm0, %v11918_v16 }
  0x95   : > { %10262 = vmatmul.mubr.msk.f32.gmra.mrb[30].mxu1 %vm403_vm0, %v11923_v17  ;;  %9768 = vmatprep.mubr.msk.f32.mxu0 %vm403_vm0, %v8014_v18  ;;  %v8018_v18 = vld [vmem:[%s11501_s19 + $0xca] sm:$0xff] }
  0x96   : > { %10272 = vmatprep.mubr.msk.f32.mxu1 %vm403_vm0, %v4636_v19  ;;  %v4640_v19 = vld [vmem:[%s11501_s19 + $0x4e] sm:$0xff] }
  0x98   : > { %9769 = vmatmul.mubr.msk.f32.vlgmr.msra.gmra.mrb[0].mxu0 %vm403_vm0, %v8015_v22  ;;  %v11982_v22 = vld [vmem:[%s11501_s19 + $0xea] sm:$0xff] }
  0x99   : > { %10273 = vmatmul.mubr.msk.f32.vlgmr.msra.gmra.mrb[0].mxu1 %vm403_vm0, %v4637_v25  ;;  %9771 = vmatprep.mubr.msk.f32.mxu0 %vm403_vm0, %v8016_v28  ;;  %v4643_v25 = vld [vmem:[%s11501_s19 + $0x76] sm:$0xff]  ;;  %v11997_v28 = vld [vmem:[%s11501_s19 + $0x10a] sm:$0xff] }
  0x9a   : > { %10801 = vmatpush3.bf16.msra.mxu1 %v11679_v26  ;;  %10275 = vmatprep.mubr.msk.f32.mxu1 %vm403_vm0, %v4638_v29  ;;  %v8019_v26 = vld [vmem:[%s11501_s19 + $0xd2] sm:$0xff] }
  0x9b   : > { %10729 = vmatpush3.bf16.msra.mxu0 %v11682_v27  ;;  %10803 = vmatprep.subr.bf16.mxu1 %v10802_v31  ;;  %v4641_v27 = vld [vmem:[%s11501_s19 + $0x56] sm:$0xff]  ;;  %v4644_v29 = vld [vmem:[%s11501_s19 + $0x8e] sm:$0xff] }
  0x9c   : > { %9772 = vmatmul.mubr.msk.f32.gmra.mrb[2].mxu0 %vm403_vm0, %v8017_v39  ;;  %10731 = vmatprep.subr.bf16.mxu0 %v10730_v33  ;;  %v12020_v39 = vld [vmem:[%s11501_s19 + $0x132] sm:$0xff] }
  0x9d   : > { %10276 = vmatmul.mubr.msk.f32.gmra.mrb[2].mxu1 %vm403_vm0, %v4639_v45  ;;  %9774 = vmatprep.mubr.msk.f32.mxu0 %vm403_vm0, %v8018_v18  ;;  %13584 = vst [vmem:[#allocation2_spill] sm:$0xff] %v12020_v39  ;;  %v4648_v45 = vld [vmem:[%s11501_s19 + $0xce] sm:$0xff] }
  0x9e   : > { %10278 = vmatprep.mubr.msk.f32.mxu1 %vm403_vm0, %v4640_v19  ;;  %10805 = vmatpush3.bf16.msra.mxu1 %v10802_v31  ;;  %v12006_v31 = vld [vmem:[%s11501_s19 + $0x112] sm:$0xff] }
  0x9f   : > { %10733 = vmatpush3.bf16.msra.mxu0 %v10730_v33  ;;  %10807 = vmatprep.subr.bf16.mxu1 %v11971_v20  ;;  %v4645_v33 = vld [vmem:[%s11501_s19 + $0x96] sm:$0xff] }
  0xa0   : > { %9775 = vmatmul.mubr.msk.f32.gmra.mrb[4].mxu0 %vm403_vm0, %v8019_v26  ;;  %10735 = vmatprep.subr.bf16.mxu0 %v11974_v21  ;;  %v12034_v18 = vld [vmem:[%s11501_s19 + $0x152] sm:$0xff]  ;;  %v12039_v26 = vld [vmem:[%s11501_s19 + $0x16a] sm:$0xff] }
  0xa1   : > { %10279 = vmatmul.mubr.msk.f32.gmra.mrb[4].mxu1 %vm403_vm0, %v4641_v27  ;;  %9777 = vmatprep.mubr.msk.f32.mxu0 %vm403_vm0, %v11982_v22  ;;  %13586 = vst [vmem:[#allocation4_spill] sm:$0xff] %v12034_v18  ;;  %v4649_v19 = vld [vmem:[%s11501_s19 + $0xd6] sm:$0xff]  ;;  %13587 = vst [vmem:[#allocation5_spill] sm:$0xff] %v12039_v26  ;;  %v12042_v27 = vld [vmem:[%s11501_s19 + $0xee] sm:$0xff] }
  0xa2   : > { %10281 = vmatprep.mubr.msk.f32.mxu1 %vm403_vm0, %v4642_v23  ;;  %v12050_v23 = vld [vmem:[%s11501_s19 + $0x172] sm:$0xff] }
  0xa3   : > { %13588 = vst [vmem:[#allocation6_spill] sm:$0xff] %v12050_v23 }
  0xa4   : > { %9778 = vmatmul.mubr.msk.f32.gmra.mrb[6].mxu0 %vm403_vm0, %v11992_v24 }
  0xa5   : > { %10282 = vmatmul.mubr.msk.f32.gmra.mrb[6].mxu1 %vm403_vm0, %v4643_v25  ;;  %9780 = vmatprep.mubr.msk.f32.mxu0 %vm403_vm0, %v11997_v28  ;;  %v12055_v25 = vld [vmem:[%s11501_s19 + $0xf6] sm:$0xff] }
  0xa6   : > { %10284 = vmatprep.mubr.msk.f32.mxu1 %vm403_vm0, %v4644_v29  ;;  %v12058_v29 = vld [vmem:[%s11501_s19 + $0x18a] sm:$0xff] }
  0xa7   : > { %13589 = vst [vmem:[#allocation7_spill] sm:$0xff] %v12058_v29 }
  0xa8   : > { %9781 = vmatmul.mubr.msk.f32.gmra.mrb[8].mxu0 %vm403_vm0, %v12006_v31 }
  0xa9   : > { %10285 = vmatmul.mubr.msk.f32.gmra.mrb[8].mxu1 %vm403_vm0, %v4645_v33  ;;  %9783 = vmatprep.mubr.msk.f32.mxu0 %vm403_vm0, %v12011_v35  ;;  %v12061_v33 = vld [vmem:[%s11501_s19 + $0x10e] sm:$0xff] }
  0xaa   : > { %10287 = vmatprep.mubr.msk.f32.mxu1 %vm403_vm0, %v4646_v37  ;;  %v12070_v37 = vld [vmem:[%s11501_s19 + $0x192] sm:$0xff] }
  0xab   : > { %13590 = vst [vmem:[#allocation8_spill] sm:$0xff] %v12070_v37 }
  0xac   : > { %9784 = vmatmul.mubr.msk.f32.gmra.mrb[10].mxu0 %vm403_vm0, %v12020_v39  ;;  %v12121_v39 = vld [vmem:[%s11501_s19 + $0x16e] sm:$0xff] }
  0xad   : > { %10288 = vmatmul.mubr.msk.f32.gmra.mrb[10].mxu1 %vm403_vm0, %v4647_v41  ;;  %9786 = vmatprep.mubr.msk.f32.mxu0 %vm403_vm0, %v12025_v43  ;;  %v12075_v41 = vld [vmem:[%s11501_s19 + $0x116] sm:$0xff]  ;;  %v12118_v43 = vld [vmem:[%s11501_s19 + $0x1ea] sm:$0xff]  ;;  %13599 = vst [vmem:[#allocation17_spill] sm:$0xff] %v12121_v39 }
  0xae   : > { %10290 = vmatprep.mubr.msk.f32.mxu1 %vm403_vm0, %v4648_v45  ;;  %v12078_v45 = vld [vmem:[%s11501_s19 + $0x1aa] sm:$0xff]  ;;  %13598 = vst [vmem:[#allocation16_spill] sm:$0xff] %v12118_v43 }
  0xaf   : > { %13591 = vst [vmem:[#allocation9_spill] sm:$0xff] %v12078_v45 }
  0xb0   : > { %9787 = vmatmul.mubr.msk.f32.gmra.mrb[12].mxu0 %vm403_vm0, %v12034_v18  ;;  %v12101_v18 = vld [vmem:[%s11501_s19 + $0x14e] sm:$0xff] }
  0xb1   : > { %10291 = vmatmul.mubr.msk.f32.gmra.mrb[12].mxu1 %vm403_vm0, %v4649_v19  ;;  %9789 = vmatprep.mubr.msk.f32.mxu0 %vm403_vm0, %v12039_v26  ;;  %v12081_v19 = vld [vmem:[%s11501_s19 + $0x12e] sm:$0xff]  ;;  %13595 = vst [vmem:[#allocation13_spill] sm:$0xff] %v12101_v18 }
  0xb2   : > { %10293 = vmatprep.mubr.msk.f32.mxu1 %vm403_vm0, %v12042_v27  ;;  %v12098_v26 = vld [vmem:[%s11501_s19 + $0x1ca] sm:$0xff] }
  0xb3   : > { %13594 = vst [vmem:[#allocation12_spill] sm:$0xff] %v12098_v26 }
  0xb4   : > { %9790 = vmatmul.mubr.msk.f32.gmra.mrb[14].mxu0 %vm403_vm0, %v12050_v23  ;;  %v12095_v23 = vld [vmem:[%s11501_s19 + $0x136] sm:$0xff] }
  0xb5   : > { %10294 = vmatmul.mubr.msk.f32.gmra.mrb[14].mxu1 %vm403_vm0, %v12055_v25  ;;  %9792 = vmatprep.mubr.msk.f32.mxu0 %vm403_vm0, %v12058_v29  ;;  %v12090_v29 = vld [vmem:[%s11501_s19 + $0x1b2] sm:$0xff]  ;;  %13593 = vst [vmem:[#allocation11_spill] sm:$0xff] %v12095_v23 }
  0xb6   : > { %10296 = vmatprep.mubr.msk.f32.mxu1 %vm403_vm0, %v12061_v33  ;;  %13592 = vst [vmem:[#allocation10_spill] sm:$0xff] %v12090_v29 }
  0xb8   : > { %9793 = vmatmul.mubr.msk.f32.gmra.mrb[16].mxu0 %vm403_vm0, %v12070_v37  ;;  %v12115_v37 = vld [vmem:[%s11501_s19 + $0x156] sm:$0xff] }
  0xb9   : > { %10297 = vmatmul.mubr.msk.f32.gmra.mrb[16].mxu1 %vm403_vm0, %v12075_v41  ;;  %9795 = vmatprep.mubr.msk.f32.mxu0 %vm403_vm0, %v12078_v45  ;;  %v12110_v45 = vld [vmem:[%s11501_s19 + $0x1d2] sm:$0xff]  ;;  %13597 = vst [vmem:[#allocation15_spill] sm:$0xff] %v12115_v37 }
  0xba   : > { %10299 = vmatprep.mubr.msk.f32.mxu1 %vm403_vm0, %v12081_v19  ;;  %13596 = vst [vmem:[#allocation14_spill] sm:$0xff] %v12110_v45 }
  0xbc   : > { %9796 = vmatmul.mubr.msk.f32.gmra.mrb[18].mxu0 %vm403_vm0, %v12090_v29  ;;  %v12135_v29 = vld [vmem:[%s11501_s19 + $0x176] sm:$0xff] }
  0xbd   : > { %10300 = vmatmul.mubr.msk.f32.gmra.mrb[18].mxu1 %vm403_vm0, %v12095_v23  ;;  %9798 = vmatprep.mubr.msk.f32.mxu0 %vm403_vm0, %v12098_v26  ;;  %v12130_v26 = vld [vmem:[%s11501_s19 + $0x1f2] sm:$0xff]  ;;  %13601 = vst [vmem:[#allocation19_spill] sm:$0xff] %v12135_v29 }
  0xbe   : > { %10302 = vmatprep.mubr.msk.f32.mxu1 %vm403_vm0, %v12101_v18  ;;  %13600 = vst [vmem:[#allocation18_spill] sm:$0xff] %v12130_v26  ;;  %v12138_v18 = vld [vmem:[%s11501_s19 + $0x20a] sm:$0xff] }
  0xbf   : > { %13602 = vst [vmem:[#allocation20_spill] sm:$0xff] %v12138_v18  ;;  %v12141_v23 = vld [vmem:[%s11501_s19 + $0x18e] sm:$0xff] }
  0xc0   : > { %9799 = vmatmul.mubr.msk.f32.gmra.mrb[20].mxu0 %vm403_vm0, %v12110_v45  ;;  %13603 = vst [vmem:[#allocation21_spill] sm:$0xff] %v12141_v23  ;;  %v12155_v45 = vld [vmem:[%s11501_s19 + $0x196] sm:$0xff] }
  0xc1   : > { %10303 = vmatmul.mubr.msk.f32.gmra.mrb[20].mxu1 %vm403_vm0, %v12115_v37  ;;  %9801 = vmatprep.mubr.msk.f32.mxu0 %vm403_vm0, %v12118_v43  ;;  %v12150_v43 = vld [vmem:[%s11501_s19 + $0x212] sm:$0xff]  ;;  %13605 = vst [vmem:[#allocation23_spill] sm:$0xff] %v12155_v45 }
  0xc2   : > { %10305 = vmatprep.mubr.msk.f32.mxu1 %vm403_vm0, %v12121_v39  ;;  %13604 = vst [vmem:[#allocation22_spill] sm:$0xff] %v12150_v43  ;;  %v12158_v39 = vld [vmem:[%s11501_s19 + $0x22a] sm:$0xff] }
  0xc3   : > { %13606 = vst [vmem:[#allocation24_spill] sm:$0xff] %v12158_v39  ;;  %v12161_v37 = vld [vmem:[%s11501_s19 + $0x1ae] sm:$0xff] }
  0xc4   : > { %9802 = vmatmul.mubr.msk.f32.gmra.mrb[22].mxu0 %vm403_vm0, %v12130_v26  ;;  %13607 = vst [vmem:[#allocation25_spill] sm:$0xff] %v12161_v37  ;;  %v12175_v26 = vld [vmem:[%s11501_s19 + $0x1b6] sm:$0xff] }
  0xc5   : > { %10306 = vmatmul.mubr.msk.f32.gmra.mrb[22].mxu1 %vm403_vm0, %v12135_v29  ;;  %9804 = vmatprep.mubr.msk.f32.mxu0 %vm403_vm0, %v12138_v18  ;;  %v12170_v18 = vld [vmem:[%s11501_s19 + $0x232] sm:$0xff] }
  0xc6   : > { %10308 = vmatprep.mubr.msk.f32.mxu1 %vm403_vm0, %v12141_v23  ;;  %13608 = vst [vmem:[#allocation26_spill] sm:$0xff] %v12170_v18  ;;  %v12178_v23 = vld [vmem:[%s11501_s19 + $0x24a] sm:$0xff] }
  0xc7   : > { %13609 = vst [vmem:[#allocation27_spill] sm:$0xff] %v12178_v23  ;;  %v12181_v29 = vld [vmem:[%s11501_s19 + $0x1ce] sm:$0xff] }
  0xc8   : > { %9805 = vmatmul.mubr.msk.f32.gmra.mrb[24].mxu0 %vm403_vm0, %v12150_v43  ;;  %13610 = vst [vmem:[#allocation28_spill] sm:$0xff] %v12181_v29  ;;  %v12195_v43 = vld [vmem:[%s11501_s19 + $0x1d6] sm:$0xff] }
  0xc9   : > { %10309 = vmatmul.mubr.msk.f32.gmra.mrb[24].mxu1 %vm403_vm0, %v12155_v45  ;;  %9807 = vmatprep.mubr.msk.f32.mxu0 %vm403_vm0, %v12158_v39  ;;  %v12190_v39 = vld [vmem:[%s11501_s19 + $0x252] sm:$0xff]  ;;  %13612 = vst [vmem:[#allocation30_spill] sm:$0xff] %v12195_v43 }
  0xca   : > { %10311 = vmatprep.mubr.msk.f32.mxu1 %vm403_vm0, %v12161_v37  ;;  %13611 = vst [vmem:[#allocation29_spill] sm:$0xff] %v12190_v39  ;;  %v12198_v37 = vld [vmem:[%s11501_s19 + $0x26a] sm:$0xff] }
  0xcb   : > { %13613 = vst [vmem:[#allocation31_spill] sm:$0xff] %v12198_v37  ;;  %v12201_v45 = vld [vmem:[%s11501_s19 + $0x1ee] sm:$0xff] }
  0xcc   : > { %9808 = vmatmul.mubr.msk.f32.gmra.mrb[26].mxu0 %vm403_vm0, %v12170_v18  ;;  %13614 = vst [vmem:[#allocation32_spill] sm:$0xff] %v12201_v45  ;;  %v12215_v18 = vld [vmem:[%s11501_s19 + $0x1f6] sm:$0xff] }
  0xcd   : > { %10312 = vmatmul.mubr.msk.f32.gmra.mrb[26].mxu1 %vm403_vm0, %v12175_v26  ;;  %9810 = vmatprep.mubr.msk.f32.mxu0 %vm403_vm0, %v12178_v23  ;;  %v12210_v23 = vld [vmem:[%s11501_s19 + $0x272] sm:$0xff]  ;;  %13616 = vst [vmem:[#allocation34_spill] sm:$0xff] %v12215_v18 }
  0xce   : > { %10314 = vmatprep.mubr.msk.f32.mxu1 %vm403_vm0, %v12181_v29  ;;  %13615 = vst [vmem:[#allocation33_spill] sm:$0xff] %v12210_v23 }
  0xd0   : > { %9811 = vmatmul.mubr.msk.f32.gmra.mrb[28].mxu0 %vm403_vm0, %v12190_v39  ;;  %v8665_v39 = vld [vmem:[%s13525_s3 + $0x90] sm:$0xff] }
  0xd1   : > { %10315 = vmatmul.mubr.msk.f32.gmra.mrb[28].mxu1 %vm403_vm0, %v12195_v43  ;;  %9813 = vmatprep.mubr.msk.f32.mxu0 %vm403_vm0, %v12198_v37  ;;  %v8666_v43 = vld [vmem:[%s13525_s3 + $0x98] sm:$0xff]  ;;  %v8184_v37 = vld [vmem:[%s13523_s1 + $0x90] sm:$0xff] }
  0xd2   : > { %10317 = vmatprep.mubr.msk.f32.mxu1 %vm403_vm0, %v12201_v45  ;;  %v10810_v45 = vpack.c.bf16 %v8666_v43, %v8665_v39  ;;  %v12511_v39 = vld [vmem:[%s11501_s19 + $0x16f] sm:$0xff]  ;;  %v12516_v43 = vld [vmem:[%s11501_s19 + $0x187] sm:$0xff] }
  0xd4   : > { %9814 = vmatmul.mubr.msk.f32.gmra.mrb[30].mxu0 %vm403_vm0, %v12210_v23  ;;  %v8185_v23 = vld [vmem:[%s13523_s1 + $0x98] sm:$0xff] }
  0xd5   : > { %10318 = vmatmul.mubr.msk.f32.gmra.mrb[30].mxu1 %vm403_vm0, %v12215_v18  ;;  %9824 = vmatprep.mubr.msk.f32.mxu0 %vm403_vm0, %v11690_v30  ;;  %v10738_v29 = vpack.c.bf16 %v8185_v23, %v8184_v37  ;;  %v8731_v30 = vld [vmem:[%s13525_s3 + $0xa0] sm:$0xff]  ;;  %v8732_v18 = vld [vmem:[%s13525_s3 + $0xa8] sm:$0xff] }
  0xd6   : > { %10328 = vmatprep.mubr.msk.f32.mxu1 %vm403_vm0, %v11750_v47  ;;  %v8250_v47 = vld [vmem:[%s13523_s1 + $0xa0] sm:$0xff] }
  0xd7   : > { %v12530_v23 = vld [vmem:[%s11501_s19 + $0x1a7] sm:$0xff] }
  0xd8   : > { %9825 = vmatmul.mubr.msk.f32.vlgmr.msra.gmra.mrb[0].mxu0 %vm403_vm0, %v11700_v32  ;;  %v8251_v32 = vld [vmem:[%s13523_s1 + $0xa8] sm:$0xff] }
  0xd9   : > { %10329 = vmatmul.mubr.msk.f32.vlgmr.msra.gmra.mrb[0].mxu1 %vm403_vm0, %v11763_v49  ;;  %9827 = vmatprep.mubr.msk.f32.mxu0 %vm403_vm0, %v11705_v34  ;;  %v12259_v49 = vpack.c.bf16 %v8732_v18, %v8731_v30  ;;  %v12263_v34 = vpack.c.bf16 %v8251_v32, %v8250_v47  ;;  %v12525_v18 = vld [vmem:[%s11501_s19 + $0x18f] sm:$0xff]  ;;  %v12544_v37 = vld [vmem:[%s11501_s19 + $0x1c7] sm:$0xff] }
  0xda   : > { %10809 = vmatpush3.bf16.msra.mxu1 %v11971_v20  ;;  %10331 = vmatprep.mubr.msk.f32.mxu1 %vm403_vm0, %v11769_v51  ;;  %v12378_v51 = vld [vmem:[%s11501_s19 + $0x284] sm:$0xff]  ;;  %v12497_v20 = vld [vmem:[%s11501_s19 + $0x14f] sm:$0xff] }
  0xdb   : > { %10737 = vmatpush3.bf16.msra.mxu0 %v11974_v21  ;;  %10811 = vmatprep.subr.bf16.mxu1 %v10810_v45  ;;  %v12502_v21 = vld [vmem:[%s11501_s19 + $0x167] sm:$0xff]  ;;  %v12567_v47 = vld [vmem:[%s11501_s19 + $0x1ef] sm:$0xff] }
  0xdc   : > { %9828 = vmatmul.mubr.msk.f32.gmra.mrb[2].mxu0 %vm403_vm0, %v11714_v36  ;;  %10739 = vmatprep.subr.bf16.mxu0 %v10738_v29  ;;  %v12322_v36 = vld [vmem:[%s11501_s19 + $0x200] sm:$0xff] }
  0xdd   : > { %10332 = vmatmul.mubr.msk.f32.gmra.mrb[2].mxu1 %vm403_vm0, %v11783_v53  ;;  %9830 = vmatprep.mubr.msk.f32.mxu0 %vm403_vm0, %v11719_v38  ;;  %v12333_v38 = vld [vmem:[%s11501_s19 + $0x208] sm:$0xff] }
  0xde   : > { %10334 = vmatprep.mubr.msk.f32.mxu1 %vm403_vm0, %v11789_v55  ;;  %10813 = vmatpush3.bf16.msra.mxu1 %v10810_v45  ;;  %v12390_v53 = vld [vmem:[%s11501_s19 + $0x28c] sm:$0xff]  ;;  %v12398_v55 = vld [vmem:[%s11501_s19 + $0x2a4] sm:$0xff] }
  0xdf   : > { %10741 = vmatpush3.bf16.msra.mxu0 %v10738_v29  ;;  %10815 = vmatprep.subr.bf16.mxu1 %v12259_v49  ;;  %v12539_v29 = vld [vmem:[%s11501_s19 + $0x1af] sm:$0xff]  ;;  %v12558_v30 = vld [vmem:[%s11501_s19 + $0x1e7] sm:$0xff] }
  0xe0   : > { %9831 = vmatmul.mubr.msk.f32.gmra.mrb[4].mxu0 %vm403_vm0, %v11728_v40  ;;  %10743 = vmatprep.subr.bf16.mxu0 %v12263_v34  ;;  %v12336_v40 = vld [vmem:[%s11501_s19 + $0x220] sm:$0xff]  ;;  %v12553_v45 = vld [vmem:[%s11501_s19 + $0x1cf] sm:$0xff] }
  0xe1   : > { %10335 = vmatmul.mubr.msk.f32.gmra.mrb[4].mxu1 %vm403_vm0, %v11803_v57  ;;  %9833 = vmatprep.mubr.msk.f32.mxu0 %vm403_vm0, %v11733_v42  ;;  %v12347_v42 = vld [vmem:[%s11501_s19 + $0x228] sm:$0xff] }
  0xe2   : > { %10337 = vmatprep.mubr.msk.f32.mxu1 %vm403_vm0, %v11809_v59  ;;  %v12410_v57 = vld [vmem:[%s11501_s19 + $0x2ac] sm:$0xff]  ;;  %v12418_v59 = vld [vmem:[%s11501_s19 + $0x2c4] sm:$0xff] }
  0xe3   : > { %v12572_v32 = vld [vmem:[%s11501_s19 + $0x207] sm:$0xff] }
  0xe4   : > { %9834 = vmatmul.mubr.msk.f32.gmra.mrb[6].mxu0 %vm403_vm0, %v11742_v44  ;;  %v12350_v44 = vld [vmem:[%s11501_s19 + $0x240] sm:$0xff] }
  0xe5   : > { %10338 = vmatmul.mubr.msk.f32.gmra.mrb[6].mxu1 %vm403_vm0, %v11823_v61  ;;  %9836 = vmatprep.mubr.msk.f32.mxu0 %vm403_vm0, %v11747_v46  ;;  %v12361_v46 = vld [vmem:[%s11501_s19 + $0x248] sm:$0xff] }
  0xe6   : > { %10340 = vmatprep.mubr.msk.f32.mxu1 %vm403_vm0, %v11829_v63  ;;  %v12430_v61 = vld [vmem:[%s11501_s19 + $0x2cc] sm:$0xff] }
  0xe7   : > { %v8150_v63 = vld [vmem:[%s11501_s19 + $0xe7] sm:$0xff] }
  0xe8   : > { %9837 = vmatmul.mubr.msk.f32.gmra.mrb[8].mxu0 %vm403_vm0, %v11758_v48  ;;  %v12364_v48 = vld [vmem:[%s11501_s19 + $0x260] sm:$0xff] }
  0xe9   : > { %10341 = vmatmul.mubr.msk.f32.gmra.mrb[8].mxu1 %vm403_vm0, %v11843_v1  ;;  %9839 = vmatprep.mubr.msk.f32.mxu0 %vm403_vm0, %v11766_v50  ;;  %v12375_v50 = vld [vmem:[%s11501_s19 + $0x268] sm:$0xff]  ;;  %v8734_v1 = vld [vmem:[%s13525_s3 + $0xb8] sm:$0xff] }
  0xea   : > { %10343 = vmatprep.mubr.msk.f32.mxu1 %vm403_vm0, %v11849_v3  ;;  %v8252_v3 = vld [vmem:[%s13523_s1 + $0xb0] sm:$0xff] }
  0xec   : > { %9840 = vmatmul.mubr.msk.f32.gmra.mrb[10].mxu0 %vm403_vm0, %v11778_v52  ;;  %v12381_v52 = vld [vmem:[%s11501_s19 + $0x280] sm:$0xff] }
  0xed   : > { %10344 = vmatmul.mubr.msk.f32.gmra.mrb[10].mxu1 %vm403_vm0, %v11863_v5  ;;  %9842 = vmatprep.mubr.msk.f32.mxu0 %vm403_vm0, %v11786_v54  ;;  %v12395_v54 = vld [vmem:[%s11501_s19 + $0x288] sm:$0xff] }
  0xee   : > { %10346 = vmatprep.mubr.msk.f32.mxu1 %vm403_vm0, %v11869_v7  ;;  %v8152_v5 = vld [vmem:[%s11501_s19 + $0x107] sm:$0xff] }
  0xf0   : > { %9843 = vmatmul.mubr.msk.f32.gmra.mrb[12].mxu0 %vm403_vm0, %v11798_v56  ;;  %v12401_v56 = vld [vmem:[%s11501_s19 + $0x2a0] sm:$0xff] }
  0xf1   : > { %10347 = vmatmul.mubr.msk.f32.gmra.mrb[12].mxu1 %vm403_vm0, %v11883_v9  ;;  %9845 = vmatprep.mubr.msk.f32.mxu0 %vm403_vm0, %v11806_v58  ;;  %v12415_v58 = vld [vmem:[%s11501_s19 + $0x2a8] sm:$0xff] }
  0xf2   : > { %10349 = vmatprep.mubr.msk.f32.mxu1 %vm403_vm0, %v11889_v11  ;;  %v8800_v9 = vld [vmem:[%s13525_s3 + $0xc8] sm:$0xff]  ;;  %v8318_v11 = vld [vmem:[%s13523_s1 + $0xc0] sm:$0xff] }
  0xf4   : > { %9846 = vmatmul.mubr.msk.f32.gmra.mrb[14].mxu0 %vm403_vm0, %v11818_v60  ;;  %v12421_v60 = vld [vmem:[%s11501_s19 + $0x2c0] sm:$0xff] }
  0xf5   : > { %10350 = vmatmul.mubr.msk.f32.gmra.mrb[14].mxu1 %vm403_vm0, %v11903_v13  ;;  %9848 = vmatprep.mubr.msk.f32.mxu0 %vm403_vm0, %v11826_v62  ;;  %v12435_v62 = vld [vmem:[%s11501_s19 + $0x2c8] sm:$0xff] }
  0xf6   : > { %10352 = vmatprep.mubr.msk.f32.mxu1 %vm403_vm0, %v11909_v15  ;;  %v8154_v13 = vld [vmem:[%s11501_s19 + $0x127] sm:$0xff] }
  0xf8   : > { %9849 = vmatmul.mubr.msk.f32.gmra.mrb[16].mxu0 %vm403_vm0, %v11838_v0  ;;  %v8733_v0 = vld [vmem:[%s13525_s3 + $0xb0] sm:$0xff] }
  0xf9   : > { %10353 = vmatmul.mubr.msk.f32.gmra.mrb[16].mxu1 %vm403_vm0, %v11923_v17  ;;  %9851 = vmatprep.mubr.msk.f32.mxu0 %vm403_vm0, %v11846_v2  ;;  %v8151_v2 = vld [vmem:[%s11501_s19 + $0xef] sm:$0xff]  ;;  %v12488_v17 = vld [vmem:[%s11501_s19 + $0x147] sm:$0xff] }
  0xfa   : > { %10355 = vmatprep.mubr.msk.f32.mxu1 %vm403_vm0, %v12322_v36 }
  0xfc   : > { %9852 = vmatmul.mubr.msk.f32.gmra.mrb[18].mxu0 %vm403_vm0, %v11858_v4  ;;  %v8253_v4 = vld [vmem:[%s13523_s1 + $0xb8] sm:$0xff] }
  0xfd   : > { %10356 = vmatmul.mubr.msk.f32.gmra.mrb[18].mxu1 %vm403_vm0, %v12333_v38  ;;  %9854 = vmatprep.mubr.msk.f32.mxu0 %vm403_vm0, %v11866_v6  ;;  %v10818_v6 = vpack.c.bf16 %v8734_v1, %v8733_v0  ;;  %v10746_v7 = vpack.c.bf16 %v8253_v4, %v8252_v3  ;;  %v12600_v0 = vld [vmem:[%s11501_s19 + $0x247] sm:$0xff]  ;;  %v12609_v1 = vld [vmem:[%s11501_s19 + $0x24f] sm:$0xff] }
  0xfe   : > { %10358 = vmatprep.mubr.msk.f32.mxu1 %vm403_vm0, %v12336_v40  ;;  %v12623_v3 = vld [vmem:[%s11501_s19 + $0x26f] sm:$0xff]  ;;  %v12628_v4 = vld [vmem:[%s11501_s19 + $0x287] sm:$0xff] }
 0x100   : > { %9855 = vmatmul.mubr.msk.f32.gmra.mrb[20].mxu0 %vm403_vm0, %v11878_v8  ;;  %v8799_v8 = vld [vmem:[%s13525_s3 + $0xc0] sm:$0xff] }
 0x101   : > { %10359 = vmatmul.mubr.msk.f32.gmra.mrb[20].mxu1 %vm403_vm0, %v12347_v42  ;;  %9857 = vmatprep.mubr.msk.f32.mxu0 %vm403_vm0, %v11886_v10  ;;  %v8153_v10 = vld [vmem:[%s11501_s19 + $0x10f] sm:$0xff] }
 0x102   : > { %10361 = vmatprep.mubr.msk.f32.mxu1 %vm403_vm0, %v12350_v44 }
 0x104   : > { %9858 = vmatmul.mubr.msk.f32.gmra.mrb[22].mxu0 %vm403_vm0, %v11898_v12  ;;  %v8319_v12 = vld [vmem:[%s13523_s1 + $0xc8] sm:$0xff] }
 0x105   : > { %10362 = vmatmul.mubr.msk.f32.gmra.mrb[22].mxu1 %vm403_vm0, %v12361_v46  ;;  %9860 = vmatprep.mubr.msk.f32.mxu0 %vm403_vm0, %v11906_v14  ;;  %v12478_v14 = vpack.c.bf16 %v8800_v9, %v8799_v8  ;;  %v12481_v15 = vpack.c.bf16 %v8319_v12, %v8318_v11  ;;  %v12656_v8 = vld [vmem:[%s11501_s19 + $0x2c7] sm:$0xff]  ;;  %v12665_v9 = vld [vmem:[%s11501_s19 + $0x2cf] sm:$0xff]  ;;  %v8802_v11 = vld [vmem:[%s13525_s3 + $0xd8] sm:$0xff] }
 0x106   : > { %10364 = vmatprep.mubr.msk.f32.mxu1 %vm403_vm0, %v12364_v48  ;;  %13617 = vst [vmem:[#allocation35_spill] sm:$0xff] %v12656_v8  ;;  %13618 = vst [vmem:[#allocation36_spill] sm:$0xff] %v12665_v9  ;;  %v8320_v12 = vld [vmem:[%s13523_s1 + $0xd0] sm:$0xff] }
 0x108   : > { %9861 = vmatmul.mubr.msk.f32.gmra.mrb[24].mxu0 %vm403_vm0, %v11918_v16  ;;  %v8155_v16 = vld [vmem:[%s11501_s19 + $0x12f] sm:$0xff] }
 0x109   : > { %10365 = vmatmul.mubr.msk.f32.gmra.mrb[24].mxu1 %vm403_vm0, %v12375_v50  ;;  %9863 = vmatprep.mubr.msk.f32.mxu0 %vm403_vm0, %v12378_v51 }
 0x10a   : > { %10367 = vmatprep.mubr.msk.f32.mxu1 %vm403_vm0, %v12381_v52 }
 0x10c   : > { %9864 = vmatmul.mubr.msk.f32.gmra.mrb[26].mxu0 %vm403_vm0, %v12390_v53 }
 0x10d   : > { %10368 = vmatmul.mubr.msk.f32.gmra.mrb[26].mxu1 %vm403_vm0, %v12395_v54  ;;  %9866 = vmatprep.mubr.msk.f32.mxu0 %vm403_vm0, %v12398_v55 }
 0x10e   : > { %10370 = vmatprep.mubr.msk.f32.mxu1 %vm403_vm0, %v12401_v56 }
 0x110   : > { %9867 = vmatmul.mubr.msk.f32.gmra.mrb[28].mxu0 %vm403_vm0, %v12410_v57 }
 0x111   : > { %10371 = vmatmul.mubr.msk.f32.gmra.mrb[28].mxu1 %vm403_vm0, %v12415_v58  ;;  %9869 = vmatprep.mubr.msk.f32.mxu0 %vm403_vm0, %v12418_v59 }
 0x112   : > { %10373 = vmatprep.mubr.msk.f32.mxu1 %vm403_vm0, %v12421_v60 }
 0x114   : > { %9870 = vmatmul.mubr.msk.f32.gmra.mrb[30].mxu0 %vm403_vm0, %v12430_v61 }
 0x115   : > { %10374 = vmatmul.mubr.msk.f32.gmra.mrb[30].mxu1 %vm403_vm0, %v12435_v62  ;;  %9880 = vmatprep.mubr.msk.f32.mxu0 %vm403_vm0, %v8150_v63 }
 0x116   : > { %10384 = vmatprep.mubr.msk.f32.mxu1 %vm403_vm0, %v8150_v63  ;;  %v12595_v63 = vld [vmem:[%s11501_s19 + $0x22f] sm:$0xff] }
 0x118   : > { %9881 = vmatmul.mubr.msk.f32.vlgmr.msra.gmra.mrb[0].mxu0 %vm403_vm0, %v8151_v2 }
 0x119   : > { %10385 = vmatmul.mubr.msk.f32.vlgmr.msra.gmra.mrb[0].mxu1 %vm403_vm0, %v8151_v2  ;;  %9883 = vmatprep.mubr.msk.f32.mxu0 %vm403_vm0, %v8152_v5  ;;  %v12614_v2 = vld [vmem:[%s11501_s19 + $0x267] sm:$0xff] }
 0x11a   : > { %10817 = vmatpush3.bf16.msra.mxu1 %v12259_v49  ;;  %10387 = vmatprep.mubr.msk.f32.mxu1 %vm403_vm0, %v8152_v5  ;;  %v12581_v49 = vld [vmem:[%s11501_s19 + $0x20f] sm:$0xff] }
 0x11b   : > { %10745 = vmatpush3.bf16.msra.mxu0 %v12263_v34  ;;  %10819 = vmatprep.subr.bf16.mxu1 %v10818_v6  ;;  %v12586_v34 = vld [vmem:[%s11501_s19 + $0x227] sm:$0xff]  ;;  %v12637_v5 = vld [vmem:[%s11501_s19 + $0x28f] sm:$0xff] }
 0x11c   : > { %9884 = vmatmul.mubr.msk.f32.gmra.mrb[2].mxu0 %vm403_vm0, %v8153_v10  ;;  %10747 = vmatprep.subr.bf16.mxu0 %v10746_v7 }
 0x11d   : > { %10388 = vmatmul.mubr.msk.f32.gmra.mrb[2].mxu1 %vm403_vm0, %v8153_v10  ;;  %9886 = vmatprep.mubr.msk.f32.mxu0 %vm403_vm0, %v8154_v13  ;;  %v8801_v10 = vld [vmem:[%s13525_s3 + $0xd0] sm:$0xff] }
 0x11e   : > { %10390 = vmatprep.mubr.msk.f32.mxu1 %vm403_vm0, %v8154_v13  ;;  %10821 = vmatpush3.bf16.msra.mxu1 %v10818_v6  ;;  %v12642_v6 = vld [vmem:[%s11501_s19 + $0x2a7] sm:$0xff]  ;;  %v8321_v13 = vld [vmem:[%s13523_s1 + $0xd8] sm:$0xff] }
 0x11f   : > { %10749 = vmatpush3.bf16.msra.mxu0 %v10746_v7  ;;  %10823 = vmatprep.subr.bf16.mxu1 %v12478_v14  ;;  %v12651_v7 = vld [vmem:[%s11501_s19 + $0x2af] sm:$0xff] }
 0x120   : > { %9887 = vmatmul.mubr.msk.f32.gmra.mrb[4].mxu0 %vm403_vm0, %v8155_v16  ;;  %10751 = vmatprep.subr.bf16.mxu0 %v12481_v15 }
 0x121   : > { %10391 = vmatmul.mubr.msk.f32.gmra.mrb[4].mxu1 %vm403_vm0, %v8155_v16  ;;  %9889 = vmatprep.mubr.msk.f32.mxu0 %vm403_vm0, %v12488_v17  ;;  %v10826_v16 = vpack.c.bf16 %v8802_v11, %v8801_v10  ;;  %v13628_v10 = vld [vmem:[#allocation19_spill] sm:$0xff] }
 0x122   : > { %10393 = vmatprep.mubr.msk.f32.mxu1 %vm403_vm0, %v12488_v17  ;;  %v13629_v11 = vld [vmem:[#allocation7_spill] sm:$0xff] }
 0x124   : > { %9890 = vmatmul.mubr.msk.f32.gmra.mrb[6].mxu0 %vm403_vm0, %v12497_v20 }
 0x125   : > { %10394 = vmatmul.mubr.msk.f32.gmra.mrb[6].mxu1 %vm403_vm0, %v12497_v20  ;;  %9892 = vmatprep.mubr.msk.f32.mxu0 %vm403_vm0, %v12502_v21 }
 0x126   : > { %10396 = vmatprep.mubr.msk.f32.mxu1 %vm403_vm0, %v12502_v21 }
 0x128   : > { %9893 = vmatmul.mubr.msk.f32.gmra.mrb[8].mxu0 %vm403_vm0, %v12511_v39 }
 0x129   : > { %10397 = vmatmul.mubr.msk.f32.gmra.mrb[8].mxu1 %vm403_vm0, %v12511_v39  ;;  %9895 = vmatprep.mubr.msk.f32.mxu0 %vm403_vm0, %v12516_v43 }
 0x12a   : > { %10399 = vmatprep.mubr.msk.f32.mxu1 %vm403_vm0, %v12516_v43 }
 0x12c   : > { %9896 = vmatmul.mubr.msk.f32.gmra.mrb[10].mxu0 %vm403_vm0, %v12525_v18 }
 0x12d   : > { %10400 = vmatmul.mubr.msk.f32.gmra.mrb[10].mxu1 %vm403_vm0, %v12525_v18  ;;  %9898 = vmatprep.mubr.msk.f32.mxu0 %vm403_vm0, %v12530_v23 }
 0x12e   : > { %10402 = vmatprep.mubr.msk.f32.mxu1 %vm403_vm0, %v12530_v23 }
 0x130   : > { %9899 = vmatmul.mubr.msk.f32.gmra.mrb[12].mxu0 %vm403_vm0, %v12539_v29 }
 0x131   : > { %10403 = vmatmul.mubr.msk.f32.gmra.mrb[12].mxu1 %vm403_vm0, %v12539_v29  ;;  %9901 = vmatprep.mubr.msk.f32.mxu0 %vm403_vm0, %v12544_v37 }
 0x132   : > { %10405 = vmatprep.mubr.msk.f32.mxu1 %vm403_vm0, %v12544_v37 }
 0x134   : > { %9902 = vmatmul.mubr.msk.f32.gmra.mrb[14].mxu0 %vm403_vm0, %v12553_v45 }
 0x135   : > { %10406 = vmatmul.mubr.msk.f32.gmra.mrb[14].mxu1 %vm403_vm0, %v12553_v45  ;;  %9904 = vmatprep.mubr.msk.f32.mxu0 %vm403_vm0, %v12558_v30 }
 0x136   : > { %10408 = vmatprep.mubr.msk.f32.mxu1 %vm403_vm0, %v12558_v30 }
 0x138   : > { %9905 = vmatmul.mubr.msk.f32.gmra.mrb[16].mxu0 %vm403_vm0, %v12567_v47 }
 0x139   : > { %10409 = vmatmul.mubr.msk.f32.gmra.mrb[16].mxu1 %vm403_vm0, %v12567_v47  ;;  %9907 = vmatprep.mubr.msk.f32.mxu0 %vm403_vm0, %v12572_v32 }
 0x13a   : > { %10411 = vmatprep.mubr.msk.f32.mxu1 %vm403_vm0, %v12572_v32 }
 0x13c   : > { %9908 = vmatmul.mubr.msk.f32.gmra.mrb[18].mxu0 %vm403_vm0, %v12581_v49 }
 0x13d   : > { %10412 = vmatmul.mubr.msk.f32.gmra.mrb[18].mxu1 %vm403_vm0, %v12581_v49  ;;  %9910 = vmatprep.mubr.msk.f32.mxu0 %vm403_vm0, %v12586_v34 }
 0x13e   : > { %10414 = vmatprep.mubr.msk.f32.mxu1 %vm403_vm0, %v12586_v34 }
 0x140   : > { %9911 = vmatmul.mubr.msk.f32.gmra.mrb[20].mxu0 %vm403_vm0, %v12595_v63 }
 0x141   : > { %10415 = vmatmul.mubr.msk.f32.gmra.mrb[20].mxu1 %vm403_vm0, %v12595_v63  ;;  %9913 = vmatprep.mubr.msk.f32.mxu0 %vm403_vm0, %v12600_v0 }
 0x142   : > { %10417 = vmatprep.mubr.msk.f32.mxu1 %vm403_vm0, %v12600_v0 }
 0x144   : > { %9914 = vmatmul.mubr.msk.f32.gmra.mrb[22].mxu0 %vm403_vm0, %v12609_v1 }
 0x145   : > { %10418 = vmatmul.mubr.msk.f32.gmra.mrb[22].mxu1 %vm403_vm0, %v12609_v1  ;;  %9916 = vmatprep.mubr.msk.f32.mxu0 %vm403_vm0, %v12614_v2 }
 0x146   : > { %10420 = vmatprep.mubr.msk.f32.mxu1 %vm403_vm0, %v12614_v2 }
 0x148   : > { %9917 = vmatmul.mubr.msk.f32.gmra.mrb[24].mxu0 %vm403_vm0, %v12623_v3 }
 0x149   : > { %10421 = vmatmul.mubr.msk.f32.gmra.mrb[24].mxu1 %vm403_vm0, %v12623_v3  ;;  %9919 = vmatprep.mubr.msk.f32.mxu0 %vm403_vm0, %v12628_v4 }
 0x14a   : > { %10423 = vmatprep.mubr.msk.f32.mxu1 %vm403_vm0, %v12628_v4 }
 0x14c   : > { %9920 = vmatmul.mubr.msk.f32.gmra.mrb[26].mxu0 %vm403_vm0, %v12637_v5 }
 0x14d   : > { %10424 = vmatmul.mubr.msk.f32.gmra.mrb[26].mxu1 %vm403_vm0, %v12637_v5  ;;  %9922 = vmatprep.mubr.msk.f32.mxu0 %vm403_vm0, %v12642_v6 }
 0x14e   : > { %10426 = vmatprep.mubr.msk.f32.mxu1 %vm403_vm0, %v12642_v6 }
 0x150   : > { %9923 = vmatmul.mubr.msk.f32.gmra.mrb[28].mxu0 %vm403_vm0, %v12651_v7 }
 0x151   : > { %10427 = vmatmul.mubr.msk.f32.gmra.mrb[28].mxu1 %vm403_vm0, %v12651_v7  ;;  %9925 = vmatprep.mubr.msk.f32.mxu0 %vm403_vm0, %v12656_v8 }
 0x152   : > { %10429 = vmatprep.mubr.msk.f32.mxu1 %vm403_vm0, %v12656_v8  ;;  %v10754_v8 = vpack.c.bf16 %v8321_v13, %v8320_v12  ;;  %v13630_v12 = vld [vmem:[#allocation21_spill] sm:$0xff]  ;;  %v13631_v13 = vld [vmem:[#allocation8_spill] sm:$0xff] }
 0x154   : > { %9926 = vmatmul.mubr.msk.f32.gmra.mrb[30].mxu0 %vm403_vm0, %v12665_v9 }
 0x155   : > { %10430 = vmatmul.mubr.msk.f32.gmra.mrb[30].mxu1 %vm403_vm0, %v12665_v9  ;;  %9936 = vmatprep.mubr.msk.f32.mxu0 %vm403_vm0, %v11982_v22  ;;  %v8867_v22 = vld [vmem:[%s13525_s3 + $0xe0] sm:$0xff]  ;;  %v8868_v9 = vld [vmem:[%s13525_s3 + $0xe8] sm:$0xff] }
 0x156   : > { %10440 = vmatprep.mubr.msk.f32.mxu1 %vm403_vm0, %v12042_v27  ;;  %v8386_v27 = vld [vmem:[%s13523_s1 + $0xe0] sm:$0xff] }
 0x158   : > { %9937 = vmatmul.mubr.msk.f32.vlgmr.msra.gmra.mrb[0].mxu0 %vm403_vm0, %v11992_v24  ;;  %v8387_v24 = vld [vmem:[%s13523_s1 + $0xe8] sm:$0xff] }
 0x159   : > { %10441 = vmatmul.mubr.msk.f32.vlgmr.msra.gmra.mrb[0].mxu1 %vm403_vm0, %v12055_v25  ;;  %9939 = vmatprep.mubr.msk.f32.mxu0 %vm403_vm0, %v11997_v28  ;;  %v12711_v25 = vpack.c.bf16 %v8868_v9, %v8867_v22  ;;  %v12715_v28 = vpack.c.bf16 %v8387_v24, %v8386_v27  ;;  %v13627_v9 = vld [vmem:[#allocation6_spill] sm:$0xff]  ;;  %v13633_v22 = vld [vmem:[#allocation9_spill] sm:$0xff] }
 0x15a   : > { %10825 = vmatpush3.bf16.msra.mxu1 %v12478_v14  ;;  %10443 = vmatprep.mubr.msk.f32.mxu1 %vm403_vm0, %v12061_v33  ;;  %v13619_v33 = vld [vmem:[#allocation2_spill] sm:$0xff]  ;;  %v13621_v14 = vld [vmem:[#allocation3_spill] sm:$0xff]  ;;  %v13634_v27 = vld [vmem:[#allocation25_spill] sm:$0xff] }
 0x15b   : > { %10753 = vmatpush3.bf16.msra.mxu0 %v12481_v15  ;;  %10827 = vmatprep.subr.bf16.mxu1 %v10826_v16  ;;  %v13625_v15 = vld [vmem:[#allocation5_spill] sm:$0xff]  ;;  %v13635_v24 = vld [vmem:[#allocation10_spill] sm:$0xff] }
 0x15c   : > { %9940 = vmatmul.mubr.msk.f32.gmra.mrb[2].mxu0 %vm403_vm0, %v12006_v31  ;;  %10755 = vmatprep.subr.bf16.mxu0 %v10754_v8  ;;  %v13620_v31 = vld [vmem:[#allocation11_spill] sm:$0xff] }
 0x15d   : > { %10444 = vmatmul.mubr.msk.f32.gmra.mrb[2].mxu1 %vm403_vm0, %v12075_v41  ;;  %9942 = vmatprep.mubr.msk.f32.mxu0 %vm403_vm0, %v12011_v35  ;;  %v13622_v41 = vld [vmem:[#allocation13_spill] sm:$0xff]  ;;  %v13623_v35 = vld [vmem:[#allocation4_spill] sm:$0xff] }
 0x15e   : > { %10446 = vmatprep.mubr.msk.f32.mxu1 %vm403_vm0, %v12081_v19  ;;  %10829 = vmatpush3.bf16.msra.mxu1 %v10826_v16  ;;  %v13624_v19 = vld [vmem:[#allocation15_spill] sm:$0xff] }
 0x15f   : > { %10757 = vmatpush3.bf16.msra.mxu0 %v10754_v8  ;;  %10831 = vmatprep.subr.bf16.mxu1 %v12711_v25  ;;  %v13626_v8 = vld [vmem:[#allocation17_spill] sm:$0xff]  ;;  %v13632_v16 = vld [vmem:[#allocation23_spill] sm:$0xff] }
 0x160   : > { %9943 = vmatmul.mubr.msk.f32.gmra.mrb[4].mxu0 %vm403_vm0, %v13619_v33  ;;  %10759 = vmatprep.subr.bf16.mxu0 %v12715_v28  ;;  %v13636_v33 = vld [vmem:[#allocation12_spill] sm:$0xff] }
 0x161   : > { %10447 = vmatmul.mubr.msk.f32.gmra.mrb[4].mxu1 %vm403_vm0, %v13620_v31  ;;  %9945 = vmatprep.mubr.msk.f32.mxu0 %vm403_vm0, %v13621_v14  ;;  %v13637_v31 = vld [vmem:[#allocation28_spill] sm:$0xff]  ;;  %v13638_v14 = vld [vmem:[#allocation14_spill] sm:$0xff] }
 0x162   : > { %10449 = vmatprep.mubr.msk.f32.mxu1 %vm403_vm0, %v13622_v41  ;;  %v13639_v41 = vld [vmem:[#allocation30_spill] sm:$0xff] }
 0x164   : > { %9946 = vmatmul.mubr.msk.f32.gmra.mrb[6].mxu0 %vm403_vm0, %v13623_v35  ;;  %v13640_v35 = vld [vmem:[#allocation16_spill] sm:$0xff] }
 0x165   : > { %10450 = vmatmul.mubr.msk.f32.gmra.mrb[6].mxu1 %vm403_vm0, %v13624_v19  ;;  %9948 = vmatprep.mubr.msk.f32.mxu0 %vm403_vm0, %v13625_v15  ;;  %v13641_v19 = vld [vmem:[#allocation32_spill] sm:$0xff]  ;;  %v13642_v15 = vld [vmem:[#allocation18_spill] sm:$0xff] }
 0x166   : > { %10452 = vmatprep.mubr.msk.f32.mxu1 %vm403_vm0, %v13626_v8  ;;  %v13643_v8 = vld [vmem:[#allocation34_spill] sm:$0xff] }
 0x168   : > { %9949 = vmatmul.mubr.msk.f32.gmra.mrb[8].mxu0 %vm403_vm0, %v13627_v9  ;;  %v13644_v9 = vld [vmem:[#allocation20_spill] sm:$0xff] }
 0x169   : > { %10453 = vmatmul.mubr.msk.f32.gmra.mrb[8].mxu1 %vm403_vm0, %v13628_v10  ;;  %9951 = vmatprep.mubr.msk.f32.mxu0 %vm403_vm0, %v13629_v11  ;;  %v12785_v10 = vld [vmem:[%s11501_s19 + $0x216] sm:$0xff]  ;;  %v12788_v11 = vld [vmem:[%s11501_s19 + $0x22e] sm:$0xff] }
 0x16a   : > { %10455 = vmatprep.mubr.msk.f32.mxu1 %vm403_vm0, %v13630_v12  ;;  %v13645_v12 = vld [vmem:[#allocation22_spill] sm:$0xff] }
 0x16c   : > { %9952 = vmatmul.mubr.msk.f32.gmra.mrb[10].mxu0 %vm403_vm0, %v13631_v13  ;;  %v13646_v13 = vld [vmem:[#allocation24_spill] sm:$0xff] }
 0x16d   : > { %10456 = vmatmul.mubr.msk.f32.gmra.mrb[10].mxu1 %vm403_vm0, %v13632_v16  ;;  %9954 = vmatprep.mubr.msk.f32.mxu0 %vm403_vm0, %v13633_v22  ;;  %v12799_v16 = vld [vmem:[%s11501_s19 + $0x236] sm:$0xff]  ;;  %v12802_v22 = vld [vmem:[%s11501_s19 + $0x24e] sm:$0xff] }
 0x16e   : > { %10458 = vmatprep.mubr.msk.f32.mxu1 %vm403_vm0, %v13634_v27  ;;  %v13647_v27 = vld [vmem:[#allocation26_spill] sm:$0xff] }
 0x170   : > { %9955 = vmatmul.mubr.msk.f32.gmra.mrb[12].mxu0 %vm403_vm0, %v13635_v24  ;;  %v13648_v24 = vld [vmem:[#allocation27_spill] sm:$0xff] }
 0x171   : > { %10459 = vmatmul.mubr.msk.f32.gmra.mrb[12].mxu1 %vm403_vm0, %v12175_v26  ;;  %9957 = vmatprep.mubr.msk.f32.mxu0 %vm403_vm0, %v13636_v33  ;;  %v12774_v26 = vld [vmem:[%s11501_s19 + $0x20e] sm:$0xff]  ;;  %v12813_v33 = vld [vmem:[%s11501_s19 + $0x256] sm:$0xff] }
 0x172   : > { %10461 = vmatprep.mubr.msk.f32.mxu1 %vm403_vm0, %v13637_v31  ;;  %13649 = vst [vmem:[#allocation2_spill] sm:$0xff] %v12813_v33  ;;  %v12816_v31 = vld [vmem:[%s11501_s19 + $0x26e] sm:$0xff] }
 0x173   : > { %13650 = vst [vmem:[#allocation11_spill] sm:$0xff] %v12816_v31 }
 0x174   : > { %9958 = vmatmul.mubr.msk.f32.gmra.mrb[14].mxu0 %vm403_vm0, %v13638_v14  ;;  %v13651_v14 = vld [vmem:[#allocation29_spill] sm:$0xff] }
 0x175   : > { %10462 = vmatmul.mubr.msk.f32.gmra.mrb[14].mxu1 %vm403_vm0, %v13639_v41  ;;  %9960 = vmatprep.mubr.msk.f32.mxu0 %vm403_vm0, %v13640_v35  ;;  %v13652_v41 = vld [vmem:[#allocation31_spill] sm:$0xff]  ;;  %v12827_v35 = vld [vmem:[%s11501_s19 + $0x276] sm:$0xff] }
 0x176   : > { %10464 = vmatprep.mubr.msk.f32.mxu1 %vm403_vm0, %v13641_v19  ;;  %13653 = vst [vmem:[#allocation3_spill] sm:$0xff] %v12827_v35  ;;  %v12830_v19 = vld [vmem:[%s11501_s19 + $0x28a] sm:$0xff] }
 0x177   : > { %13654 = vst [vmem:[#allocation13_spill] sm:$0xff] %v12830_v19 }
 0x178   : > { %9961 = vmatmul.mubr.msk.f32.gmra.mrb[16].mxu0 %vm403_vm0, %v13642_v15  ;;  %v12833_v15 = vld [vmem:[%s11501_s19 + $0x28e] sm:$0xff] }
 0x179   : > { %10465 = vmatmul.mubr.msk.f32.gmra.mrb[16].mxu1 %vm403_vm0, %v13643_v8  ;;  %9963 = vmatprep.mubr.msk.f32.mxu0 %vm403_vm0, %v13644_v9  ;;  %13655 = vst [vmem:[#allocation4_spill] sm:$0xff] %v12833_v15  ;;  %v13656_v8 = vld [vmem:[#allocation33_spill] sm:$0xff] }
 0x17a   : > { %10467 = vmatprep.mubr.msk.f32.mxu1 %vm403_vm0, %v12774_v26  ;;  %v12842_v9 = vld [vmem:[%s11501_s19 + $0x292] sm:$0xff] }
 0x17b   : > { %13657 = vst [vmem:[#allocation15_spill] sm:$0xff] %v12842_v9 }
 0x17c   : > { %9964 = vmatmul.mubr.msk.f32.gmra.mrb[18].mxu0 %vm403_vm0, %v13645_v12  ;;  %v12847_v12 = vld [vmem:[%s11501_s19 + $0x296] sm:$0xff] }
 0x17d   : > { %10468 = vmatmul.mubr.msk.f32.gmra.mrb[18].mxu1 %vm403_vm0, %v12785_v10  ;;  %9966 = vmatprep.mubr.msk.f32.mxu0 %vm403_vm0, %v13646_v13  ;;  %13658 = vst [vmem:[#allocation5_spill] sm:$0xff] %v12847_v12  ;;  %v12850_v13 = vld [vmem:[%s11501_s19 + $0x2aa] sm:$0xff] }
 0x17e   : > { %10470 = vmatprep.mubr.msk.f32.mxu1 %vm403_vm0, %v12788_v11  ;;  %13659 = vst [vmem:[#allocation17_spill] sm:$0xff] %v12850_v13 }
 0x180   : > { %9967 = vmatmul.mubr.msk.f32.gmra.mrb[20].mxu0 %vm403_vm0, %v13647_v27  ;;  %v12853_v27 = vld [vmem:[%s11501_s19 + $0x2ae] sm:$0xff] }
 0x181   : > { %10471 = vmatmul.mubr.msk.f32.gmra.mrb[20].mxu1 %vm403_vm0, %v12799_v16  ;;  %9969 = vmatprep.mubr.msk.f32.mxu0 %vm403_vm0, %v13648_v24  ;;  %13660 = vst [vmem:[#allocation6_spill] sm:$0xff] %v12853_v27  ;;  %v12862_v24 = vld [vmem:[%s11501_s19 + $0x2b2] sm:$0xff] }
 0x182   : > { %10473 = vmatprep.mubr.msk.f32.mxu1 %vm403_vm0, %v12802_v22  ;;  %13661 = vst [vmem:[#allocation19_spill] sm:$0xff] %v12862_v24 }
 0x184   : > { %9970 = vmatmul.mubr.msk.f32.gmra.mrb[22].mxu0 %vm403_vm0, %v13651_v14  ;;  %v12867_v14 = vld [vmem:[%s11501_s19 + $0x2b6] sm:$0xff] }
 0x185   : > { %10474 = vmatmul.mubr.msk.f32.gmra.mrb[22].mxu1 %vm403_vm0, %v12813_v33  ;;  %9972 = vmatprep.mubr.msk.f32.mxu0 %vm403_vm0, %v13652_v41  ;;  %13662 = vst [vmem:[#allocation7_spill] sm:$0xff] %v12867_v14  ;;  %v12870_v41 = vld [vmem:[%s11501_s19 + $0x2ca] sm:$0xff] }
 0x186   : > { %10476 = vmatprep.mubr.msk.f32.mxu1 %vm403_vm0, %v12816_v31  ;;  %13663 = vst [vmem:[#allocation21_spill] sm:$0xff] %v12870_v41  ;;  %v8935_v31 = vld [vmem:[%s13525_s3 + $0x100] sm:$0xff]  ;;  %v8936_v33 = vld [vmem:[%s13525_s3 + $0x108] sm:$0xff] }
 0x188   : > { %9973 = vmatmul.mubr.msk.f32.gmra.mrb[24].mxu0 %vm403_vm0, %v13656_v8  ;;  %v12873_v8 = vld [vmem:[%s11501_s19 + $0x2ce] sm:$0xff] }
 0x189   : > { %10477 = vmatmul.mubr.msk.f32.gmra.mrb[24].mxu1 %vm403_vm0, %v12827_v35  ;;  %9975 = vmatprep.mubr.msk.f32.mxu0 %vm403_vm0, %v12830_v19  ;;  %13664 = vst [vmem:[#allocation8_spill] sm:$0xff] %v12873_v8  ;;  %v8286_v19 = vld [vmem:[%s11501_s19 + $0x144] sm:$0xff] }
 0x18a   : > { %10479 = vmatprep.mubr.msk.f32.mxu1 %vm403_vm0, %v12833_v15  ;;  %v8288_v15 = vld [vmem:[%s11501_s19 + $0x164] sm:$0xff] }
 0x18b   : > { %v8769_v35 = vld [vmem:[%s11501_s19 + $0x1e0] sm:$0xff] }
 0x18c   : > { %9976 = vmatmul.mubr.msk.f32.gmra.mrb[26].mxu0 %vm403_vm0, %v12842_v9  ;;  %v12887_v9 = vld [vmem:[%s11501_s19 + $0x2d6] sm:$0xff] }
 0x18d   : > { %10480 = vmatmul.mubr.msk.f32.gmra.mrb[26].mxu1 %vm403_vm0, %v12847_v12  ;;  %9978 = vmatprep.mubr.msk.f32.mxu0 %vm403_vm0, %v12850_v13  ;;  %v12882_v13 = vld [vmem:[%s11501_s19 + $0x2d2] sm:$0xff]  ;;  %13666 = vst [vmem:[#allocation9_spill] sm:$0xff] %v12887_v9  ;;  %v8768_v12 = vld [vmem:[%s11501_s19 + $0x1c8] sm:$0xff] }
 0x18e   : > { %10482 = vmatprep.mubr.msk.f32.mxu1 %vm403_vm0, %v12853_v27  ;;  %13665 = vst [vmem:[#allocation23_spill] sm:$0xff] %v12882_v13  ;;  %v8767_v27 = vld [vmem:[%s11501_s19 + $0x1c0] sm:$0xff] }
 0x190   : > { %9979 = vmatmul.mubr.msk.f32.gmra.mrb[28].mxu0 %vm403_vm0, %v12862_v24  ;;  %v8869_v24 = vld [vmem:[%s13525_s3 + $0xf0] sm:$0xff] }
 0x191   : > { %10483 = vmatmul.mubr.msk.f32.gmra.mrb[28].mxu1 %vm403_vm0, %v12867_v14  ;;  %9981 = vmatprep.mubr.msk.f32.mxu0 %vm403_vm0, %v12870_v41  ;;  %v8870_v41 = vld [vmem:[%s13525_s3 + $0xf8] sm:$0xff]  ;;  %v8388_v14 = vld [vmem:[%s13523_s1 + $0xf0] sm:$0xff] }
 0x192   : > { %10485 = vmatprep.mubr.msk.f32.mxu1 %vm403_vm0, %v12873_v8  ;;  %v8287_v8 = vld [vmem:[%s11501_s19 + $0x14c] sm:$0xff] }
 0x194   : > { %9982 = vmatmul.mubr.msk.f32.gmra.mrb[30].mxu0 %vm403_vm0, %v12882_v13  ;;  %v8389_v13 = vld [vmem:[%s13523_s1 + $0xf8] sm:$0xff] }
 0x195   : > { %10486 = vmatmul.mubr.msk.f32.gmra.mrb[30].mxu1 %vm403_vm0, %v12887_v9  ;;  %9992 = vmatprep.mubr.msk.f32.mxu0 %vm403_vm0, %v8286_v19  ;;  %v10834_v9 = vpack.c.bf16 %v8870_v41, %v8869_v24  ;;  %v10762_v19 = vpack.c.bf16 %v8389_v13, %v8388_v14  ;;  %v8454_v24 = vld [vmem:[%s13523_s1 + $0x100] sm:$0xff]  ;;  %v8455_v13 = vld [vmem:[%s13523_s1 + $0x108] sm:$0xff] }
 0x196   : > { %10496 = vmatprep.mubr.msk.f32.mxu1 %vm403_vm0, %v8767_v27  ;;  %v8289_v27 = vld [vmem:[%s11501_s19 + $0x16c] sm:$0xff]  ;;  %v8290_v41 = vld [vmem:[%s11501_s19 + $0x184] sm:$0xff] }
 0x197   : > { %v8770_v14 = vld [vmem:[%s11501_s19 + $0x1e8] sm:$0xff] }
 0x198   : > { %9993 = vmatmul.mubr.msk.f32.vlgmr.msra.gmra.mrb[0].mxu0 %vm403_vm0, %v8287_v8  ;;  %v8790_v8 = vld [vmem:[%s11501_s19 + $0x328] sm:$0xff] }
 0x199   : > { %10497 = vmatmul.mubr.msk.f32.vlgmr.msra.gmra.mrb[0].mxu1 %vm403_vm0, %v8768_v12  ;;  %9995 = vmatprep.mubr.msk.f32.mxu0 %vm403_vm0, %v8288_v15  ;;  %v12934_v15 = vpack.c.bf16 %v8936_v33, %v8935_v31  ;;  %v12937_v12 = vpack.c.bf16 %v8455_v13, %v8454_v24  ;;  %v8293_v33 = vld [vmem:[%s11501_s19 + $0x1ac] sm:$0xff]  ;;  %v8795_v24 = vld [vmem:[%s11501_s19 + $0x380] sm:$0xff] }
 0x19a   : > { %10833 = vmatpush3.bf16.msra.mxu1 %v12711_v25  ;;  %10499 = vmatprep.mubr.msk.f32.mxu1 %vm403_vm0, %v8769_v35  ;;  %v8291_v25 = vld [vmem:[%s11501_s19 + $0x18c] sm:$0xff]  ;;  %v8785_v35 = vld [vmem:[%s11501_s19 + $0x2e0] sm:$0xff] }
 0x19b   : > { %10761 = vmatpush3.bf16.msra.mxu0 %v12715_v28  ;;  %10835 = vmatprep.subr.bf16.mxu1 %v10834_v9  ;;  %v8292_v28 = vld [vmem:[%s11501_s19 + $0x1a4] sm:$0xff]  ;;  %v8295_v31 = vld [vmem:[%s11501_s19 + $0x1cc] sm:$0xff] }
 0x19c   : > { %9996 = vmatmul.mubr.msk.f32.gmra.mrb[2].mxu0 %vm403_vm0, %v8289_v27  ;;  %10763 = vmatprep.subr.bf16.mxu0 %v10762_v19  ;;  %v8314_v27 = vld [vmem:[%s11501_s19 + $0x304] sm:$0xff]  ;;  %v8315_v13 = vld [vmem:[%s11501_s19 + $0x30c] sm:$0xff] }
 0x19d   : > { %10500 = vmatmul.mubr.msk.f32.gmra.mrb[2].mxu1 %vm403_vm0, %v8770_v14  ;;  %9998 = vmatprep.mubr.msk.f32.mxu0 %vm403_vm0, %v8290_v41  ;;  %v8316_v14 = vld [vmem:[%s11501_s19 + $0x324] sm:$0xff] }
 0x19e   : > { %10502 = vmatprep.mubr.msk.f32.mxu1 %vm403_vm0, %v12322_v36  ;;  %10837 = vmatpush3.bf16.msra.mxu1 %v10834_v9  ;;  %v8294_v36 = vld [vmem:[%s11501_s19 + $0x1c4] sm:$0xff] }
 0x19f   : > { %10765 = vmatpush3.bf16.msra.mxu0 %v10762_v19  ;;  %10839 = vmatprep.subr.bf16.mxu1 %v12934_v15  ;;  %v8787_v9 = vld [vmem:[%s11501_s19 + $0x300] sm:$0xff] }
 0x1a0   : > { %9999 = vmatmul.mubr.msk.f32.gmra.mrb[4].mxu0 %vm403_vm0, %v8291_v25  ;;  %10767 = vmatprep.subr.bf16.mxu0 %v12937_v12  ;;  %v8793_v19 = vld [vmem:[%s11501_s19 + $0x360] sm:$0xff]  ;;  %v8317_v25 = vld [vmem:[%s11501_s19 + $0x32c] sm:$0xff] }
 0x1a1   : > { %10503 = vmatmul.mubr.msk.f32.gmra.mrb[4].mxu1 %vm403_vm0, %v12333_v38  ;;  %10001 = vmatprep.mubr.msk.f32.mxu0 %vm403_vm0, %v8292_v28  ;;  %v8296_v38 = vld [vmem:[%s11501_s19 + $0x1e4] sm:$0xff] }
 0x1a2   : > { %10505 = vmatprep.mubr.msk.f32.mxu1 %vm403_vm0, %v12336_v40  ;;  %v8297_v40 = vld [vmem:[%s11501_s19 + $0x1ec] sm:$0xff]  ;;  %v8797_v41 = vld [vmem:[%s11501_s19 + $0x3a0] sm:$0xff] }
 0x1a3   : > { %v8798_v28 = vld [vmem:[%s11501_s19 + $0x3a8] sm:$0xff] }
 0x1a4   : > { %10002 = vmatmul.mubr.msk.f32.gmra.mrb[6].mxu0 %vm403_vm0, %v8293_v33  ;;  %v8937_v33 = vld [vmem:[%s13525_s3 + $0x110] sm:$0xff] }
 0x1a5   : > { %10506 = vmatmul.mubr.msk.f32.gmra.mrb[6].mxu1 %vm403_vm0, %v12347_v42  ;;  %10004 = vmatprep.mubr.msk.f32.mxu0 %vm403_vm0, %v8294_v36  ;;  %v8298_v42 = vld [vmem:[%s11501_s19 + $0x204] sm:$0xff]  ;;  %v8938_v36 = vld [vmem:[%s13525_s3 + $0x118] sm:$0xff] }
 0x1a6   : > { %10508 = vmatprep.mubr.msk.f32.mxu1 %vm403_vm0, %v12350_v44  ;;  %v8299_v44 = vld [vmem:[%s11501_s19 + $0x20c] sm:$0xff] }
 0x1a8   : > { %10005 = vmatmul.mubr.msk.f32.gmra.mrb[8].mxu0 %vm403_vm0, %v8295_v31  ;;  %v8456_v31 = vld [vmem:[%s13523_s1 + $0x110] sm:$0xff] }
 0x1a9   : > { %10509 = vmatmul.mubr.msk.f32.gmra.mrb[8].mxu1 %vm403_vm0, %v12361_v46  ;;  %10007 = vmatprep.mubr.msk.f32.mxu0 %vm403_vm0, %v8296_v38  ;;  %v8300_v46 = vld [vmem:[%s11501_s19 + $0x224] sm:$0xff]  ;;  %v8457_v38 = vld [vmem:[%s13523_s1 + $0x118] sm:$0xff] }
 0x1aa   : > { %10511 = vmatprep.mubr.msk.f32.mxu1 %vm403_vm0, %v12364_v48  ;;  %v8301_v48 = vld [vmem:[%s11501_s19 + $0x22c] sm:$0xff] }
 0x1ac   : > { %10008 = vmatmul.mubr.msk.f32.gmra.mrb[10].mxu0 %vm403_vm0, %v8297_v40  ;;  %v10842_v40 = vpack.c.bf16 %v8938_v36, %v8937_v33  ;;  %v8927_v33 = vld [vmem:[%s11501_s19 + $0x34e] sm:$0xff] }
 0x1ad   : > { %10512 = vmatmul.mubr.msk.f32.gmra.mrb[10].mxu1 %vm403_vm0, %v12375_v50  ;;  %10010 = vmatprep.mubr.msk.f32.mxu0 %vm403_vm0, %v8298_v42  ;;  %v8302_v50 = vld [vmem:[%s11501_s19 + $0x244] sm:$0xff]  ;;  %v10770_v42 = vpack.c.bf16 %v8457_v38, %v8456_v31  ;;  %v13682_v31 = vld [vmem:[#allocation21_spill] sm:$0xff] }
 0x1ae   : > { %10514 = vmatprep.mubr.msk.f32.mxu1 %vm403_vm0, %v12381_v52  ;;  %v8303_v52 = vld [vmem:[%s11501_s19 + $0x24c] sm:$0xff]  ;;  %v8928_v38 = vld [vmem:[%s11501_s19 + $0x356] sm:$0xff] }
 0x1af   : > { %v13681_v36 = vld [vmem:[#allocation19_spill] sm:$0xff] }
 0x1b0   : > { %10011 = vmatmul.mubr.msk.f32.gmra.mrb[12].mxu0 %vm403_vm0, %v8299_v44  ;;  %v8428_v44 = vld [vmem:[%s11501_s19 + $0x1aa] sm:$0xff] }
 0x1b1   : > { %10515 = vmatmul.mubr.msk.f32.gmra.mrb[12].mxu1 %vm403_vm0, %v12395_v54  ;;  %10013 = vmatprep.mubr.msk.f32.mxu0 %vm403_vm0, %v8300_v46  ;;  %v8304_v54 = vld [vmem:[%s11501_s19 + $0x264] sm:$0xff]  ;;  %v8429_v46 = vld [vmem:[%s11501_s19 + $0x1b2] sm:$0xff] }
 0x1b2   : > { %10517 = vmatprep.mubr.msk.f32.mxu1 %vm403_vm0, %v12401_v56  ;;  %v8305_v56 = vld [vmem:[%s11501_s19 + $0x26c] sm:$0xff] }
 0x1b4   : > { %10014 = vmatmul.mubr.msk.f32.gmra.mrb[14].mxu0 %vm403_vm0, %v8301_v48  ;;  %v8430_v48 = vld [vmem:[%s11501_s19 + $0x1ca] sm:$0xff] }
 0x1b5   : > { %10518 = vmatmul.mubr.msk.f32.gmra.mrb[14].mxu1 %vm403_vm0, %v12415_v58  ;;  %10016 = vmatprep.mubr.msk.f32.mxu0 %vm403_vm0, %v8302_v50  ;;  %v8786_v58 = vld [vmem:[%s11501_s19 + $0x2e8] sm:$0xff]  ;;  %v13669_v50 = vld [vmem:[#allocation2_spill] sm:$0xff] }
 0x1b6   : > { %10520 = vmatprep.mubr.msk.f32.mxu1 %vm403_vm0, %v12421_v60  ;;  %v8788_v60 = vld [vmem:[%s11501_s19 + $0x308] sm:$0xff] }
 0x1b8   : > { %10017 = vmatmul.mubr.msk.f32.gmra.mrb[16].mxu0 %vm403_vm0, %v8303_v52  ;;  %v13670_v52 = vld [vmem:[#allocation11_spill] sm:$0xff] }
 0x1b9   : > { %10521 = vmatmul.mubr.msk.f32.gmra.mrb[16].mxu1 %vm403_vm0, %v12435_v62  ;;  %10019 = vmatprep.mubr.msk.f32.mxu0 %vm403_vm0, %v8304_v54  ;;  %v8789_v62 = vld [vmem:[%s11501_s19 + $0x320] sm:$0xff]  ;;  %v13671_v54 = vld [vmem:[#allocation3_spill] sm:$0xff] }
 0x1ba   : > { %10523 = vmatprep.mubr.msk.f32.mxu1 %vm403_vm0, %v8785_v35  ;;  %v13672_v35 = vld [vmem:[#allocation4_spill] sm:$0xff] }
 0x1bc   : > { %10020 = vmatmul.mubr.msk.f32.gmra.mrb[18].mxu0 %vm403_vm0, %v8305_v56  ;;  %v8436_v56 = vld [vmem:[%s11501_s19 + $0x22a] sm:$0xff] }
 0x1bd   : > { %10524 = vmatmul.mubr.msk.f32.gmra.mrb[18].mxu1 %vm403_vm0, %v8786_v58  ;;  %10022 = vmatprep.mubr.msk.f32.mxu0 %vm403_vm0, %v12378_v51  ;;  %v8791_v51 = vld [vmem:[%s11501_s19 + $0x340] sm:$0xff]  ;;  %v13673_v58 = vld [vmem:[#allocation5_spill] sm:$0xff] }
 0x1be   : > { %10526 = vmatprep.mubr.msk.f32.mxu1 %vm403_vm0, %v8787_v9  ;;  %v8437_v9 = vld [vmem:[%s11501_s19 + $0x232] sm:$0xff] }
 0x1c0   : > { %10023 = vmatmul.mubr.msk.f32.gmra.mrb[20].mxu0 %vm403_vm0, %v12390_v53  ;;  %v8792_v53 = vld [vmem:[%s11501_s19 + $0x348] sm:$0xff] }
 0x1c1   : > { %10527 = vmatmul.mubr.msk.f32.gmra.mrb[20].mxu1 %vm403_vm0, %v8788_v60  ;;  %10025 = vmatprep.mubr.msk.f32.mxu0 %vm403_vm0, %v12398_v55  ;;  %v8312_v55 = vld [vmem:[%s11501_s19 + $0x2e4] sm:$0xff] }
 0x1c2   : > { %10529 = vmatprep.mubr.msk.f32.mxu1 %vm403_vm0, %v8789_v62  ;;  %v13674_v60 = vld [vmem:[#allocation6_spill] sm:$0xff]  ;;  %v8438_v62 = vld [vmem:[%s11501_s19 + $0x24a] sm:$0xff] }
 0x1c4   : > { %10026 = vmatmul.mubr.msk.f32.gmra.mrb[22].mxu0 %vm403_vm0, %v12410_v57  ;;  %v8313_v57 = vld [vmem:[%s11501_s19 + $0x2ec] sm:$0xff] }
 0x1c5   : > { %10530 = vmatmul.mubr.msk.f32.gmra.mrb[22].mxu1 %vm403_vm0, %v8790_v8  ;;  %10028 = vmatprep.mubr.msk.f32.mxu0 %vm403_vm0, %v12418_v59  ;;  %v8794_v59 = vld [vmem:[%s11501_s19 + $0x368] sm:$0xff] }
 0x1c6   : > { %10532 = vmatprep.mubr.msk.f32.mxu1 %vm403_vm0, %v8791_v51  ;;  %v13675_v8 = vld [vmem:[#allocation7_spill] sm:$0xff]  ;;  %v8439_v51 = vld [vmem:[%s11501_s19 + $0x252] sm:$0xff] }
 0x1c8   : > { %10029 = vmatmul.mubr.msk.f32.gmra.mrb[24].mxu0 %vm403_vm0, %v12430_v61  ;;  %v8796_v61 = vld [vmem:[%s11501_s19 + $0x388] sm:$0xff] }
 0x1c9   : > { %10533 = vmatmul.mubr.msk.f32.gmra.mrb[24].mxu1 %vm403_vm0, %v8792_v53  ;;  %10031 = vmatprep.mubr.msk.f32.mxu0 %vm403_vm0, %v8312_v55  ;;  %v13676_v53 = vld [vmem:[#allocation8_spill] sm:$0xff] }
 0x1ca   : > { %10535 = vmatprep.mubr.msk.f32.mxu1 %vm403_vm0, %v8793_v19  ;;  %v8440_v55 = vld [vmem:[%s11501_s19 + $0x26a] sm:$0xff] }
 0x1cb   : > { %v8921_v19 = vld [vmem:[%s11501_s19 + $0x2ee] sm:$0xff] }
 0x1cc   : > { %10032 = vmatmul.mubr.msk.f32.gmra.mrb[26].mxu0 %vm403_vm0, %v8313_v57  ;;  %v13677_v57 = vld [vmem:[#allocation9_spill] sm:$0xff] }
 0x1cd   : > { %10536 = vmatmul.mubr.msk.f32.gmra.mrb[26].mxu1 %vm403_vm0, %v8794_v59  ;;  %10034 = vmatprep.mubr.msk.f32.mxu0 %vm403_vm0, %v8314_v27  ;;  %v8441_v59 = vld [vmem:[%s11501_s19 + $0x272] sm:$0xff] }
 0x1ce   : > { %10538 = vmatprep.mubr.msk.f32.mxu1 %vm403_vm0, %v8795_v24  ;;  %v8922_v27 = vld [vmem:[%s11501_s19 + $0x2f6] sm:$0xff]  ;;  %v8923_v24 = vld [vmem:[%s11501_s19 + $0x30e] sm:$0xff] }
 0x1d0   : > { %10035 = vmatmul.mubr.msk.f32.gmra.mrb[28].mxu0 %vm403_vm0, %v8315_v13  ;;  %v13678_v13 = vld [vmem:[#allocation13_spill] sm:$0xff] }
 0x1d1   : > { %10539 = vmatmul.mubr.msk.f32.gmra.mrb[28].mxu1 %vm403_vm0, %v8796_v61  ;;  %10037 = vmatprep.mubr.msk.f32.mxu0 %vm403_vm0, %v8316_v14  ;;  %v8924_v61 = vld [vmem:[%s11501_s19 + $0x316] sm:$0xff]  ;;  %v8925_v14 = vld [vmem:[%s11501_s19 + $0x32e] sm:$0xff] }
 0x1d2   : > { %10541 = vmatprep.mubr.msk.f32.mxu1 %vm403_vm0, %v8797_v41  ;;  %v13679_v41 = vld [vmem:[#allocation15_spill] sm:$0xff] }
 0x1d4   : > { %10038 = vmatmul.mubr.msk.f32.gmra.mrb[30].mxu0 %vm403_vm0, %v8317_v25  ;;  %v13680_v25 = vld [vmem:[#allocation17_spill] sm:$0xff] }
 0x1d5   : > { %10542 = vmatmul.mubr.msk.f32.gmra.mrb[30].mxu1 %vm403_vm0, %v8798_v28  ;;  %10048 = vmatprep.mubr.msk.f32.mxu0 %vm403_vm0, %v12488_v17  ;;  %v13667_v17 = vld [vmem:[#allocation35_spill] sm:$0xff]  ;;  %v8926_v28 = vld [vmem:[%s11501_s19 + $0x336] sm:$0xff] }
 0x1d6   : > { %10552 = vmatprep.mubr.msk.f32.mxu1 %vm403_vm0, %v12544_v37 }
 0x1d8   : > { %10049 = vmatmul.mubr.msk.f32.vlgmr.msra.gmra.mrb[0].mxu0 %vm403_vm0, %v12497_v20  ;;  %v8853_v20 = vld [vmem:[%s11501_s19 + $0x2e7] sm:$0xff] }
 0x1d9   : > { %10553 = vmatmul.mubr.msk.f32.vlgmr.msra.gmra.mrb[0].mxu1 %vm403_vm0, %v12553_v45  ;;  %10051 = vmatprep.mubr.msk.f32.mxu0 %vm403_vm0, %v12502_v21  ;;  %v13668_v21 = vld [vmem:[#allocation36_spill] sm:$0xff] }
 0x1da   : > { %10841 = vmatpush3.bf16.msra.mxu1 %v12934_v15  ;;  %10555 = vmatprep.mubr.msk.f32.mxu1 %vm403_vm0, %v12558_v30  ;;  %v8426_v15 = vld [vmem:[%s11501_s19 + $0x18a] sm:$0xff] }
 0x1db   : > { %10769 = vmatpush3.bf16.msra.mxu0 %v12937_v12  ;;  %10843 = vmatprep.subr.bf16.mxu1 %v10842_v40  ;;  %v8427_v12 = vld [vmem:[%s11501_s19 + $0x192] sm:$0xff] }
 0x1dc   : > { %10052 = vmatmul.mubr.msk.f32.gmra.mrb[2].mxu0 %vm403_vm0, %v12511_v39  ;;  %10771 = vmatprep.subr.bf16.mxu0 %v10770_v42  ;;  %v8854_v39 = vld [vmem:[%s11501_s19 + $0x2ef] sm:$0xff] }
 0x1dd   : > { %10556 = vmatmul.mubr.msk.f32.gmra.mrb[2].mxu1 %vm403_vm0, %v12567_v47  ;;  %10054 = vmatprep.mubr.msk.f32.mxu0 %vm403_vm0, %v12516_v43  ;;  %v8855_v43 = vld [vmem:[%s11501_s19 + $0x307] sm:$0xff] }
 0x1de   : > { %10558 = vmatprep.mubr.msk.f32.mxu1 %vm403_vm0, %v12572_v32  ;;  %10845 = vmatpush3.bf16.msra.mxu1 %v10842_v40  ;;  %v8448_v40 = vld [vmem:[%s11501_s19 + $0x2ea] sm:$0xff] }
 0x1df   : > { %10773 = vmatpush3.bf16.msra.mxu0 %v10770_v42  ;;  %v8929_v42 = vld [vmem:[%s11501_s19 + $0x36e] sm:$0xff] }
 0x1e0   : > { %10055 = vmatmul.mubr.msk.f32.gmra.mrb[4].mxu0 %vm403_vm0, %v12525_v18  ;;  %v8856_v18 = vld [vmem:[%s11501_s19 + $0x30f] sm:$0xff] }
 0x1e1   : > { %10559 = vmatmul.mubr.msk.f32.gmra.mrb[4].mxu1 %vm403_vm0, %v12581_v49  ;;  %10057 = vmatprep.mubr.msk.f32.mxu0 %vm403_vm0, %v12530_v23  ;;  %v8857_v23 = vld [vmem:[%s11501_s19 + $0x327] sm:$0xff] }
 0x1e2   : > { %10561 = vmatprep.mubr.msk.f32.mxu1 %vm403_vm0, %v12586_v34 }
 0x1e4   : > { %10058 = vmatmul.mubr.msk.f32.gmra.mrb[6].mxu0 %vm403_vm0, %v12539_v29  ;;  %v8858_v29 = vld [vmem:[%s11501_s19 + $0x32f] sm:$0xff] }
 0x1e5   : > { %10562 = vmatmul.mubr.msk.f32.gmra.mrb[6].mxu1 %vm403_vm0, %v12595_v63  ;;  %10060 = vmatprep.mubr.msk.f32.mxu0 %vm403_vm0, %v12544_v37  ;;  %v8859_v37 = vld [vmem:[%s11501_s19 + $0x347] sm:$0xff] }
 0x1e6   : > { %10564 = vmatprep.mubr.msk.f32.mxu1 %vm403_vm0, %v12600_v0 }
 0x1e8   : > { %10061 = vmatmul.mubr.msk.f32.gmra.mrb[8].mxu0 %vm403_vm0, %v12553_v45  ;;  %v8860_v45 = vld [vmem:[%s11501_s19 + $0x34f] sm:$0xff] }
 0x1e9   : > { %10565 = vmatmul.mubr.msk.f32.gmra.mrb[8].mxu1 %vm403_vm0, %v12609_v1  ;;  %10063 = vmatprep.mubr.msk.f32.mxu0 %vm403_vm0, %v12558_v30  ;;  %v8861_v30 = vld [vmem:[%s11501_s19 + $0x367] sm:$0xff] }
 0x1ea   : > { %10567 = vmatprep.mubr.msk.f32.mxu1 %vm403_vm0, %v12614_v2 }
 0x1ec   : > { %10064 = vmatmul.mubr.msk.f32.gmra.mrb[10].mxu0 %vm403_vm0, %v12567_v47  ;;  %v8862_v47 = vld [vmem:[%s11501_s19 + $0x36f] sm:$0xff] }
 0x1ed   : > { %10568 = vmatmul.mubr.msk.f32.gmra.mrb[10].mxu1 %vm403_vm0, %v12623_v3  ;;  %10066 = vmatprep.mubr.msk.f32.mxu0 %vm403_vm0, %v12572_v32  ;;  %v8863_v32 = vld [vmem:[%s11501_s19 + $0x387] sm:$0xff] }
 0x1ee   : > { %10570 = vmatprep.mubr.msk.f32.mxu1 %vm403_vm0, %v12628_v4 }
 0x1f0   : > { %10067 = vmatmul.mubr.msk.f32.gmra.mrb[12].mxu0 %vm403_vm0, %v12581_v49  ;;  %v8864_v49 = vld [vmem:[%s11501_s19 + $0x38f] sm:$0xff] }
 0x1f1   : > { %10571 = vmatmul.mubr.msk.f32.gmra.mrb[12].mxu1 %vm403_vm0, %v12637_v5  ;;  %10069 = vmatprep.mubr.msk.f32.mxu0 %vm403_vm0, %v12586_v34  ;;  %v8865_v34 = vld [vmem:[%s11501_s19 + $0x3a7] sm:$0xff] }
 0x1f2   : > { %10573 = vmatprep.mubr.msk.f32.mxu1 %vm403_vm0, %v12642_v6 }
 0x1f4   : > { %10070 = vmatmul.mubr.msk.f32.gmra.mrb[14].mxu0 %vm403_vm0, %v12595_v63  ;;  %v8866_v63 = vld [vmem:[%s11501_s19 + $0x3af] sm:$0xff] }
 0x1f5   : > { %10574 = vmatmul.mubr.msk.f32.gmra.mrb[14].mxu1 %vm403_vm0, %v12651_v7  ;;  %10072 = vmatprep.mubr.msk.f32.mxu0 %vm403_vm0, %v12600_v0  ;;  %v8422_v0 = vld [vmem:[%s11501_s19 + $0x14a] sm:$0xff] }
 0x1f6   : > { %10576 = vmatprep.mubr.msk.f32.mxu1 %vm403_vm0, %v13667_v17 }
 0x1f8   : > { %10073 = vmatmul.mubr.msk.f32.gmra.mrb[16].mxu0 %vm403_vm0, %v12609_v1  ;;  %v8903_v1 = vld [vmem:[%s11501_s19 + $0x1ce] sm:$0xff] }
 0x1f9   : > { %10577 = vmatmul.mubr.msk.f32.gmra.mrb[16].mxu1 %vm403_vm0, %v13668_v21  ;;  %10075 = vmatprep.mubr.msk.f32.mxu0 %vm403_vm0, %v12614_v2  ;;  %v8423_v2 = vld [vmem:[%s11501_s19 + $0x152] sm:$0xff] }
 0x1fa   : > { %10579 = vmatprep.mubr.msk.f32.mxu1 %vm403_vm0, %v8853_v20 }
 0x1fc   : > { %10076 = vmatmul.mubr.msk.f32.gmra.mrb[18].mxu0 %vm403_vm0, %v12623_v3  ;;  %v8904_v3 = vld [vmem:[%s11501_s19 + $0x1d6] sm:$0xff] }
 0x1fd   : > { %10580 = vmatmul.mubr.msk.f32.gmra.mrb[18].mxu1 %vm403_vm0, %v8854_v39  ;;  %10078 = vmatprep.mubr.msk.f32.mxu0 %vm403_vm0, %v12628_v4  ;;  %v8424_v4 = vld [vmem:[%s11501_s19 + $0x16a] sm:$0xff] }
 0x1fe   : > { %10582 = vmatprep.mubr.msk.f32.mxu1 %vm403_vm0, %v8855_v43 }
 0x200   : > { %10079 = vmatmul.mubr.msk.f32.gmra.mrb[20].mxu0 %vm403_vm0, %v12637_v5  ;;  %v8905_v5 = vld [vmem:[%s11501_s19 + $0x1ee] sm:$0xff] }
 0x201   : > { %10583 = vmatmul.mubr.msk.f32.gmra.mrb[20].mxu1 %vm403_vm0, %v8856_v18  ;;  %10081 = vmatprep.mubr.msk.f32.mxu0 %vm403_vm0, %v12642_v6  ;;  %v8425_v6 = vld [vmem:[%s11501_s19 + $0x172] sm:$0xff] }
 0x202   : > { %10585 = vmatprep.mubr.msk.f32.mxu1 %vm403_vm0, %v8857_v23 }
 0x204   : > { %10082 = vmatmul.mubr.msk.f32.gmra.mrb[22].mxu0 %vm403_vm0, %v12651_v7  ;;  %v8906_v7 = vld [vmem:[%s11501_s19 + $0x1f6] sm:$0xff] }
 0x205   : > { %10586 = vmatmul.mubr.msk.f32.gmra.mrb[22].mxu1 %vm403_vm0, %v8858_v29  ;;  %10084 = vmatprep.mubr.msk.f32.mxu0 %vm403_vm0, %v13667_v17  ;;  %v13683_v17 = vld [vmem:[#allocation23_spill] sm:$0xff] }
 0x206   : > { %10588 = vmatprep.mubr.msk.f32.mxu1 %vm403_vm0, %v8859_v37  ;;  %v8933_v37 = vld [vmem:[%s11501_s19 + $0x3ae] sm:$0xff] }
 0x208   : > { %10085 = vmatmul.mubr.msk.f32.gmra.mrb[24].mxu0 %vm403_vm0, %v13668_v21  ;;  %v8930_v21 = vld [vmem:[%s11501_s19 + $0x376] sm:$0xff] }
 0x209   : > { %10589 = vmatmul.mubr.msk.f32.gmra.mrb[24].mxu1 %vm403_vm0, %v8860_v45  ;;  %10087 = vmatprep.mubr.msk.f32.mxu0 %vm403_vm0, %v8853_v20  ;;  %v8449_v20 = vld [vmem:[%s11501_s19 + $0x2f2] sm:$0xff] }
 0x20a   : > { %10591 = vmatprep.mubr.msk.f32.mxu1 %vm403_vm0, %v8861_v30  ;;  %v8453_v45 = vld [vmem:[%s11501_s19 + $0x332] sm:$0xff] }
 0x20b   : > { %v8934_v30 = vld [vmem:[%s11501_s19 + $0x3b6] sm:$0xff] }
 0x20c   : > { %10088 = vmatmul.mubr.msk.f32.gmra.mrb[26].mxu0 %vm403_vm0, %v8854_v39  ;;  %v8450_v39 = vld [vmem:[%s11501_s19 + $0x30a] sm:$0xff] }
 0x20d   : > { %10592 = vmatmul.mubr.msk.f32.gmra.mrb[26].mxu1 %vm403_vm0, %v8862_v47  ;;  %10090 = vmatprep.mubr.msk.f32.mxu0 %vm403_vm0, %v8855_v43  ;;  %v8931_v43 = vld [vmem:[%s11501_s19 + $0x38e] sm:$0xff]  ;;  %v13320_v47 = vld [vmem:[%s13527_s5] sm:$0xff] }
 0x20e   : > { %10594 = vmatprep.mubr.msk.f32.mxu1 %vm403_vm0, %v8863_v32  ;;  %v11398_v32 = vmov 0.0  }
 0x20f   : > { %10656 = vmatprep.subr.mxu0 %v11398_v32 }
 0x210   : > { %10091 = vmatmul.mubr.msk.f32.gmra.mrb[28].mxu0 %vm403_vm0, %v8856_v18  ;;  %v8451_v18 = vld [vmem:[%s11501_s19 + $0x312] sm:$0xff] }
 0x211   : > { %10595 = vmatmul.mubr.msk.f32.gmra.mrb[28].mxu1 %vm403_vm0, %v8864_v49  ;;  %10093 = vmatprep.mubr.msk.f32.mxu0 %vm403_vm0, %v8857_v23  ;;  %v8932_v23 = vld [vmem:[%s11501_s19 + $0x396] sm:$0xff]  ;;  %v7454_v49 = vld [vmem:[%s13528_s6] sm:$0xff] }
 0x212   : > { %10597 = vmatprep.mubr.msk.f32.mxu1 %vm403_vm0, %v8865_v34  ;;  %v7455_v34 = vld [vmem:[%s13528_s6 + $0x8] sm:$0xff] }
 0x214   : > { %10094 = vmatmul.mubr.msk.f32.gmra.mrb[30].mxu0 %vm403_vm0, %v8858_v29  ;;  %v8452_v29 = vld [vmem:[%s11501_s19 + $0x32a] sm:$0xff] }
 0x215   : > { %10598 = vmatmul.mubr.msk.f32.gmra.mrb[30].mxu1 %vm403_vm0, %v8866_v63  ;;  %10104 = vmatprep.mubr.msk.f32.mxu0 %vm403_vm0, %v8422_v0  ;;  %v7456_v63 = vld [vmem:[%s13528_s6 + $0x10] sm:$0xff]  ;;  %v11400_v0 = vmov 0.0|0.0  }
 0x216   : > { %10608 = vmatprep.mubr.msk.f32.mxu1 %vm403_vm0, %v8903_v1  ;;  %10846 = vmatprep.subr.bf16.mxu1 %v11400_v0  ;;  %v13339_v1 = vpack.c.bf16 %v7455_v34, %v7454_v49 }
 0x218   : > { %10105 = vmatmul.mubr.msk.f32.vlgmr.msra.gmra.mrb[0].mxu0 %vm403_vm0, %v8423_v2  ;;  %v7457_v2 = vld [vmem:[%s13528_s6 + $0x18] sm:$0xff] }
 0x219   : > { %10609 = vmatmul.mubr.msk.f32.vlgmr.msra.gmra.mrb[0].mxu1 %vm403_vm0, %v8904_v3  ;;  %10107 = vmatprep.mubr.msk.f32.mxu0 %vm403_vm0, %v8424_v4  ;;  %v13345_v3 = vpack.c.bf16 %v7457_v2, %v7456_v63  ;;  %v13353_v4 = vld [vmem:[%s13524_s2] ss:$0 sm:$0xff] }
 0x21a   : > { %10611 = vmatprep.mubr.msk.f32.mxu1 %vm403_vm0, %v8905_v5  ;;  %10657 = vmatpush3.msra.mxu0 %v13320_v47  ;;  %v13358_v5 = vld [vmem:[%s13526_s4] ss:$0 sm:$0xff] }
 0x21b   : > { %10672 = vmatprep.subr.mxu0 %v11398_v32  ;;  %10848 = vmatpush3.bf16.msra.mxu1 %v13339_v1 }
 0x21c   : > { %10108 = vmatmul.mubr.msk.f32.gmra.mrb[2].mxu0 %vm403_vm0, %v8425_v6  ;;  %10849 = vmatprep.subr.bf16.mxu1 %v11400_v0 }
 0x21d   : > { %10612 = vmatmul.mubr.msk.f32.gmra.mrb[2].mxu1 %vm403_vm0, %v8906_v7  ;;  %10110 = vmatprep.mubr.msk.f32.mxu0 %vm403_vm0, %v8426_v15 }
 0x21e   : > { %10614 = vmatprep.mubr.msk.f32.mxu1 %vm403_vm0, %v12774_v26  ;;  %v8431_v26 = vld [vmem:[%s11501_s19 + $0x1d2] sm:$0xff] }
 0x21f   : > { %10851 = vmatpush3.bf16.msra.mxu1 %v13345_v3 }
 0x220   : > { %10111 = vmatmul.mubr.msk.f32.gmra.mrb[4].mxu0 %vm403_vm0, %v8427_v12  ;;  %10852 = vmatprep.subr.bf16.mxu1 %v11400_v0 }
 0x221   : > { %10615 = vmatmul.mubr.msk.f32.gmra.mrb[4].mxu1 %vm403_vm0, %v12785_v10  ;;  %10113 = vmatprep.mubr.msk.f32.mxu0 %vm403_vm0, %v8428_v44  ;;  %v8432_v10 = vld [vmem:[%s11501_s19 + $0x1ea] sm:$0xff] }
 0x222   : > { %10617 = vmatprep.mubr.msk.f32.mxu1 %vm403_vm0, %v12788_v11  ;;  %v8433_v11 = vld [vmem:[%s11501_s19 + $0x1f2] sm:$0xff] }
 0x224   : > { %10114 = vmatmul.mubr.msk.f32.gmra.mrb[6].mxu0 %vm403_vm0, %v8429_v46 }
 0x225   : > { %10618 = vmatmul.mubr.msk.f32.gmra.mrb[6].mxu1 %vm403_vm0, %v12799_v16  ;;  %10116 = vmatprep.mubr.msk.f32.mxu0 %vm403_vm0, %v8430_v48  ;;  %v8434_v16 = vld [vmem:[%s11501_s19 + $0x20a] sm:$0xff] }
 0x226   : > { %10620 = vmatprep.mubr.msk.f32.mxu1 %vm403_vm0, %v12802_v22  ;;  %v8435_v22 = vld [vmem:[%s11501_s19 + $0x212] sm:$0xff] }
 0x228   : > { %10117 = vmatmul.mubr.msk.f32.gmra.mrb[8].mxu0 %vm403_vm0, %v8431_v26 }
 0x229   : > { %10621 = vmatmul.mubr.msk.f32.gmra.mrb[8].mxu1 %vm403_vm0, %v13669_v50  ;;  %10119 = vmatprep.mubr.msk.f32.mxu0 %vm403_vm0, %v8432_v10 }
 0x22a   : > { %10623 = vmatprep.mubr.msk.f32.mxu1 %vm403_vm0, %v13670_v52 }
 0x22c   : > { %10120 = vmatmul.mubr.msk.f32.gmra.mrb[10].mxu0 %vm403_vm0, %v8433_v11 }
 0x22d   : > { %10624 = vmatmul.mubr.msk.f32.gmra.mrb[10].mxu1 %vm403_vm0, %v13671_v54  ;;  %10122 = vmatprep.mubr.msk.f32.mxu0 %vm403_vm0, %v8434_v16 }
 0x22e   : > { %10626 = vmatprep.mubr.msk.f32.mxu1 %vm403_vm0, %v13672_v35 }
 0x230   : > { %10123 = vmatmul.mubr.msk.f32.gmra.mrb[12].mxu0 %vm403_vm0, %v8435_v22 }
 0x231   : > { %10627 = vmatmul.mubr.msk.f32.gmra.mrb[12].mxu1 %vm403_vm0, %v13673_v58  ;;  %10125 = vmatprep.mubr.msk.f32.mxu0 %vm403_vm0, %v8436_v56 }
 0x232   : > { %10629 = vmatprep.mubr.msk.f32.mxu1 %vm403_vm0, %v13674_v60 }
 0x234   : > { %10126 = vmatmul.mubr.msk.f32.gmra.mrb[14].mxu0 %vm403_vm0, %v8437_v9 }
 0x235   : > { %10630 = vmatmul.mubr.msk.f32.gmra.mrb[14].mxu1 %vm403_vm0, %v13675_v8  ;;  %10128 = vmatprep.mubr.msk.f32.mxu0 %vm403_vm0, %v8438_v62 }
 0x236   : > { %10632 = vmatprep.mubr.msk.f32.mxu1 %vm403_vm0, %v13676_v53 }
 0x238   : > { %10129 = vmatmul.mubr.msk.f32.gmra.mrb[16].mxu0 %vm403_vm0, %v8439_v51 }
 0x239   : > { %10633 = vmatmul.mubr.msk.f32.gmra.mrb[16].mxu1 %vm403_vm0, %v13677_v57  ;;  %10131 = vmatprep.mubr.msk.f32.mxu0 %vm403_vm0, %v8440_v55 }
 0x23a   : > { %10635 = vmatprep.mubr.msk.f32.mxu1 %vm403_vm0, %v8921_v19 }
 0x23c   : > { %10132 = vmatmul.mubr.msk.f32.gmra.mrb[18].mxu0 %vm403_vm0, %v8441_v59 }
 0x23d   : > { %10636 = vmatmul.mubr.msk.f32.gmra.mrb[18].mxu1 %vm403_vm0, %v8922_v27  ;;  %10134 = vmatprep.mubr.msk.f32.mxu0 %vm403_vm0, %v13678_v13 }
 0x23e   : > { %10638 = vmatprep.mubr.msk.f32.mxu1 %vm403_vm0, %v8923_v24 }
 0x240   : > { %10135 = vmatmul.mubr.msk.f32.gmra.mrb[20].mxu0 %vm403_vm0, %v13679_v41 }
 0x241   : > { %10639 = vmatmul.mubr.msk.f32.gmra.mrb[20].mxu1 %vm403_vm0, %v8924_v61  ;;  %10137 = vmatprep.mubr.msk.f32.mxu0 %vm403_vm0, %v13680_v25 }
 0x242   : > { %10641 = vmatprep.mubr.msk.f32.mxu1 %vm403_vm0, %v8925_v14 }
 0x244   : > { %10138 = vmatmul.mubr.msk.f32.gmra.mrb[22].mxu0 %vm403_vm0, %v13681_v36 }
 0x245   : > { %10642 = vmatmul.mubr.msk.f32.gmra.mrb[22].mxu1 %vm403_vm0, %v8926_v28  ;;  %10140 = vmatprep.mubr.msk.f32.mxu0 %vm403_vm0, %v13682_v31 }
 0x246   : > { %10644 = vmatprep.mubr.msk.f32.mxu1 %vm403_vm0, %v8927_v33 }
 0x248   : > { %10141 = vmatmul.mubr.msk.f32.gmra.mrb[24].mxu0 %vm403_vm0, %v13683_v17 }
 0x249   : > { %10645 = vmatmul.mubr.msk.f32.gmra.mrb[24].mxu1 %vm403_vm0, %v8928_v38  ;;  %10143 = vmatprep.mubr.msk.f32.mxu0 %vm403_vm0, %v8448_v40 }
 0x24a   : > { %10647 = vmatprep.mubr.msk.f32.mxu1 %vm403_vm0, %v8929_v42 }
 0x24c   : > { %10144 = vmatmul.mubr.msk.f32.gmra.mrb[26].mxu0 %vm403_vm0, %v8449_v20 }
 0x24d   : > { %10648 = vmatmul.mubr.msk.f32.gmra.mrb[26].mxu1 %vm403_vm0, %v8930_v21  ;;  %10146 = vmatprep.mubr.msk.f32.mxu0 %vm403_vm0, %v8450_v39 }
 0x24e   : > { %10650 = vmatprep.mubr.msk.f32.mxu1 %vm403_vm0, %v8931_v43 }
 0x250   : > { %10147 = vmatmul.mubr.msk.f32.gmra.mrb[28].mxu0 %vm403_vm0, %v8451_v18 }
 0x251   : > { %10651 = vmatmul.mubr.msk.f32.gmra.mrb[28].mxu1 %vm403_vm0, %v8932_v23  ;;  %10149 = vmatprep.mubr.msk.f32.mxu0 %vm403_vm0, %v8452_v29 }
 0x252   : > { %10653 = vmatprep.mubr.msk.f32.mxu1 %vm403_vm0, %v8933_v37 }
 0x254   : > { %10150 = vmatmul.mubr.msk.f32.gmra.mrb[30].mxu0 %vm403_vm0, %v8453_v45 }
 0x255   : > { %10654 = vmatmul.mubr.msk.f32.gmra.mrb[30].mxu1 %vm403_vm0, %v8934_v30  ;;  %10658 = vmatprep.mubr.msk.f32.mxu0 %vm11399_vm1, %v11398_v32 }
 0x256   : > { %10669 = vmatprep.mubr.msk.f32.mxu1 %vm11399_vm1, %v11398_v32 }
 0x2eb   : > { %v10106_v6 = vpop.f32.mrb[0].mxu0 }
 0x2ec   : > { %v3786_v7 = vadd.f32 %v10106_v6, %v13353_v4  ;;  %v10610_v15 = vpop.f32.mrb[0].mxu1  ;;  %v3587_v12 = vpop.f32.mrb[1].mxu0 }
 0x2ed   : > { %v7247_v44 = vadd.f32 %v10610_v15, %v13358_v5  ;;  %v3785_v46 = vadd.f32 %v13353_v4, %v3587_v12  ;;  %v7048_v48 = vpop.f32.mrb[1].mxu1 }
 0x2ee   : > { %v3818_v26 = vmax.f32 %v3786_v7, 0.0  ;;  %v7246_v10 = vadd.f32 %v13358_v5, %v7048_v48 }
 0x2ef   : > { %v7279_v50 = vmax.f32 %v7247_v44, 0.0  ;;  %v3817_v11 = vmax.f32 %v3785_v46, 0.0  ;;  %v10109_v52 = vpop.f32.mrb[2].mxu0 }
 0x2f0   : > { %v3851_v16 = vsel %vm3849_vm2, %v3818_v26, 0.0  ;;  %v7278_v54 = vmax.f32 %v7246_v10, 0.0  ;;  %v3788_v22 = vadd.f32 %v10109_v52, %v13353_v4  ;;  %v10613_v35 = vpop.f32.mrb[2].mxu1  ;;  %v3597_v56 = vpop.f32.mrb[3].mxu0 }
 0x2f1   : > { %v7311_v58 = vsel %vm3849_vm2, %v7279_v50, 0.0  ;;  %v3850_v9 = vsel %vm3849_vm2, %v3817_v11, 0.0  ;;  %v7249_v60 = vadd.f32 %v10613_v35, %v13358_v5  ;;  %v3787_v62 = vadd.f32 %v13353_v4, %v3597_v56  ;;  %v7058_v8 = vpop.f32.mrb[3].mxu1 }
 0x2f2   : > { %v3852_v51 = vadd.f32 %v3851_v16, %v3850_v9  ;;  %v7310_v53 = vsel %vm3849_vm2, %v7278_v54, 0.0  ;;  %v7248_v55 = vadd.f32 %v13358_v5, %v7058_v8  ;;  %v3820_v57 = vmax.f32 %v3788_v22, 0.0 }
 0x2f3   : > { %v7312_v19 = vadd.f32 %v7311_v58, %v7310_v53  ;;  %v3819_v59 = vmax.f32 %v3787_v62, 0.0  ;;  %v10112_v27 = vpop.f32.mrb[4].mxu0  ;;  %v7281_v24 = vmax.f32 %v7249_v60, 0.0 }
 0x2f4   : > { %v7280_v13 = vmax.f32 %v7248_v55, 0.0  ;;  %v3790_v61 = vadd.f32 %v10112_v27, %v13353_v4  ;;  %v10616_v14 = vpop.f32.mrb[4].mxu1  ;;  %v3607_v41 = vpop.f32.mrb[5].mxu0  ;;  %v3855_v17 = vsel %vm3849_vm2, %v3820_v57, 0.0 }
 0x2f5   : > { %v3853_v25 = vsel %vm3849_vm2, %v3819_v59, 0.0  ;;  %v7251_v28 = vadd.f32 %v10616_v14, %v13358_v5  ;;  %v3789_v33 = vadd.f32 %v13353_v4, %v3607_v41  ;;  %v7068_v36 = vpop.f32.mrb[5].mxu1  ;;  %v7315_v18 = vsel %vm3849_vm2, %v7281_v24, 0.0 }
 0x2f6   : > { %v3854_v31 = vadd.f32 %v3853_v25, %v3852_v51  ;;  %v7313_v38 = vsel %vm3849_vm2, %v7280_v13, 0.0  ;;  %v3822_v40 = vmax.f32 %v3790_v61, 0.0  ;;  %v7250_v42 = vadd.f32 %v13358_v5, %v7068_v36 }
 0x2f7   : > { %v7314_v20 = vadd.f32 %v7313_v38, %v7312_v19  ;;  %v7283_v21 = vmax.f32 %v7251_v28, 0.0  ;;  %v3821_v39 = vmax.f32 %v3789_v33, 0.0  ;;  %v10115_v43 = vpop.f32.mrb[6].mxu0 }
 0x2f8   : > { %v3856_v23 = vadd.f32 %v3855_v17, %v3854_v31  ;;  %v7282_v29 = vmax.f32 %v7250_v42, 0.0  ;;  %v3792_v37 = vadd.f32 %v10115_v43, %v13353_v4  ;;  %v10619_v45 = vpop.f32.mrb[6].mxu1  ;;  %v3617_v30 = vpop.f32.mrb[7].mxu0  ;;  %v3859_v6 = vsel %vm3849_vm2, %v3822_v40, 0.0 }
 0x2f9   : > { %v3857_v49 = vsel %vm3849_vm2, %v3821_v39, 0.0  ;;  %v7316_v34 = vadd.f32 %v7315_v18, %v7314_v20  ;;  %v7253_v63 = vadd.f32 %v10619_v45, %v13358_v5  ;;  %v7078_v2 = vpop.f32.mrb[7].mxu1  ;;  %v3791_v12 = vadd.f32 %v13353_v4, %v3617_v30 }
 0x2fa   : > { %v3858_v7 = vadd.f32 %v3857_v49, %v3856_v23  ;;  %v7317_v15 = vsel %vm3849_vm2, %v7282_v29, 0.0  ;;  %v7319_v44 = vsel %vm3849_vm2, %v7283_v21, 0.0  ;;  %v3824_v48 = vmax.f32 %v3792_v37, 0.0 }
 0x2fb   : > { %v7318_v46 = vadd.f32 %v7317_v15, %v7316_v34  ;;  %v7252_v26 = vadd.f32 %v13358_v5, %v7078_v2  ;;  %v10118_v10 = vpop.f32.mrb[8].mxu0  ;;  %v7285_v50 = vmax.f32 %v7253_v63, 0.0  ;;  %v3823_v11 = vmax.f32 %v3791_v12, 0.0 }
 0x2fc   : > { %v3860_v52 = vadd.f32 %v3859_v6, %v3858_v7  ;;  %v3794_v16 = vadd.f32 %v10118_v10, %v13353_v4  ;;  %v10622_v54 = vpop.f32.mrb[8].mxu1  ;;  %v3627_v22 = vpop.f32.mrb[9].mxu0  ;;  %v3863_v51 = vsel %vm3849_vm2, %v3824_v48, 0.0 }
 0x2fd   : > { %v7284_v35 = vmax.f32 %v7252_v26, 0.0  ;;  %v7320_v56 = vadd.f32 %v7319_v44, %v7318_v46  ;;  %v7255_v58 = vadd.f32 %v10622_v54, %v13358_v5  ;;  %v7088_v9 = vpop.f32.mrb[9].mxu1  ;;  %v3861_v60 = vsel %vm3849_vm2, %v3823_v11, 0.0 }
 0x2fe   : > { %v3793_v62 = vadd.f32 %v13353_v4, %v3627_v22  ;;  %v7254_v8 = vadd.f32 %v13358_v5, %v7088_v9  ;;  %v3862_v53 = vadd.f32 %v3861_v60, %v3860_v52  ;;  %v3826_v19 = vmax.f32 %v3794_v16, 0.0 }
 0x2ff   : > { %v7321_v55 = vsel %vm3849_vm2, %v7284_v35, 0.0  ;;  %v10121_v57 = vpop.f32.mrb[10].mxu0  ;;  %v7323_v59 = vsel %vm3849_vm2, %v7285_v50, 0.0  ;;  %v7287_v41 = vmax.f32 %v7255_v58, 0.0 }
 0x300   : > { %v7322_v27 = vadd.f32 %v7321_v55, %v7320_v56  ;;  %v3825_v24 = vmax.f32 %v3793_v62, 0.0  ;;  %v7286_v13 = vmax.f32 %v7254_v8, 0.0  ;;  %v10625_v61 = vpop.f32.mrb[10].mxu1  ;;  %v3637_v14 = vpop.f32.mrb[11].mxu0  ;;  %v3864_v25 = vadd.f32 %v3863_v51, %v3862_v53 }
 0x301   : > { %v3796_v28 = vadd.f32 %v10121_v57, %v13353_v4  ;;  %v7257_v33 = vadd.f32 %v10625_v61, %v13358_v5  ;;  %v7098_v36 = vpop.f32.mrb[11].mxu1  ;;  %v3795_v42 = vadd.f32 %v13353_v4, %v3637_v14  ;;  %v3867_v17 = vsel %vm3849_vm2, %v3826_v19, 0.0 }
 0x302   : > { %v3865_v31 = vsel %vm3849_vm2, %v3825_v24, 0.0  ;;  %v7324_v38 = vadd.f32 %v7323_v59, %v7322_v27  ;;  %v7325_v40 = vsel %vm3849_vm2, %v7286_v13, 0.0  ;;  %v7256_v39 = vadd.f32 %v13358_v5, %v7098_v36 }
 0x303   : > { %v3866_v20 = vadd.f32 %v3865_v31, %v3864_v25  ;;  %v3828_v21 = vmax.f32 %v3796_v28, 0.0  ;;  %v10124_v43 = vpop.f32.mrb[12].mxu0  ;;  %v7289_v23 = vmax.f32 %v7257_v33, 0.0  ;;  %v3827_v29 = vmax.f32 %v3795_v42, 0.0 }
 0x304   : > { %v7326_v18 = vadd.f32 %v7325_v40, %v7324_v38  ;;  %v3798_v37 = vadd.f32 %v10124_v43, %v13353_v4  ;;  %v10628_v45 = vpop.f32.mrb[12].mxu1  ;;  %v3647_v30 = vpop.f32.mrb[13].mxu0  ;;  %v7327_v49 = vsel %vm3849_vm2, %v7287_v41, 0.0  ;;  %v7288_v2 = vmax.f32 %v7256_v39, 0.0 }
 0x305   : > { %v3871_v34 = vsel %vm3849_vm2, %v3828_v21, 0.0  ;;  %v3868_v63 = vadd.f32 %v3867_v17, %v3866_v20  ;;  %v7108_v6 = vpop.f32.mrb[13].mxu1  ;;  %v3869_v7 = vsel %vm3849_vm2, %v3827_v29, 0.0  ;;  %v7259_v44 = vadd.f32 %v10628_v45, %v13358_v5 }
 0x306   : > { %v7328_v15 = vadd.f32 %v7327_v49, %v7326_v18  ;;  %v3830_v12 = vmax.f32 %v3798_v37, 0.0  ;;  %v7329_v48 = vsel %vm3849_vm2, %v7288_v2, 0.0  ;;  %v3797_v26 = vadd.f32 %v13353_v4, %v3647_v30 }
 0x307   : > { %v3870_v46 = vadd.f32 %v3869_v7, %v3868_v63  ;;  %v7258_v10 = vadd.f32 %v13358_v5, %v7108_v6  ;;  %v10127_v50 = vpop.f32.mrb[14].mxu0  ;;  %v7331_v11 = vsel %vm3849_vm2, %v7289_v23, 0.0  ;;  %v7291_v16 = vmax.f32 %v7259_v44, 0.0 }
 0x308   : > { %v7330_v52 = vadd.f32 %v7329_v48, %v7328_v15  ;;  %v3800_v54 = vadd.f32 %v10127_v50, %v13353_v4  ;;  %v10631_v22 = vpop.f32.mrb[14].mxu1  ;;  %v3657_v35 = vpop.f32.mrb[15].mxu0  ;;  %v3829_v56 = vmax.f32 %v3797_v26, 0.0  ;;  %v3875_v8 = vsel %vm3849_vm2, %v3830_v12, 0.0 }
 0x309   : > { %v3872_v58 = vadd.f32 %v3871_v34, %v3870_v46  ;;  %v7290_v9 = vmax.f32 %v7258_v10, 0.0  ;;  %v7261_v60 = vadd.f32 %v10631_v22, %v13358_v5  ;;  %v7118_v62 = vpop.f32.mrb[15].mxu1  ;;  %v3799_v53 = vadd.f32 %v13353_v4, %v3657_v35 }
 0x30a   : > { %v7332_v51 = vadd.f32 %v7331_v11, %v7330_v52  ;;  %v3873_v55 = vsel %vm3849_vm2, %v3829_v56, 0.0  ;;  %v3832_v57 = vmax.f32 %v3800_v54, 0.0  ;;  %v7260_v59 = vadd.f32 %v13358_v5, %v7118_v62 }
 0x30b   : > { %v7333_v19 = vsel %vm3849_vm2, %v7290_v9, 0.0  ;;  %v10130_v27 = vpop.f32.mrb[16].mxu0  ;;  %v7335_v24 = vsel %vm3849_vm2, %v7291_v16, 0.0  ;;  %v3874_v13 = vadd.f32 %v3873_v55, %v3872_v58  ;;  %v3831_v14 = vmax.f32 %v3799_v53, 0.0 }
 0x30c   : > { %v7334_v61 = vadd.f32 %v7333_v19, %v7332_v51  ;;  %v10634_v41 = vpop.f32.mrb[16].mxu1  ;;  %v3667_v25 = vpop.f32.mrb[17].mxu0  ;;  %v7293_v28 = vmax.f32 %v7261_v60, 0.0  ;;  %v7292_v33 = vmax.f32 %v7260_v59, 0.0  ;;  %v3802_v36 = vadd.f32 %v10130_v27, %v13353_v4 }
 0x30d   : > { %v7263_v31 = vadd.f32 %v10634_v41, %v13358_v5  ;;  %v7128_v38 = vpop.f32.mrb[17].mxu1  ;;  %v3876_v40 = vadd.f32 %v3875_v8, %v3874_v13  ;;  %v3877_v42 = vsel %vm3849_vm2, %v3831_v14, 0.0  ;;  %v3801_v20 = vadd.f32 %v13353_v4, %v3667_v25 }
 0x30e   : > { %v7336_v17 = vadd.f32 %v7335_v24, %v7334_v61  ;;  %v3879_v21 = vsel %vm3849_vm2, %v3832_v57, 0.0  ;;  %v7337_v39 = vsel %vm3849_vm2, %v7292_v33, 0.0  ;;  %v3834_v43 = vmax.f32 %v3802_v36, 0.0 }
 0x30f   : > { %v7262_v18 = vadd.f32 %v13358_v5, %v7128_v38  ;;  %v10133_v23 = vpop.f32.mrb[18].mxu0  ;;  %v3878_v29 = vadd.f32 %v3877_v42, %v3876_v40  ;;  %v3833_v45 = vmax.f32 %v3801_v20, 0.0  ;;  %v7339_v63 = vsel %vm3849_vm2, %v7293_v28, 0.0 }
 0x310   : > { %v7338_v37 = vadd.f32 %v7337_v39, %v7336_v17  ;;  %v3804_v30 = vadd.f32 %v10133_v23, %v13353_v4  ;;  %v10637_v49 = vpop.f32.mrb[18].mxu1  ;;  %v3677_v34 = vpop.f32.mrb[19].mxu0  ;;  %v7295_v2 = vmax.f32 %v7263_v31, 0.0  ;;  %v3883_v26 = vsel %vm3849_vm2, %v3834_v43, 0.0 }
 0x311   : > { %v7294_v6 = vmax.f32 %v7262_v18, 0.0  ;;  %v7265_v7 = vadd.f32 %v10637_v49, %v13358_v5  ;;  %v7138_v15 = vpop.f32.mrb[19].mxu1  ;;  %v3880_v12 = vadd.f32 %v3879_v21, %v3878_v29  ;;  %v3881_v44 = vsel %vm3849_vm2, %v3833_v45, 0.0 }
 0x312   : > { %v7340_v46 = vadd.f32 %v7339_v63, %v7338_v37  ;;  %v3836_v48 = vmax.f32 %v3804_v30, 0.0  ;;  %v3803_v50 = vadd.f32 %v13353_v4, %v3677_v34  ;;  %v7264_v11 = vadd.f32 %v13358_v5, %v7138_v15 }
 0x313   : > { %v7341_v10 = vsel %vm3849_vm2, %v7294_v6, 0.0  ;;  %v10136_v52 = vpop.f32.mrb[20].mxu0  ;;  %v3882_v16 = vadd.f32 %v3881_v44, %v3880_v12  ;;  %v7297_v22 = vmax.f32 %v7265_v7, 0.0  ;;  %v7343_v9 = vsel %vm3849_vm2, %v7295_v2, 0.0 }
 0x314   : > { %v7342_v54 = vadd.f32 %v7341_v10, %v7340_v46  ;;  %v3806_v35 = vadd.f32 %v10136_v52, %v13353_v4  ;;  %v10640_v56 = vpop.f32.mrb[20].mxu1  ;;  %v3687_v58 = vpop.f32.mrb[21].mxu0  ;;  %v3835_v60 = vmax.f32 %v3803_v50, 0.0  ;;  %v7296_v62 = vmax.f32 %v7264_v11, 0.0 }
 0x315   : > { %v7267_v8 = vadd.f32 %v10640_v56, %v13358_v5  ;;  %v7148_v51 = vpop.f32.mrb[21].mxu1  ;;  %v3887_v53 = vsel %vm3849_vm2, %v3836_v48, 0.0  ;;  %v3884_v55 = vadd.f32 %v3883_v26, %v3882_v16  ;;  %v3805_v57 = vadd.f32 %v13353_v4, %v3687_v58 }
 0x316   : > { %v7344_v19 = vadd.f32 %v7343_v9, %v7342_v54  ;;  %v3885_v59 = vsel %vm3849_vm2, %v3835_v60, 0.0  ;;  %v7345_v27 = vsel %vm3849_vm2, %v7296_v62, 0.0  ;;  %v3838_v24 = vmax.f32 %v3806_v35, 0.0 }
 0x317   : > { %v7266_v13 = vadd.f32 %v13358_v5, %v7148_v51  ;;  %v10139_v61 = vpop.f32.mrb[22].mxu0  ;;  %v7347_v14 = vsel %vm3849_vm2, %v7297_v22, 0.0  ;;  %v3886_v41 = vadd.f32 %v3885_v59, %v3884_v55  ;;  %v3837_v28 = vmax.f32 %v3805_v57, 0.0 }
 0x318   : > { %v7346_v25 = vadd.f32 %v7345_v27, %v7344_v19  ;;  %v10643_v33 = vpop.f32.mrb[22].mxu1  ;;  %v3697_v36 = vpop.f32.mrb[23].mxu0  ;;  %v7299_v31 = vmax.f32 %v7267_v8, 0.0  ;;  %v3808_v40 = vadd.f32 %v10139_v61, %v13353_v4  ;;  %v3891_v18 = vsel %vm3849_vm2, %v3838_v24, 0.0 }
 0x319   : > { %v7298_v38 = vmax.f32 %v7266_v13, 0.0  ;;  %v7269_v42 = vadd.f32 %v10643_v33, %v13358_v5  ;;  %v7158_v17 = vpop.f32.mrb[23].mxu1  ;;  %v3888_v20 = vadd.f32 %v3887_v53, %v3886_v41  ;;  %v3889_v21 = vsel %vm3849_vm2, %v3837_v28, 0.0 }
 0x31a   : > { %v7348_v39 = vadd.f32 %v7347_v14, %v7346_v25  ;;  %v3807_v43 = vadd.f32 %v13353_v4, %v3697_v36  ;;  %v3840_v29 = vmax.f32 %v3808_v40, 0.0  ;;  %v7268_v37 = vadd.f32 %v13358_v5, %v7158_v17 }
 0x31b   : > { %v7349_v23 = vsel %vm3849_vm2, %v7298_v38, 0.0  ;;  %v10142_v45 = vpop.f32.mrb[24].mxu0  ;;  %v3890_v30 = vadd.f32 %v3889_v21, %v3888_v20  ;;  %v7351_v7 = vsel %vm3849_vm2, %v7299_v31, 0.0  ;;  %v7301_v15 = vmax.f32 %v7269_v42, 0.0 }
 0x31c   : > { %v7350_v49 = vadd.f32 %v7349_v23, %v7348_v39  ;;  %v3839_v34 = vmax.f32 %v3807_v43, 0.0  ;;  %v3810_v63 = vadd.f32 %v10142_v45, %v13353_v4  ;;  %v10646_v2 = vpop.f32.mrb[24].mxu1  ;;  %v3707_v6 = vpop.f32.mrb[25].mxu0  ;;  %v7300_v12 = vmax.f32 %v7268_v37, 0.0 }
 0x31d   : > { %v7271_v44 = vadd.f32 %v10646_v2, %v13358_v5  ;;  %v7168_v46 = vpop.f32.mrb[25].mxu1  ;;  %v3892_v48 = vadd.f32 %v3891_v18, %v3890_v30  ;;  %v3895_v11 = vsel %vm3849_vm2, %v3840_v29, 0.0  ;;  %v3809_v16 = vadd.f32 %v13353_v4, %v3707_v6 }
 0x31e   : > { %v3893_v26 = vsel %vm3849_vm2, %v3839_v34, 0.0  ;;  %v7352_v10 = vadd.f32 %v7351_v7, %v7350_v49  ;;  %v3842_v50 = vmax.f32 %v3810_v63, 0.0  ;;  %v7353_v52 = vsel %vm3849_vm2, %v7300_v12, 0.0 }
 0x31f   : > { %v7270_v54 = vadd.f32 %v13358_v5, %v7168_v46  ;;  %v10145_v22 = vpop.f32.mrb[26].mxu0  ;;  %v3894_v35 = vadd.f32 %v3893_v26, %v3892_v48  ;;  %v7303_v58 = vmax.f32 %v7271_v44, 0.0  ;;  %v7355_v8 = vsel %vm3849_vm2, %v7301_v15, 0.0 }
 0x320   : > { %v7354_v56 = vadd.f32 %v7353_v52, %v7352_v10  ;;  %v3812_v9 = vadd.f32 %v10145_v22, %v13353_v4  ;;  %v10649_v60 = vpop.f32.mrb[26].mxu1  ;;  %v3717_v62 = vpop.f32.mrb[27].mxu0  ;;  %v3841_v51 = vmax.f32 %v3809_v16, 0.0  ;;  %v3899_v57 = vsel %vm3849_vm2, %v3842_v50, 0.0 }
 0x321   : > { %v7302_v53 = vmax.f32 %v7270_v54, 0.0  ;;  %v7273_v55 = vadd.f32 %v10649_v60, %v13358_v5  ;;  %v7178_v19 = vpop.f32.mrb[27].mxu1  ;;  %v3896_v59 = vadd.f32 %v3895_v11, %v3894_v35  ;;  %v3811_v24 = vadd.f32 %v13353_v4, %v3717_v62 }
 0x322   : > { %v7356_v27 = vadd.f32 %v7355_v8, %v7354_v56  ;;  %v3897_v13 = vsel %vm3849_vm2, %v3841_v51, 0.0  ;;  %v3844_v14 = vmax.f32 %v3812_v9, 0.0  ;;  %v7272_v41 = vadd.f32 %v13358_v5, %v7178_v19 }
 0x323   : > { %v7357_v61 = vsel %vm3849_vm2, %v7302_v53, 0.0  ;;  %v10148_v25 = vpop.f32.mrb[28].mxu0  ;;  %v7359_v28 = vsel %vm3849_vm2, %v7303_v58, 0.0  ;;  %v3898_v33 = vadd.f32 %v3897_v13, %v3896_v59  ;;  %v3843_v31 = vmax.f32 %v3811_v24, 0.0 }
 0x324   : > { %v7358_v36 = vadd.f32 %v7357_v61, %v7356_v27  ;;  %v10652_v38 = vpop.f32.mrb[28].mxu1  ;;  %v3727_v40 = vpop.f32.mrb[29].mxu0  ;;  %v7305_v42 = vmax.f32 %v7273_v55, 0.0  ;;  %v7304_v17 = vmax.f32 %v7272_v41, 0.0  ;;  %v3814_v20 = vadd.f32 %v10148_v25, %v13353_v4 }
 0x325   : > { %v7275_v21 = vadd.f32 %v10652_v38, %v13358_v5  ;;  %v7188_v39 = vpop.f32.mrb[29].mxu1  ;;  %v3900_v43 = vadd.f32 %v3899_v57, %v3898_v33  ;;  %v3901_v18 = vsel %vm3849_vm2, %v3843_v31, 0.0  ;;  %v3813_v29 = vadd.f32 %v13353_v4, %v3727_v40 }
 0x326   : > { %v7360_v23 = vadd.f32 %v7359_v28, %v7358_v36  ;;  %v3903_v37 = vsel %vm3849_vm2, %v3844_v14, 0.0  ;;  %v7361_v45 = vsel %vm3849_vm2, %v7304_v17, 0.0  ;;  %v3846_v30 = vmax.f32 %v3814_v20, 0.0 }
 0x327   : > { %v7274_v49 = vadd.f32 %v13358_v5, %v7188_v39  ;;  %v10151_v34 = vpop.f32.mrb[30].mxu0  ;;  %v3902_v63 = vadd.f32 %v3901_v18, %v3900_v43  ;;  %v7307_v6 = vmax.f32 %v7275_v21, 0.0  ;;  %v3845_v7 = vmax.f32 %v3813_v29, 0.0  ;;  %v7533_v29 = vld [vmem:[%s13530_s8 + $0x8] sm:$0xff] }
 0x328   : > { %v7362_v2 = vadd.f32 %v7361_v45, %v7360_v23  ;;  %v10655_v15 = vpop.f32.mrb[30].mxu1  ;;  %v3737_v12 = vpop.f32.mrb[31].mxu0  ;;  %v7363_v44 = vsel %vm3849_vm2, %v7305_v42, 0.0  ;;  %v3816_v48 = vadd.f32 %v10151_v34, %v13353_v4  ;;  %v3907_v35 = vsel %vm3849_vm2, %v3846_v30, 0.0  ;;  %v7532_v23 = vld [vmem:[%s13530_s8] sm:$0xff] }
 0x329   : > { %v7306_v46 = vmax.f32 %v7274_v49, 0.0  ;;  %v7277_v26 = vadd.f32 %v10655_v15, %v13358_v5  ;;  %v7198_v10 = vpop.f32.mrb[31].mxu1  ;;  %v3904_v50 = vadd.f32 %v3903_v37, %v3902_v63  ;;  %v3905_v11 = vsel %vm3849_vm2, %v3845_v7, 0.0 }
 0x32a   : > { %v7364_v52 = vadd.f32 %v7363_v44, %v7362_v2  ;;  %v3815_v54 = vadd.f32 %v13353_v4, %v3737_v12  ;;  %v7276_v22 = vadd.f32 %v13358_v5, %v7198_v10  ;;  %v7367_v56 = vsel %vm3849_vm2, %v7307_v6, 0.0 }
 0x32b   : > { %v7365_v16 = vsel %vm3849_vm2, %v7306_v46, 0.0  ;;  %v3906_v58 = vadd.f32 %v3905_v11, %v3904_v50  ;;  %v3848_v60 = vmax.f32 %v3816_v48, 0.0  ;;  %v7309_v62 = vmax.f32 %v7277_v26, 0.0 }
 0x32c   : > { %v7366_v9 = vadd.f32 %v7365_v16, %v7364_v52  ;;  %v3847_v8 = vmax.f32 %v3815_v54, 0.0  ;;  %v7308_v51 = vmax.f32 %v7276_v22, 0.0 }
 0x32d   : > { %v3908_v53 = vadd.f32 %v3907_v35, %v3906_v58  ;;  %v3911_v5 = vsel %vm3849_vm2, %v3848_v60, 0.0  ;;  %v7371_v27 = vsel %vm3849_vm2, %v7309_v62, 0.0 }
 0x32e   : > { %v7368_v55 = vadd.f32 %v7367_v56, %v7366_v9  ;;  %v3909_v19 = vsel %vm3849_vm2, %v3847_v8, 0.0  ;;  %v7369_v57 = vsel %vm3849_vm2, %v7308_v51, 0.0 }
 0x32f   : > { %v3910_v59 = vadd.f32 %v3909_v19, %v3908_v53 }
 0x330   : > { %v7370_v4 = vadd.f32 %v7369_v57, %v7368_v55 }
 0x331   : > { %v3912_v24 = vadd.f32 %v3911_v5, %v3910_v59 }
 0x332   : > { %v7372_v13 = vadd.f32 %v7371_v27, %v7370_v4 }
 0x333   : > { %v3913_v61 = vrot.slane %v3912_v24, 4 }
 0x334   : > { %v7373_v14 = vrot.slane %v7372_v13, 4 }
 0x335   : > { %v3914_v41 = vadd.f32 %v3913_v61, %v3912_v24 }
 0x336   : > { %v7374_v25 = vadd.f32 %v7373_v14, %v7372_v13 }
 0x337   : > { %v3915_v28 = vrot.slane %v3914_v41, 2 }
 0x338   : > { %v7375_v33 = vrot.slane %v7374_v25, 2 }
 0x339   : > { %v3916_v36 = vadd.f32 %v3915_v28, %v3914_v41 }
 0x33a   : > { %v7376_v31 = vadd.f32 %v7375_v33, %v7374_v25 }
 0x33b   : > { %v3917_v38 = vrot.slane %v3916_v36, 1 }
 0x33c   : > { %v7377_v40 = vrot.slane %v7376_v31, 1 }
 0x33d   : > { %v3918_v17 = vadd.f32 %v3917_v38, %v3916_v36 }
 0x33e   : > { %v7378_v42 = vadd.f32 %v7377_v40, %v7376_v31 }
 0x33f   : > { %v3920_v21 = vmul.f32 0.00390625, %v3918_v17 }
 0x340   : > { %v7379_v20 = vmul.f32 0.00390625, %v7378_v42 }
 0x342   : > { %10659 = vmatmul.mubr.msk.f32.vlgmr.msra.gmra.mrb[32].mxu0 %vm3849_vm2, %v7379_v20 }
 0x343   : > { %10673 = vmatpush3.msra.mxu0 %v13320_v47  ;;  %10674 = vmatprep.mubr.msk.f32.mxu0 %vm11399_vm1, %v11398_v32 }
 0x344   : > { %10858 = vmatprep.subr.bf16.mxu0 %v11400_v0 }
 0x346   : > { %10675 = vmatmul.mubr.msk.f32.vlgmr.msra.gmra.mrb[34].mxu0 %vm3849_vm2, %v3920_v21 }
 0x347   : > { %10692 = vmatprep.mubr.msk.f32.mxu0 %vm11399_vm1, %v11398_v32 }
 0x415   : > { %v7450_v39 = vpop.f32.mrb[32].mxu0 }
 0x416   : > { %v10660_v43 = vpop.f32.mrb[33].mxu0  ;;  %10670 = vmatmul.mubr.msk.f32.vlgmr.msra.gmra.mrb[32].mxu1 %vm403_vm0, %v7450_v39 }
 0x417   : > { %10854 = vmatpush3.bf16.msra.mxu1 %v13339_v1  ;;  %10685 = vmatprep.mubr.msk.f32.mxu1 %vm11399_vm1, %v11398_v32  ;;  %v10859_v1 = vpack.c.bf16 %v7533_v29, %v7532_v23 }
 0x418   : > { %10855 = vmatprep.subr.bf16.mxu1 %v11400_v0 }
 0x419   : > { %v7603_v47 = vpop.f32.mrb[34].mxu0  ;;  %10860 = vmatpush3.bf16.msra.mxu0 %v10859_v1 }
 0x41a   : > { %v10676_v18 = vpop.f32.mrb[35].mxu0  ;;  %10861 = vmatprep.subr.bf16.mxu0 %v11400_v0 }
 0x41b   : > { %10857 = vmatpush3.bf16.msra.mxu1 %v13345_v3  ;;  %v7458_v3 = vld [vmem:[%s13529_s7] sm:$0x1] }
 0x41e   : > { %10686 = vmatmul.mubr.msk.f32.vlgmr.msra.gmra.mrb[34].mxu1 %vm403_vm0, %v7603_v47 }
 0x4e9   : > { %v7528_v37 = vpop.f32.mrb[32].mxu1 }
 0x4ea   : > { %v10671_v45 = vpop.f32.mrb[33].mxu1  ;;  %v7529_v63 = vadd.f32 %v7528_v37, %v7458_v3 }
 0x4f1   : > { %v7676_v30 = vpop.f32.mrb[34].mxu1 }
 0x4f2   : > { %v7677_v49 = vadd.f32 %v7676_v30, %v7458_v3  ;;  %v10687_v34 = vpop.f32.mrb[35].mxu1 }
 0x4f4   : > { %10693 = vmatmul.mubr.msk.f32.vlgmr.msra.gmra.mrb[36].mxu0 %vm7680_vm3, %v7677_v49 }
 0x4f5   : > { %10863 = vmatpush3.bf16.msra.mxu0 %v10859_v1  ;;  %10699 = vmatprep.mubr.msk.f32.mxu0 %vm11399_vm1, %v11398_v32 }
 0x4fc   : > { %10700 = vmatmul.mubr.msk.f32.vlgmr.msra.gmra.mrb[36].mxu0 %vm7680_vm3, %v7529_v63 }
 0x5cf   : > { %v7823_v0 = vpop.f32.mrb[36].mxu0 }
 0x5d0   : > { %7828 = vst.msk [vmem:[%s328_s15] sm:$0x1] %vm7827_vm4, %v7823_v0  ;;  %v10701_v2 = vpop.f32.mrb[37].mxu0 }
 0x5d1 PF: > { %s19_s30 = sadd.s32 1, %s11396_s30  }
 0x5d2   : > { %p16_p4 = scmp.ge.s32.totalorder %s19_s30, 4  }
 0x5d4   :  { %18 = sbr.rel (!%p16_p4) target bundleno = 1 (0x1), region = 106 }

</bundles_post_ra>
